<compile_context>
chip_gen: v5e
topology: v5e:2x2
jax: 0.10.0
libtpu: 0.0.40
codegen_flags: <defaults>
</compile_context>

<pallas_src>
import functools

import jax
import jax.numpy as jnp
import numpy as np
from jax import lax
from jax.experimental import pallas as pl
from jax.experimental.pallas import tpu as pltpu


def _round_up(x, m):
    return ((x + m - 1) // m) * m


def _decoder_kernel(*refs, seq_len, hidden, has_mask):
    if has_mask:
        (act_ref, feat_ref, h0_ref, c0_ref, ctx_ref, mask_ref,
         emb_ref, wie_ref, wif_ref, whh_ref, bg_ref,
         win_ref, woc_ref, woh_ref, wdec_ref, bdec_ref,
         h1_ref, c1_ref, alpha_ref, logit_ref) = refs
    else:
        (act_ref, feat_ref, h0_ref, c0_ref, ctx_ref,
         emb_ref, wie_ref, wif_ref, whh_ref, bg_ref,
         win_ref, woc_ref, woh_ref, wdec_ref, bdec_ref,
         h1_ref, c1_ref, alpha_ref, logit_ref) = refs
        mask_ref = None

    H = hidden
    TB = h0_ref.shape[0]
    V = emb_ref.shape[0]
    S_pad = ctx_ref.shape[1]

    # ---- embedding lookup as a one-hot matmul on the MXU (no gather) ----
    act = act_ref[...]                                          # (TB, 1) int32
    onehot = (lax.broadcasted_iota(jnp.int32, (TB, V), 1) == act)
    onehot = onehot.astype(jnp.bfloat16)                        # (TB, V)
    emb = jnp.dot(onehot, emb_ref[...],
                  preferred_element_type=jnp.float32)           # (TB, E) f32

    # ---- LSTMCell gates: split input matmul (emb / feature) + recurrent ----
    gates = (jnp.dot(emb.astype(jnp.bfloat16), wie_ref[...],
                     preferred_element_type=jnp.float32)
             + jnp.dot(feat_ref[...], wif_ref[...],
                       preferred_element_type=jnp.float32)
             + jnp.dot(h0_ref[...], whh_ref[...],
                       preferred_element_type=jnp.float32)
             + bg_ref[...])                                     # (TB, 4H) f32

    # Full-width activations (2 EUP passes), then per-gate lane slices.
    sig = jax.nn.sigmoid(gates)
    tnh = jnp.tanh(gates)
    i_g = sig[:, 0 * H:1 * H]
    f_g = sig[:, 1 * H:2 * H]
    g_g = tnh[:, 2 * H:3 * H]
    o_g = sig[:, 3 * H:4 * H]

    c1 = f_g * c0_ref[...] + i_g * g_g
    h1 = o_g * jnp.tanh(c1)
    h1_ref[...] = h1
    c1_ref[...] = c1

    # ---- SoftDotAttention (dropout on h1 is identity in eval mode) ----
    h1_b = h1.astype(jnp.bfloat16)
    ctx = ctx_ref[...]                                          # (TB, S_pad, H) bf16
    target = jnp.dot(h1_b, win_ref[...],
                     preferred_element_type=jnp.float32)        # (TB, H) f32

    # scores over seq (padding rows of ctx are zero and are masked below)
    scores = jnp.sum(ctx * target[:, None, :], axis=-1)         # (TB, S_pad) f32

    if has_mask:
        scores = jnp.where(mask_ref[...] > 0, -jnp.inf, scores)
    elif seq_len != S_pad:
        lane = lax.broadcasted_iota(jnp.int32, (TB, S_pad), 1)
        scores = jnp.where(lane >= seq_len, -jnp.inf, scores)

    # softmax over seq (f32); divide runs on the EUP via approx reciprocal
    m = jnp.max(scores, axis=-1, keepdims=True)
    e = jnp.exp(scores - m)
    denom = jnp.sum(e, axis=-1, keepdims=True)
    alpha = e * pl.reciprocal(denom, approx=True)               # (TB, S_pad)
    alpha_ref[...] = alpha                                      # lane-dense store

    weighted = jnp.sum(alpha[:, :, None] * ctx, axis=1)         # (TB, H) f32

    # linear_out on concat(weighted, h1) == two dots + add (no lane concat)
    h_tilde = jnp.tanh(
        jnp.dot(weighted.astype(jnp.bfloat16), woc_ref[...],
                preferred_element_type=jnp.float32)
        + jnp.dot(h1_b, woh_ref[...], preferred_element_type=jnp.float32))

    # decoder2action (padded to a lane-dense width; sliced in the wrapper)
    logit_ref[...] = (jnp.dot(h_tilde.astype(jnp.bfloat16), wdec_ref[...],
                              preferred_element_type=jnp.float32)
                      + bdec_ref[...])


def prepare_params(params):
    """Transpose / split / pad / bf16-cast PyTorch-layout params (done once)."""
    V, E = params["embedding"].shape
    four_h, H = params["w_hh"].shape
    assert four_h == 4 * H
    A_out = params["w_dec"].shape[0]
    V_pad = _round_up(V, 8)
    A_pad = _round_up(A_out, 128)

    emb = jnp.zeros((V_pad, E), jnp.bfloat16)
    emb = emb.at[:V].set(params["embedding"].astype(jnp.bfloat16))
    w_ih = params["w_ih"]                                       # (4H, E+F)
    w_dec_T = jnp.zeros((H, A_pad), jnp.bfloat16)
    w_dec_T = w_dec_T.at[:, :A_out].set(params["w_dec"].T.astype(jnp.bfloat16))
    b_dec = jnp.zeros((1, A_pad), jnp.float32)
    b_dec = b_dec.at[:, :A_out].set(params["b_dec"].astype(jnp.float32))
    return {
        "embedding": emb,                                        # (V_pad, E) bf16
        "w_ih_emb_T": w_ih[:, :E].T.astype(jnp.bfloat16),        # (E, 4H)
        "w_ih_feat_T": w_ih[:, E:].T.astype(jnp.bfloat16),       # (F, 4H)
        "w_hh_T": params["w_hh"].T.astype(jnp.bfloat16),         # (H, 4H)
        "b_gates": (params["b_ih"] + params["b_hh"]
                    ).reshape(1, 4 * H).astype(jnp.float32),     # (1, 4H)
        "w_in_T": params["w_in"].T.astype(jnp.bfloat16),         # (H, H)
        "w_out_ctx_T": params["w_out"][:, :H].T.astype(jnp.bfloat16),
        "w_out_h_T": params["w_out"][:, H:].T.astype(jnp.bfloat16),
        "w_dec_T": w_dec_T,                                      # (H, A_pad)
        "b_dec": b_dec,                                          # (1, A_pad)
        "n_actions": int(A_out),
        "hidden": int(H),
    }


def attn_decoder_step(prep, action, feature, h_0, c_0, ctx, ctx_mask=None,
                      batch_block=None):
    """One decoder step (eval mode). Returns (h_1, c_1, alpha, logit)."""
    B = action.shape[0]
    S = ctx.shape[1]
    H = prep["hidden"]
    F = feature.shape[1]
    A_out = prep["n_actions"]
    A_pad = prep["w_dec_T"].shape[1]
    S_pad = _round_up(S, 128)
    has_mask = ctx_mask is not None

    if batch_block is None:
        batch_block = B if B <= 128 else 128
    assert B % batch_block == 0, "batch must be divisible by batch_block"
    TB = batch_block
    grid = (B // TB,)

    # wrapper-side prep: dtype casts + seq / action-width padding
    action_i = action.reshape(B, 1).astype(jnp.int32)
    feat_b = feature.astype(jnp.bfloat16)                        # matmul-only
    h0_b = h_0.astype(jnp.bfloat16)                              # matmul-only
    c0_f = c_0.astype(jnp.float32)                               # elementwise
    ctx_p = jnp.zeros((B, S_pad, H), jnp.bfloat16)
    ctx_p = ctx_p.at[:, :S, :].set(ctx.astype(jnp.bfloat16))

    inputs = [action_i, feat_b, h0_b, c0_f, ctx_p]
    in_specs = [
        pl.BlockSpec((TB, 1), lambda b: (b, 0)),
        pl.BlockSpec((TB, F), lambda b: (b, 0)),
        pl.BlockSpec((TB, H), lambda b: (b, 0)),
        pl.BlockSpec((TB, H), lambda b: (b, 0)),
        pl.BlockSpec((TB, S_pad, H), lambda b: (b, 0, 0)),
    ]
    if has_mask:
        mask_p = jnp.ones((B, S_pad), jnp.float32)               # pad = masked
        mask_p = mask_p.at[:, :S].set(ctx_mask.astype(jnp.float32))
        inputs.append(mask_p)
        in_specs.append(pl.BlockSpec((TB, S_pad), lambda b: (b, 0)))

    # weights: full blocks, constant index_map -> VMEM-resident across the grid
    for name in ("embedding", "w_ih_emb_T", "w_ih_feat_T", "w_hh_T", "b_gates",
                 "w_in_T", "w_out_ctx_T", "w_out_h_T", "w_dec_T", "b_dec"):
        w = prep[name]
        inputs.append(w)
        in_specs.append(pl.BlockSpec(w.shape, lambda b, n=w.ndim: (0,) * n))

    out_shape = (
        jax.ShapeDtypeStruct((B, H), jnp.float32),      # h_1
        jax.ShapeDtypeStruct((B, H), jnp.float32),      # c_1
        jax.ShapeDtypeStruct((B, S_pad), jnp.float32),  # alpha (padded, lane-dense)
        jax.ShapeDtypeStruct((B, A_pad), jnp.float32),  # logit (padded, lane-dense)
    )
    out_specs = (
        pl.BlockSpec((TB, H), lambda b: (b, 0)),
        pl.BlockSpec((TB, H), lambda b: (b, 0)),
        pl.BlockSpec((TB, S_pad), lambda b: (b, 0)),
        pl.BlockSpec((TB, A_pad), lambda b: (b, 0)),
    )

    kernel = functools.partial(_decoder_kernel, seq_len=S, hidden=H,
                               has_mask=has_mask)

    h1, c1, alpha_p, logit_p = pl.pallas_call(
        kernel,
        out_shape=out_shape,
        grid=grid,
        in_specs=in_specs,
        out_specs=out_specs,
        compiler_params=pltpu.CompilerParams(
            dimension_semantics=("parallel",)),
    )(*inputs)

    return h1, c1, alpha_p[:, :S], logit_p[:, :A_out]


def _reference(params, action, feature, h_0, c_0, ctx, ctx_mask=None):
    """Pure-JAX f32 reference matching the PyTorch forward (eval mode)."""
    H = params["w_hh"].shape[1]
    emb = jnp.take(params["embedding"], action[:, 0], axis=0)
    x = jnp.concatenate([emb, feature], axis=1)
    gates = (x @ params["w_ih"].T + params["b_ih"]
             + h_0 @ params["w_hh"].T + params["b_hh"])
    i = jax.nn.sigmoid(gates[:, :H])
    f = jax.nn.sigmoid(gates[:, H:2 * H])
    g = jnp.tanh(gates[:, 2 * H:3 * H])
    o = jax.nn.sigmoid(gates[:, 3 * H:])
    c1 = f * c_0 + i * g
    h1 = o * jnp.tanh(c1)
    target = h1 @ params["w_in"].T
    attn = jnp.einsum("bsd,bd->bs", ctx, target)
    if ctx_mask is not None:
        attn = jnp.where(ctx_mask > 0, -jnp.inf, attn)
    alpha = jax.nn.softmax(attn, axis=-1)
    weighted = jnp.einsum("bs,bsd->bd", alpha, ctx)
    h_tilde = jnp.tanh(jnp.concatenate([weighted, h1], axis=1) @ params["w_out"].T)
    logit = h_tilde @ params["w_dec"].T + params["b_dec"]
    return h1, c1, alpha, logit


def init_params(key, input_action_size, output_action_size,
                embedding_size, hidden_size, feature_size):
    ks = jax.random.split(key, 9)
    E, H, F = embedding_size, hidden_size, feature_size
    s = 0.1
    return {
        "embedding": s * jax.random.normal(ks[0], (input_action_size, E), jnp.float32),
        "w_ih": s * jax.random.normal(ks[1], (4 * H, E + F), jnp.float32),
        "b_ih": s * jax.random.normal(ks[2], (4 * H,), jnp.float32),
        "w_hh": s * jax.random.normal(ks[3], (4 * H, H), jnp.float32),
        "b_hh": s * jax.random.normal(ks[4], (4 * H,), jnp.float32),
        "w_in": s * jax.random.normal(ks[5], (H, H), jnp.float32),
        "w_out": s * jax.random.normal(ks[6], (H, 2 * H), jnp.float32),
        "w_dec": s * jax.random.normal(ks[7], (output_action_size, H), jnp.float32),
        "b_dec": s * jax.random.normal(ks[8], (output_action_size,), jnp.float32),
    }


if __name__ == "__main__":
    key = jax.random.PRNGKey(0)
    k_par, k_act, k_feat, k_h, k_c, k_ctx, k_mask = jax.random.split(key, 7)

    input_action_size = 6
    output_action_size = 6
    embedding_size = 32
    hidden_size = 32
    feature_size = 64
    batch = 8
    seq_len = 8

    params = init_params(k_par, input_action_size, output_action_size,
                         embedding_size, hidden_size, feature_size)
    prep = prepare_params(params)

    action = jax.random.randint(k_act, (batch, 1), 0, input_action_size, jnp.int32)
    feature = jax.random.normal(k_feat, (batch, feature_size), jnp.float32)
    h_0 = jax.random.normal(k_h, (batch, hidden_size), jnp.float32)
    c_0 = jax.random.normal(k_c, (batch, hidden_size), jnp.float32)
    ctx = jax.random.normal(k_ctx, (batch, seq_len, hidden_size), jnp.float32)
    # sparse mask with at least one unmasked position per row (avoids the
    # all-masked -> NaN case that PyTorch also produces)
    ctx_mask = jax.random.uniform(k_mask, (batch, seq_len)) < 0.3
    ctx_mask = ctx_mask.at[:, 0].set(False)

    # tolerance accounts for bf16 matmul operands + approx softmax reciprocal
    tol = dict(rtol=5e-2, atol=5e-2)

    # unmasked path (specialized: no mask input, no where)
    outs = attn_decoder_step(prep, action, feature, h_0, c_0, ctx, ctx_mask=None)
    jax.block_until_ready(outs)
    refs = _reference(params, action, feature, h_0, c_0, ctx, None)
    for got, want in zip(outs, refs):
        np.testing.assert_allclose(np.asarray(got), np.asarray(want), **tol)

    # masked path
    outs_m = attn_decoder_step(prep, action, feature, h_0, c_0, ctx, ctx_mask=ctx_mask)
    jax.block_until_ready(outs_m)
    refs_m = _reference(params, action, feature, h_0, c_0, ctx, ctx_mask)
    for got, want in zip(outs_m, refs_m):
        np.testing.assert_allclose(np.asarray(got), np.asarray(want), **tol)

    print("KERNEL_OK")
</pallas_src>

<mosaic_0001>
module attributes {stable_mosaic.version = 11 : i64} {
  func.func @_decoder_kernel(%arg0: i32, %arg1: memref<8x1xi32, #tpu.memory_space<vmem>>, %arg2: memref<8x64xbf16, #tpu.memory_space<vmem>>, %arg3: memref<8x32xbf16, #tpu.memory_space<vmem>>, %arg4: memref<8x32xf32, #tpu.memory_space<vmem>>, %arg5: memref<8x128x32xbf16, #tpu.memory_space<vmem>>, %arg6: memref<8x32xbf16, #tpu.memory_space<vmem>>, %arg7: memref<32x128xbf16, #tpu.memory_space<vmem>>, %arg8: memref<64x128xbf16, #tpu.memory_space<vmem>>, %arg9: memref<32x128xbf16, #tpu.memory_space<vmem>>, %arg10: memref<1x128xf32, #tpu.memory_space<vmem>>, %arg11: memref<32x32xbf16, #tpu.memory_space<vmem>>, %arg12: memref<32x32xbf16, #tpu.memory_space<vmem>>, %arg13: memref<32x32xbf16, #tpu.memory_space<vmem>>, %arg14: memref<32x128xbf16, #tpu.memory_space<vmem>>, %arg15: memref<1x128xf32, #tpu.memory_space<vmem>>, %arg16: memref<8x32xf32, #tpu.memory_space<vmem>>, %arg17: memref<8x32xf32, #tpu.memory_space<vmem>>, %arg18: memref<8x128xf32, #tpu.memory_space<vmem>>, %arg19: memref<8x128xf32, #tpu.memory_space<vmem>>) attributes {dimension_semantics = [#tpu.dimension_semantics<parallel>], iteration_bounds = array<i64: 1>, scalar_prefetch = 0 : i64, scratch_operands = 0 : i64, tpu.core_type = #tpu.core_type<tc>, window_params = [{transform_indices = @transform_0, window_bounds = array<i64: 8, 1>}, {transform_indices = @transform_1, window_bounds = array<i64: 8, 64>}, {transform_indices = @transform_2, window_bounds = array<i64: 8, 32>}, {transform_indices = @transform_3, window_bounds = array<i64: 8, 32>}, {transform_indices = @transform_4, window_bounds = array<i64: 8, 128, 32>}, {pipeline_mode = #tpu.pipeline_mode<synchronous>, transform_indices = @transform_5, window_bounds = array<i64: 8, 32>}, {pipeline_mode = #tpu.pipeline_mode<synchronous>, transform_indices = @transform_6, window_bounds = array<i64: 32, 128>}, {pipeline_mode = #tpu.pipeline_mode<synchronous>, transform_indices = @transform_7, window_bounds = array<i64: 64, 128>}, {pipeline_mode = #tpu.pipeline_mode<synchronous>, transform_indices = @transform_8, window_bounds = array<i64: 32, 128>}, {pipeline_mode = #tpu.pipeline_mode<synchronous>, transform_indices = @transform_9, window_bounds = array<i64: 1, 128>}, {pipeline_mode = #tpu.pipeline_mode<synchronous>, transform_indices = @transform_10, window_bounds = array<i64: 32, 32>}, {pipeline_mode = #tpu.pipeline_mode<synchronous>, transform_indices = @transform_11, window_bounds = array<i64: 32, 32>}, {pipeline_mode = #tpu.pipeline_mode<synchronous>, transform_indices = @transform_12, window_bounds = array<i64: 32, 32>}, {pipeline_mode = #tpu.pipeline_mode<synchronous>, transform_indices = @transform_13, window_bounds = array<i64: 32, 128>}, {pipeline_mode = #tpu.pipeline_mode<synchronous>, transform_indices = @transform_14, window_bounds = array<i64: 1, 128>}, {transform_indices = @transform_15, window_bounds = array<i64: 8, 32>}, {transform_indices = @transform_16, window_bounds = array<i64: 8, 32>}, {transform_indices = @transform_17, window_bounds = array<i64: 8, 128>}, {transform_indices = @transform_18, window_bounds = array<i64: 8, 128>}]} {
    %c0 = arith.constant 0 : index
    %c0_0 = arith.constant 0 : index
    %0 = vector.load %arg1[%c0, %c0_0] : memref<8x1xi32, #tpu.memory_space<vmem>>, vector<8x1xi32>
    %1 = tpu.iota {dimensions = array<i32: 1>} : vector<8x8xi32>
    %2 = vector.broadcast %0 : vector<8x1xi32> to vector<8x8xi32>
    %3 = arith.cmpi eq, %1, %2 : vector<8x8xi32>
    %4 = arith.extui %3 : vector<8x8xi1> to vector<8x8xi32>
    %5 = arith.sitofp %4 : vector<8x8xi32> to vector<8x8xf32>
    %6 = arith.truncf %5 : vector<8x8xf32> to vector<8x8xbf16>
    %c0_1 = arith.constant 0 : index
    %c0_2 = arith.constant 0 : index
    %7 = vector.load %arg6[%c0_1, %c0_2] : memref<8x32xbf16, #tpu.memory_space<vmem>>, vector<8x32xbf16>
    %cst = arith.constant dense<0.000000e+00> : vector<8x32xf32>
    %8 = tpu.matmul %6, %7, %cst {dimension_numbers = #tpu.dot_dimension_numbers<[1], [0], [0], [1], [0, 0, 1, 1], [], []>} : vector<8x8xbf16>, vector<8x32xbf16>, vector<8x32xf32> -> vector<8x32xf32>
    %9 = arith.truncf %8 : vector<8x32xf32> to vector<8x32xbf16>
    %c0_3 = arith.constant 0 : index
    %c0_4 = arith.constant 0 : index
    %10 = vector.load %arg7[%c0_3, %c0_4] : memref<32x128xbf16, #tpu.memory_space<vmem>>, vector<32x128xbf16>
    %cst_5 = arith.constant dense<0.000000e+00> : vector<8x128xf32>
    %11 = tpu.matmul %9, %10, %cst_5 {dimension_numbers = #tpu.dot_dimension_numbers<[1], [0], [0], [1], [0, 0, 1, 1], [], []>} : vector<8x32xbf16>, vector<32x128xbf16>, vector<8x128xf32> -> vector<8x128xf32>
    %c0_6 = arith.constant 0 : index
    %c0_7 = arith.constant 0 : index
    %12 = vector.load %arg2[%c0_6, %c0_7] : memref<8x64xbf16, #tpu.memory_space<vmem>>, vector<8x64xbf16>
    %c0_8 = arith.constant 0 : index
    %c0_9 = arith.constant 0 : index
    %13 = vector.load %arg8[%c0_8, %c0_9] : memref<64x128xbf16, #tpu.memory_space<vmem>>, vector<64x128xbf16>
    %cst_10 = arith.constant dense<0.000000e+00> : vector<8x128xf32>
    %14 = tpu.matmul %12, %13, %cst_10 {dimension_numbers = #tpu.dot_dimension_numbers<[1], [0], [0], [1], [0, 0, 1, 1], [], []>} : vector<8x64xbf16>, vector<64x128xbf16>, vector<8x128xf32> -> vector<8x128xf32>
    %15 = arith.addf %11, %14 : vector<8x128xf32>
    %c0_11 = arith.constant 0 : index
    %c0_12 = arith.constant 0 : index
    %16 = vector.load %arg3[%c0_11, %c0_12] : memref<8x32xbf16, #tpu.memory_space<vmem>>, vector<8x32xbf16>
    %c0_13 = arith.constant 0 : index
    %c0_14 = arith.constant 0 : index
    %17 = vector.load %arg9[%c0_13, %c0_14] : memref<32x128xbf16, #tpu.memory_space<vmem>>, vector<32x128xbf16>
    %cst_15 = arith.constant dense<0.000000e+00> : vector<8x128xf32>
    %18 = tpu.matmul %16, %17, %cst_15 {dimension_numbers = #tpu.dot_dimension_numbers<[1], [0], [0], [1], [0, 0, 1, 1], [], []>} : vector<8x32xbf16>, vector<32x128xbf16>, vector<8x128xf32> -> vector<8x128xf32>
    %19 = arith.addf %15, %18 : vector<8x128xf32>
    %c0_16 = arith.constant 0 : index
    %c0_17 = arith.constant 0 : index
    %20 = vector.load %arg10[%c0_16, %c0_17] : memref<1x128xf32, #tpu.memory_space<vmem>>, vector<1x128xf32>
    %21 = vector.broadcast %20 : vector<1x128xf32> to vector<8x128xf32>
    %22 = arith.addf %19, %21 : vector<8x128xf32>
    %23 = arith.negf %22 : vector<8x128xf32>
    %24 = math.exp %23 : vector<8x128xf32>
    %cst_18 = arith.constant 1.000000e+00 : f32
    %25 = vector.broadcast %cst_18 : f32 to vector<8x128xf32>
    %26 = arith.addf %25, %24 : vector<8x128xf32>
    %27 = arith.divf %25, %26 : vector<8x128xf32>
    %28 = math.tanh %22 : vector<8x128xf32>
    %29 = vector.extract_strided_slice %27 {offsets = [0, 0], sizes = [8, 32], strides = [1, 1]} : vector<8x128xf32> to vector<8x32xf32>
    %30 = vector.extract_strided_slice %27 {offsets = [0, 32], sizes = [8, 32], strides = [1, 1]} : vector<8x128xf32> to vector<8x32xf32>
    %31 = vector.extract_strided_slice %28 {offsets = [0, 64], sizes = [8, 32], strides = [1, 1]} : vector<8x128xf32> to vector<8x32xf32>
    %32 = vector.extract_strided_slice %27 {offsets = [0, 96], sizes = [8, 32], strides = [1, 1]} : vector<8x128xf32> to vector<8x32xf32>
    %c0_19 = arith.constant 0 : index
    %c0_20 = arith.constant 0 : index
    %33 = vector.load %arg4[%c0_19, %c0_20] : memref<8x32xf32, #tpu.memory_space<vmem>>, vector<8x32xf32>
    %34 = arith.mulf %30, %33 : vector<8x32xf32>
    %35 = arith.mulf %29, %31 : vector<8x32xf32>
    %36 = arith.addf %34, %35 : vector<8x32xf32>
    %37 = math.tanh %36 : vector<8x32xf32>
    %38 = arith.mulf %32, %37 : vector<8x32xf32>
    %c0_21 = arith.constant 0 : index
    %c0_22 = arith.constant 0 : index
    %39 = vector.load %arg16[%c0_21, %c0_22] : memref<8x32xf32, #tpu.memory_space<vmem>>, vector<8x32xf32>
    tpu.vector_store %arg16[%c0_21, %c0_22], %38 {strides = array<i32>} : memref<8x32xf32, #tpu.memory_space<vmem>>, vector<8x32xf32>,
    %c0_23 = arith.constant 0 : index
    %c0_24 = arith.constant 0 : index
    %40 = vector.load %arg17[%c0_23, %c0_24] : memref<8x32xf32, #tpu.memory_space<vmem>>, vector<8x32xf32>
    tpu.vector_store %arg17[%c0_23, %c0_24], %36 {strides = array<i32>} : memref<8x32xf32, #tpu.memory_space<vmem>>, vector<8x32xf32>,
    %41 = arith.truncf %38 : vector<8x32xf32> to vector<8x32xbf16>
    %c0_25 = arith.constant 0 : index
    %c0_26 = arith.constant 0 : index
    %c0_27 = arith.constant 0 : index
    %42 = vector.load %arg5[%c0_25, %c0_26, %c0_27] : memref<8x128x32xbf16, #tpu.memory_space<vmem>>, vector<8x128x32xbf16>
    %c0_28 = arith.constant 0 : index
    %c0_29 = arith.constant 0 : index
    %43 = vector.load %arg11[%c0_28, %c0_29] : memref<32x32xbf16, #tpu.memory_space<vmem>>, vector<32x32xbf16>
    %cst_30 = arith.constant dense<0.000000e+00> : vector<8x32xf32>
    %44 = tpu.matmul %41, %43, %cst_30 {dimension_numbers = #tpu.dot_dimension_numbers<[1], [0], [0], [1], [0, 0, 1, 1], [], []>} : vector<8x32xbf16>, vector<32x32xbf16>, vector<8x32xf32> -> vector<8x32xf32>
    %45 = vector.shape_cast %44 : vector<8x32xf32> to vector<8x1x32xf32>
    %46 = arith.extf %42 : vector<8x128x32xbf16> to vector<8x128x32xf32>
    %47 = vector.broadcast %45 : vector<8x1x32xf32> to vector<8x128x32xf32>
    %48 = arith.mulf %46, %47 : vector<8x128x32xf32>
    %cst_31 = arith.constant dense<0.000000e+00> : vector<8x128xf32>
    %49 = vector.multi_reduction <add>, %48, %cst_31 [2] : vector<8x128x32xf32> to vector<8x128xf32>
    %50 = tpu.iota {dimensions = array<i32: 1>} : vector<8x128xi32>
    %c8_i32 = arith.constant 8 : i32
    %51 = vector.broadcast %c8_i32 : i32 to vector<8x128xi32>
    %52 = arith.cmpi sge, %50, %51 : vector<8x128xi32>
    %cst_32 = arith.constant 0xFF800000 : f32
    %53 = vector.broadcast %cst_32 : f32 to vector<8x128xf32>
    %54 = arith.select %52, %53, %49 : vector<8x128xi1>, vector<8x128xf32>
    %cst_33 = arith.constant dense<0xFF800000> : vector<8xf32>
    %55 = vector.multi_reduction <maximumf>, %54, %cst_33 [1] : vector<8x128xf32> to vector<8xf32>
    %56 = vector.shape_cast %55 : vector<8xf32> to vector<8x1xf32>
    %57 = vector.broadcast %56 : vector<8x1xf32> to vector<8x128xf32>
    %58 = arith.subf %54, %57 : vector<8x128xf32>
    %59 = math.exp %58 : vector<8x128xf32>
    %cst_34 = arith.constant dense<0.000000e+00> : vector<8xf32>
    %60 = vector.multi_reduction <add>, %59, %cst_34 [1] : vector<8x128xf32> to vector<8xf32>
    %61 = vector.shape_cast %60 : vector<8xf32> to vector<8x1xf32>
    %62 = tpu.reciprocal %61 {approx = true} : vector<8x1xf32> -> vector<8x1xf32>
    %63 = vector.broadcast %62 : vector<8x1xf32> to vector<8x128xf32>
    %64 = arith.mulf %59, %63 : vector<8x128xf32>
    %c0_35 = arith.constant 0 : index
    %c0_36 = arith.constant 0 : index
    %65 = vector.load %arg18[%c0_35, %c0_36] : memref<8x128xf32, #tpu.memory_space<vmem>>, vector<8x128xf32>
    tpu.vector_store %arg18[%c0_35, %c0_36], %64 {strides = array<i32>} : memref<8x128xf32, #tpu.memory_space<vmem>>, vector<8x128xf32>,
    %66 = vector.shape_cast %64 : vector<8x128xf32> to vector<8x128x1xf32>
    %67 = arith.extf %42 : vector<8x128x32xbf16> to vector<8x128x32xf32>
    %68 = vector.broadcast %66 : vector<8x128x1xf32> to vector<8x128x32xf32>
    %69 = arith.mulf %68, %67 : vector<8x128x32xf32>
    %cst_37 = arith.constant dense<0.000000e+00> : vector<8x32xf32>
    %70 = vector.multi_reduction <add>, %69, %cst_37 [1] : vector<8x128x32xf32> to vector<8x32xf32>
    %71 = arith.truncf %70 : vector<8x32xf32> to vector<8x32xbf16>
    %c0_38 = arith.constant 0 : index
    %c0_39 = arith.constant 0 : index
    %72 = vector.load %arg12[%c0_38, %c0_39] : memref<32x32xbf16, #tpu.memory_space<vmem>>, vector<32x32xbf16>
    %cst_40 = arith.constant dense<0.000000e+00> : vector<8x32xf32>
    %73 = tpu.matmul %71, %72, %cst_40 {dimension_numbers = #tpu.dot_dimension_numbers<[1], [0], [0], [1], [0, 0, 1, 1], [], []>} : vector<8x32xbf16>, vector<32x32xbf16>, vector<8x32xf32> -> vector<8x32xf32>
    %c0_41 = arith.constant 0 : index
    %c0_42 = arith.constant 0 : index
    %74 = vector.load %arg13[%c0_41, %c0_42] : memref<32x32xbf16, #tpu.memory_space<vmem>>, vector<32x32xbf16>
    %cst_43 = arith.constant dense<0.000000e+00> : vector<8x32xf32>
    %75 = tpu.matmul %41, %74, %cst_43 {dimension_numbers = #tpu.dot_dimension_numbers<[1], [0], [0], [1], [0, 0, 1, 1], [], []>} : vector<8x32xbf16>, vector<32x32xbf16>, vector<8x32xf32> -> vector<8x32xf32>
    %76 = arith.addf %73, %75 : vector<8x32xf32>
    %77 = math.tanh %76 : vector<8x32xf32>
    %78 = arith.truncf %77 : vector<8x32xf32> to vector<8x32xbf16>
    %c0_44 = arith.constant 0 : index
    %c0_45 = arith.constant 0 : index
    %79 = vector.load %arg14[%c0_44, %c0_45] : memref<32x128xbf16, #tpu.memory_space<vmem>>, vector<32x128xbf16>
    %cst_46 = arith.constant dense<0.000000e+00> : vector<8x128xf32>
    %80 = tpu.matmul %78, %79, %cst_46 {dimension_numbers = #tpu.dot_dimension_numbers<[1], [0], [0], [1], [0, 0, 1, 1], [], []>} : vector<8x32xbf16>, vector<32x128xbf16>, vector<8x128xf32> -> vector<8x128xf32>
    %c0_47 = arith.constant 0 : index
    %c0_48 = arith.constant 0 : index
    %81 = vector.load %arg15[%c0_47, %c0_48] : memref<1x128xf32, #tpu.memory_space<vmem>>, vector<1x128xf32>
    %82 = vector.broadcast %81 : vector<1x128xf32> to vector<8x128xf32>
    %83 = arith.addf %80, %82 : vector<8x128xf32>
    %c0_49 = arith.constant 0 : index
    %c0_50 = arith.constant 0 : index
    %84 = vector.load %arg19[%c0_49, %c0_50] : memref<8x128xf32, #tpu.memory_space<vmem>>, vector<8x128xf32>
    tpu.vector_store %arg19[%c0_49, %c0_50], %83 {strides = array<i32>} : memref<8x128xf32, #tpu.memory_space<vmem>>, vector<8x128xf32>,
    return
  }
  func.func @transform_0(%arg0: i32) -> (i32, i32) {
    %c0_i32 = arith.constant 0 : i32
    %c0_i32_0 = arith.constant 0 : i32
    return %arg0, %c0_i32 : i32, i32
  }
  func.func @transform_1(%arg0: i32) -> (i32, i32) {
    %c0_i32 = arith.constant 0 : i32
    %c0_i32_0 = arith.constant 0 : i32
    return %arg0, %c0_i32 : i32, i32
  }
  func.func @transform_2(%arg0: i32) -> (i32, i32) {
    %c0_i32 = arith.constant 0 : i32
    %c0_i32_0 = arith.constant 0 : i32
    return %arg0, %c0_i32 : i32, i32
  }
  func.func @transform_3(%arg0: i32) -> (i32, i32) {
    %c0_i32 = arith.constant 0 : i32
    %c0_i32_0 = arith.constant 0 : i32
    return %arg0, %c0_i32 : i32, i32
  }
  func.func @transform_4(%arg0: i32) -> (i32, i32, i32) {
    %c0_i32 = arith.constant 0 : i32
    %c0_i32_0 = arith.constant 0 : i32
    %c0_i32_1 = arith.constant 0 : i32
    return %arg0, %c0_i32, %c0_i32_0 : i32, i32, i32
  }
  func.func @transform_5(%arg0: i32) -> (i32, i32) {
    %c0_i32 = arith.constant 0 : i32
    %c0_i32_0 = arith.constant 0 : i32
    %c0_i32_1 = arith.constant 0 : i32
    return %c0_i32, %c0_i32_0 : i32, i32
  }
  func.func @transform_6(%arg0: i32) -> (i32, i32) {
    %c0_i32 = arith.constant 0 : i32
    %c0_i32_0 = arith.constant 0 : i32
    %c0_i32_1 = arith.constant 0 : i32
    return %c0_i32, %c0_i32_0 : i32, i32
  }
  func.func @transform_7(%arg0: i32) -> (i32, i32) {
    %c0_i32 = arith.constant 0 : i32
    %c0_i32_0 = arith.constant 0 : i32
    %c0_i32_1 = arith.constant 0 : i32
    return %c0_i32, %c0_i32_0 : i32, i32
  }
  func.func @transform_8(%arg0: i32) -> (i32, i32) {
    %c0_i32 = arith.constant 0 : i32
    %c0_i32_0 = arith.constant 0 : i32
    %c0_i32_1 = arith.constant 0 : i32
    return %c0_i32, %c0_i32_0 : i32, i32
  }
  func.func @transform_9(%arg0: i32) -> (i32, i32) {
    %c0_i32 = arith.constant 0 : i32
    %c0_i32_0 = arith.constant 0 : i32
    %c0_i32_1 = arith.constant 0 : i32
    return %c0_i32, %c0_i32_0 : i32, i32
  }
  func.func @transform_10(%arg0: i32) -> (i32, i32) {
    %c0_i32 = arith.constant 0 : i32
    %c0_i32_0 = arith.constant 0 : i32
    %c0_i32_1 = arith.constant 0 : i32
    return %c0_i32, %c0_i32_0 : i32, i32
  }
  func.func @transform_11(%arg0: i32) -> (i32, i32) {
    %c0_i32 = arith.constant 0 : i32
    %c0_i32_0 = arith.constant 0 : i32
    %c0_i32_1 = arith.constant 0 : i32
    return %c0_i32, %c0_i32_0 : i32, i32
  }
  func.func @transform_12(%arg0: i32) -> (i32, i32) {
    %c0_i32 = arith.constant 0 : i32
    %c0_i32_0 = arith.constant 0 : i32
    %c0_i32_1 = arith.constant 0 : i32
    return %c0_i32, %c0_i32_0 : i32, i32
  }
  func.func @transform_13(%arg0: i32) -> (i32, i32) {
    %c0_i32 = arith.constant 0 : i32
    %c0_i32_0 = arith.constant 0 : i32
    %c0_i32_1 = arith.constant 0 : i32
    return %c0_i32, %c0_i32_0 : i32, i32
  }
  func.func @transform_14(%arg0: i32) -> (i32, i32) {
    %c0_i32 = arith.constant 0 : i32
    %c0_i32_0 = arith.constant 0 : i32
    %c0_i32_1 = arith.constant 0 : i32
    return %c0_i32, %c0_i32_0 : i32, i32
  }
  func.func @transform_15(%arg0: i32) -> (i32, i32) {
    %c0_i32 = arith.constant 0 : i32
    %c0_i32_0 = arith.constant 0 : i32
    return %arg0, %c0_i32 : i32, i32
  }
  func.func @transform_16(%arg0: i32) -> (i32, i32) {
    %c0_i32 = arith.constant 0 : i32
    %c0_i32_0 = arith.constant 0 : i32
    return %arg0, %c0_i32 : i32, i32
  }
  func.func @transform_17(%arg0: i32) -> (i32, i32) {
    %c0_i32 = arith.constant 0 : i32
    %c0_i32_0 = arith.constant 0 : i32
    return %arg0, %c0_i32 : i32, i32
  }
  func.func @transform_18(%arg0: i32) -> (i32, i32) {
    %c0_i32 = arith.constant 0 : i32
    %c0_i32_0 = arith.constant 0 : i32
    return %arg0, %c0_i32 : i32, i32
  }
}

</mosaic_0001>

<bundles_post_ra>
// kernel: tpu_custom_call.1
= control target key start
LH: loop header
LB: loop body
LE: loop exit
PB: predicated region body
PF: predicated region fallthrough
CT: control target
= control target key end

     0   :  { %s6061_s0 = inlined_call_operand.vmem [shape: s32[8,1], index: 0, kind: input, shape index: {}]   ;;  %s6062_s1 = inlined_call_operand.vmem [shape: bf16[8,64], index: 1, kind: input, shape index: {}]   ;;  %s6063_s2 = inlined_call_operand.vmem [shape: bf16[8,32], index: 2, kind: input, shape index: {}]   ;;  %s6064_s3 = inlined_call_operand.vmem [shape: f32[8,32], index: 3, kind: input, shape index: {}]   ;;  %s6065_s4 = inlined_call_operand.vmem [shape: bf16[8,128,32], index: 4, kind: input, shape index: {}]   ;;  %s6066_s5 = inlined_call_operand.vmem [shape: bf16[8,32], index: 5, kind: input, shape index: {}]   ;;  %s6067_s6 = inlined_call_operand.vmem [shape: bf16[32,128], index: 6, kind: input, shape index: {}]   ;;  %s6068_s7 = inlined_call_operand.vmem [shape: bf16[64,128], index: 7, kind: input, shape index: {}]   ;;  %s6069_s8 = inlined_call_operand.vmem [shape: bf16[32,128], index: 8, kind: input, shape index: {}]   ;;  %s6070_s9 = inlined_call_operand.vmem [shape: f32[1,128], index: 9, kind: input, shape index: {}]   ;;  %s6071_s10 = inlined_call_operand.vmem [shape: bf16[32,32], index: 10, kind: input, shape index: {}]   ;;  %s6072_s11 = inlined_call_operand.vmem [shape: bf16[32,32], index: 11, kind: input, shape index: {}]   ;;  %s6073_s12 = inlined_call_operand.vmem [shape: bf16[32,32], index: 12, kind: input, shape index: {}]   ;;  %s6074_s13 = inlined_call_operand.vmem [shape: bf16[32,128], index: 13, kind: input, shape index: {}]   ;;  %s6075_s14 = inlined_call_operand.vmem [shape: f32[1,128], index: 14, kind: input, shape index: {}]   ;;  %s6076_s15 = inlined_call_operand.hbm [shape: f32[8,32], index: 15, kind: output, shape index: {0}]   ;;  %s6077_s16 = inlined_call_operand.hbm [shape: f32[8,32], index: 16, kind: output, shape index: {1}]   ;;  %s6078_s17 = inlined_call_operand.hbm [shape: f32[8,128], index: 17, kind: output, shape index: {2}]   ;;  %s6079_s18 = inlined_call_operand.hbm [shape: f32[8,128], index: 18, kind: output, shape index: {3}]  }
   0x1   :  { %6334 = sst [smem:[#allocation114_spill]] %s6061_s0 }
   0x2   :  { %6335 = sst [smem:[#allocation115_spill]] %s6062_s1 }
   0x3   :  { %6336 = sst [smem:[#allocation116_spill]] %s6063_s2 }
   0x4   :  { %24 = vsyncpa [#allocation3], 0 }
   0x5   :  { %25 = vsyncpa [#allocation5], 0  ;;  %s6337_s29 = sld [smem:[#allocation114_spill]]  ;;  %v3567_v1 = vmov 0  }
   0x6   :  { %3339 = vset.pattern.permute.xlu0 %v3567_v1 }
   0xb   :  { %v58_v0 = vld [vmem:[%s6337_s29] sm:$0xff] }
   0xc   :  { %26 = vsyncpa [#allocation8], 0  ;;  %62 = vperm.xlu0 %3339, %v58_v0   ;;  %v68_v2 = vld [vmem:[%s6066_s5] sm:$0xf]  ;;  %vm73_vm0 = vcmask 1043456   ;;  %v3000_v4 = vld [vmem:[%s6068_s7 + $0x18] sm:$0xff]  ;;  %v6141_v12 = vlaneseq }
   0xd   :  { %v75_v3 = vsel %vm73_vm0, %v68_v2, 0  ;;  %v3002_v5 = vld [vmem:[%s6069_s8 + $0x8] sm:$0xff]  ;;  %136 = vmatpush.bf16.msra.mxu1 %v3000_v4  ;;  %v2999_v7 = vld [vmem:[%s6068_s7 + $0x10] sm:$0xff]  ;;  %v3001_v8 = vld [vmem:[%s6069_s8] sm:$0xff]  ;;  %vm6329_vm1 = vcmask 261120   ;;  %s6338_s30 = sld [smem:[#allocation116_spill]] }
   0xe   :  { %84 = vmatpush.bf16.msra.mxu0 %v75_v3  ;;  %v2996_v6 = vld [vmem:[%s6067_s6 + $0x8] sm:$0xff]  ;;  %200 = vmatpush.bf16.msra.mxu3 %v3002_v5  ;;  %v2997_v11 = vld [vmem:[%s6068_s7] sm:$0xff]  ;;  %v3703_v13 = vand.u32 127, %v6141_v12  ;;  %v3568_v15 = vmov 0.0   ;;  %vm69_vm3 = vcmask 64512   ;;  %s6339_s21 = sld [smem:[#allocation115_spill]] }
   0xf   :  { %167 = vmatpush.bf16.msra.mxu2 %v2996_v6  ;;  %v2998_v9 = vld [vmem:[%s6068_s7 + $0x8] sm:$0xff]  ;;  %v2995_v18 = vld [vmem:[%s6067_s6] sm:$0xff]  ;;  %vm128_vm4 = vcmask 523264   ;;  %s3569_s23 = smov 32   ;;  %vm1225_vm9 = vcmask 130112   ;;  %vm1229_vm10 = vcmask 195712  }
  0x10   :  { %v233_v20 = vld [vmem:[%s6064_s3] sm:$0xff]  ;;  %s3570_s3 = smov 64   ;;  %v3004_v59 = vld [vmem:[%s6071_s10 + $0x8] sm:$0xff]  ;;  %vm1233_vm11 = vcmask 261312   ;;  %vm1237_vm12 = vcmask 326912   ;;  %vm1241_vm13 = vcmask 392512  }
  0x11   :  { %137 = vmatpush.bf16.msra.mxu1 %v2999_v7  ;;  %v3449_v30 = vld [vmem:[%s6070_s9] ss:$0 sm:$0xff]  ;;  %s3571_s9 = smov 96   ;;  %v3008_v60 = vld [vmem:[%s6073_s12 + $0x8] sm:$0xff]  ;;  %vm1245_vm14 = vcmask 458112   ;;  %vm1249_vm15 = vcmask 523712  }
  0x12   :  { %201 = vmatpush.bf16.msra.mxu3 %v3001_v8  ;;  %422 = vmatpush.bf16.msrb.mxu0 %v3004_v59  ;;  %v3003_v61 = vld [vmem:[%s6071_s10] sm:$0xff]  ;;  %v3744_v1 = vld [vmem:[%s6065_s4 + $0x8] sm:$0xff]   ;;  %v3762_v8 = vld [vmem:[%s6065_s4 + $0x18] sm:$0xff]   ;;  %vm1253_vm0 = vcmask 589312   ;;  %s3572_s0 = smov [#allocation4]   ;;  %s2865_s10 = sshll.u32 %s6076_s15, 4  ;;  %s2866_s10 = int_to_ptr.hbm [resolvable:$true] %s2865_s10 }
  0x13   :  { %v174_v10 = vld [vmem:[%s6338_s30] sm:$0xf]  ;;  %168 = vmatpush.bf16.msra.mxu2 %v2995_v18  ;;  %6340 = vst [vmem:[#allocation12_spill] sm:$0xff] %v3744_v1  ;;  %v6138_v4 = vunpack.c.l.bf16 %v3744_v1  ;;  %v3864_v59 = vld [vmem:[%s6065_s4 + $0x48] sm:$0xff]   ;;  %s2876_s30 = sshll.u32 %s6077_s16, 4  ;;  %s2874_s19 = sshll.u32 %s3572_s0, 4  ;;  %s2877_s30 = int_to_ptr.hbm [resolvable:$true] %s2876_s30  ;;  %s2875_s19 = int_to_ptr.vmem [resolvable:$true] %s2874_s19 }
  0x14   :  { %v95_v19 = vld [vmem:[%s6339_s21] sm:$0xf]  ;;  %235 = vrot.lane.b32.xlu0 %v233_v20, %s3569_s23  ;;  %6342 = vst [vmem:[#allocation14_spill] sm:$0xff] %v3762_v8  ;;  %s3573_s1 = smov [#allocation2]   ;;  %s3574_s20 = smov [#allocation6]  }
  0x15   :  { %2957 = vmatmul.msk.bf16.vlgmr.msra.gmra.mxu3 %vm6329_vm1, %v174_v10  ;;  %138 = vmatpush.bf16.msra.mxu1 %v2998_v9  ;;  %v3007_v62 = vld [vmem:[%s6073_s12] sm:$0xff]  ;;  %v3770_v10 = vld [vmem:[%s6065_s4 + $0x10] sm:$0xff]   ;;  %6349 = vst [vmem:[#allocation21_spill] sm:$0xff] %v3864_v59  ;;  %s2863_s12 = sshll.u32 %s3573_s1, 4  ;;  %s2885_s7 = sshll.u32 %s3574_s20, 4  ;;  %s2864_s12 = int_to_ptr.vmem [resolvable:$true] %s2863_s12  ;;  %s2886_s7 = int_to_ptr.vmem [resolvable:$true] %s2885_s7 }
  0x16   :  { %423 = vmatpush.bf16.msrb.mxu0 %v3003_v61  ;;  %v3749_v2 = vld [vmem:[%s6065_s4] sm:$0xff]   ;;  %6343 = vst [vmem:[#allocation15_spill] sm:$0xff] %v3770_v10  ;;  %v6132_v20 = vunpack.c.h.bf16 %v3770_v10  ;;  %s2887_s16 = sshll.u32 %s6078_s17, 4  ;;  %s3575_s6 = smov [#allocation7]   ;;  %s2888_s16 = int_to_ptr.hbm [resolvable:$true] %s2887_s16 }
  0x17   :  { %2760 = vmatpush.bf16.msrb.mxu2 %v3008_v60  ;;  %6341 = vst [vmem:[#allocation13_spill] sm:$0xff] %v3749_v2  ;;  %v6136_v5 = vunpack.c.h.bf16 %v3749_v2  ;;  %v6139_v6 = vunpack.c.l.bf16 %v3749_v2  ;;  %v3869_v60 = vld [vmem:[%s6065_s4 + $0x40] sm:$0xff]   ;;  %s2896_s15 = sshll.u32 %s3575_s6, 4  ;;  %s2897_s15 = int_to_ptr.vmem [resolvable:$true] %s2896_s15 }
  0x18   :  { %6350 = vst [vmem:[#allocation22_spill] sm:$0xff] %v3869_v60 }
  0x19   :  { %139 = vmatpush.bf16.msra.mxu1 %v2997_v11 }
  0x1b   :  { %2761 = vmatpush.bf16.msrb.mxu2 %v3007_v62 }
  0x1c   :  { %2939 = vmatmul.msk.bf16.vlgmr.msra.gmra.mxu1 %vm128_vm4, %v95_v19  ;;  %vm6331_vm4 = vcmask 786112  }
  0x7e   :  { %v63_v14 = vpop.permute.xlu0 %62 }
  0x7f   :  { %vm64_vm2 = vcmp.eq.s32.totalorder %v3703_v13, %v63_v14 }
  0x80   :  { %v2921_v16 = vsel %vm64_vm2, 1.0, %v3568_v15  ;;  %vm1257_vm2 = vcmask 654912  }
  0x81   :  { %v67_v17 = vpack.c.bf16 %v2921_v16, %v2921_v16 }
  0x83   :  { %2922 = vmatmul.msk.bf16.vlgmr.msra.gmra.mxu0 %vm69_vm3, %v67_v17  ;;  %v6129_v17 = vunpack.c.l.bf16 %v3762_v8  ;;  %vm6332_vm3 = vcmask 720512  }
  0x86   :  { %v236_v50 = vpop.permute.xlu0 %235 }
  0x98   :  { %v203_v24 = vpop.f32.mrf.mxu3 }
  0x99   :  { %v141_v26 = vpop.f32.mrf.mxu1 }
  0xa0   :  { %v205_v25 = vpop.f32.mrf.mxu3 }
  0xa1   :  { %v143_v27 = vpop.f32.mrf.mxu1 }
 0x100   :  { %v86_v21 = vpop.f32.mrf.mxu0 }
 0x101   :  { %v90_v22 = vpack.c.bf16 %v86_v21, %v86_v21  ;;  %v6134_v21 = vunpack.c.h.bf16 %v3744_v1 }
 0x103   :  { %2948 = vmatmul.msk.bf16.vlgmr.msra.gmra.mxu2 %vm6329_vm1, %v90_v22 }
 0x108   :  { %v88_v23 = vpop.f32.mrf.mxu0 }
 0x186   :  { %v170_v28 = vpop.f32.mrf.mxu2 }
 0x187   :  { %v171_v29 = vadd.f32 %v170_v28, %v141_v26  ;;  %v3798_v26 = vld [vmem:[%s6065_s4 + $0x20] sm:$0xff]  }
 0x188   :  { %6345 = vst [vmem:[#allocation17_spill] sm:$0xff] %v3798_v26 }
 0x189   :  { %v207_v31 = vadd.f32 %v203_v24, %v171_v29  ;;  %v6123_v29 = vunpack.c.h.bf16 %v3798_v26 }
 0x18b   :  { %v212_v32 = vadd.f32 %v3449_v30, %v207_v31 }
 0x18d   :  { %3451 = vtanh.f32 %v212_v32  ;;  %v2958_v35 = vmul.f32 -1.442695, %v212_v32  ;;  %v6127_v32 = vunpack.c.l.bf16 %v3798_v26 }
 0x18e   :  { %v172_v33 = vpop.f32.mrf.mxu2 }
 0x18f   :  { %3453 = vpow2.f32 %v2958_v35  ;;  %v6131_v33 = vunpack.c.l.bf16 %v3770_v10 }
 0x193   :  { %v3452_v34 = vpop.eup %3451 }
 0x194   :  { %240 = vrot.lane.b32.xlu1 %v3452_v34, %s3570_s3 }
 0x195   :  { %v3454_v36 = vpop.eup %3453 }
 0x196   :  { %v216_v37 = vadd.f32 1.0, %v3454_v36 }
 0x198   :  { %3455 = vrcp.f32 %v216_v37  ;;  %v228_v43 = vand.u32 2147483648, %v216_v37  ;;  %vm222_vm6 = vweird.f32 %v216_v37  ;;  %v226_v44 = vand.u32 2147483647, %v216_v37 }
 0x19a   :  { %v229_v46 = vor.u32 1.1754944e-38, %v228_v43  ;;  %vm227_vm8 = vcmp.eq.f32.partialorder %v226_v44, 8.507059e+37  ;;  %v6130_v44 = vunpack.c.h.bf16 %v3762_v8 }
 0x19e   :  { %v3456_v38 = vpop.eup %3455 }
 0x19f   :  { %v218_v39 = vmul.f32 %v3456_v38, %v216_v37  ;;  %vm223_vm5 = vweird.f32 %v3456_v38  ;;  %v3818_v37 = vld [vmem:[%s6065_s4 + $0x30] sm:$0xff]  }
 0x1a0   :  { %vm224_vm7 = vmor %vm222_vm6, %vm223_vm5  ;;  %6346 = vst [vmem:[#allocation18_spill] sm:$0xff] %v3818_v37  ;;  %vm6330_vm5 = vcmask 851712   ;;  %vm6333_vm6 = vcmask 917312  }
 0x1a1   :  { %v219_v40 = vsub.f32 1.0, %v218_v39 }
 0x1a3   :  { %v220_v41 = vmul.f32 %v3456_v38, %v219_v40  ;;  %v6121_v40 = vunpack.c.l.bf16 %v3818_v37 }
 0x1a5   :  { %v221_v42 = vadd.f32 %v3456_v38, %v220_v41 }
 0x1a7   :  { %v225_v45 = vsel %vm224_vm7, %v3456_v38, %v221_v42  ;;  %v3823_v38 = vld [vmem:[%s6065_s4 + $0x28] sm:$0xff]   ;;  %vm1277_vm7 = vcmask 982912  }
 0x1a8   :  { %v230_v47 = vsel %vm227_vm8, %v229_v46, %v225_v45  ;;  %6347 = vst [vmem:[#allocation19_spill] sm:$0xff] %v3823_v38  ;;  %v6119_v43 = vunpack.c.h.bf16 %v3823_v38  ;;  %vm1281_vm8 = vcmask 1048512  }
 0x1a9   :  { %v238_v51 = vmul.f32 %v236_v50, %v230_v47 }
 0x206   :  { %v241_v48 = vpop.permute.xlu1 %240 }
 0x207   :  { %v243_v49 = vmul.f32 %v241_v48, %v230_v47  ;;  %v3843_v48 = vld [vmem:[%s6065_s4 + $0x38] sm:$0xff]  }
 0x208   :  { %6348 = vst [vmem:[#allocation20_spill] sm:$0xff] %v3843_v48  ;;  %v6116_v50 = vunpack.c.h.bf16 %v3843_v48 }
 0x209   :  { %245 = vrot.lane.b32.xlu1 %v243_v49, %s3569_s23 }
 0x27b   :  { %v246_v52 = vpop.permute.xlu1 %245 }
 0x27c   :  { %v248_v53 = vadd.f32 %v246_v52, %v238_v51 }
 0x27e   :  { %3457 = vtanh.f32 %v248_v53  ;;  %261 = vrot.lane.b32.xlu0 %v248_v53, %s3571_s9  ;;  %v6115_v53 = vunpack.c.l.bf16 %v3843_v48 }
 0x284   :  { %v3458_v54 = vpop.eup %3457 }
 0x285   :  { %251 = vrot.lane.b32.xlu2 %v3458_v54, %s3570_s3  ;;  %v6124_v54 = vunpack.c.l.bf16 %v3823_v38  ;;  %s2898_s3 = sshll.u32 %s6079_s18, 4  ;;  %s2899_s3 = int_to_ptr.hbm [resolvable:$true] %s2898_s3 }
 0x2df   :  { %v252_v55 = vpop.permute.xlu2 %251 }
 0x2e0   :  { %v254_v56 = vmul.f32 %v252_v55, %v230_v47 }
 0x2e2   :  { %v265_v57 = vpack.c.bf16 %v254_v56, %v254_v56  ;;  %256 = vrot.lane.b32.xlu2 %v254_v56, %s3569_s23 }
 0x2e4   :  { %399 = vrot.lane.b32.xlu1 %v265_v57, %s3569_s23 }
 0x2f0   :  { %v262_v58 = vpop.permute.xlu0 %261 }
 0x2f1   :  { %264 = vst.msk [vmem:[#allocation4] sm:$0xff] %vm6329_vm1, %v262_v58 }
 0x2f2   :  { %2879 = dma.vmem_to_hbm [thread:$0]  %s2875_s19, 128, %s2877_s30, [#allocation5]  }
 0x33c   :  { %v257_v63 = vpop.permute.xlu2 %256 }
 0x33d   :  { %259 = vst.msk [vmem:[#allocation2] sm:$0xff] %vm6329_vm1, %v257_v63  ;;  %v6110_v63 = vunpack.c.l.bf16 %v3864_v59 }
 0x33e   :  { %2868 = dma.vmem_to_hbm [thread:$0]  %s2864_s12, 128, %s2866_s10, [#allocation3]  }
 0x356   :  { %v400_v0 = vpop.permute.xlu1 %399 }
 0x357   :  { %2967 = vmatmul.msk.bf16.vlgmr.msrb.gmra.mxu0 %vm6329_vm1, %v400_v0  ;;  %2976 = vmatmul.msk.bf16.vlgmr.msrb.gmra.mxu2 %vm6329_vm1, %v400_v0 }
 0x3d4   :  { %v3751_v3 = vpop.f32.mrf.mxu0 }
 0x3d5   :  { %v3757_v7 = vperm.slane %v3751_v3, 0  ;;  %v430_v55 = vrot.slane %v3751_v3, 1 }
 0x3d7   :  { %v583_v9 = vmul.f32 %v6138_v4, %v3757_v7  ;;  %v582_v11 = vmul.f32 %v6136_v5, %v3757_v7  ;;  %v581_v14 = vmul.f32 %v6139_v6, %v3757_v7  ;;  %v587_v23 = vmul.f32 %v6129_v17, %v3757_v7 }
 0x3d8   :  { %v586_v24 = vmul.f32 %v6132_v20, %v3757_v7  ;;  %v584_v25 = vmul.f32 %v6134_v21, %v3757_v7  ;;  %v590_v34 = vmul.f32 %v6123_v29, %v3757_v7  ;;  %v589_v35 = vmul.f32 %v6127_v32, %v3757_v7 }
 0x3d9   :  { %v715_v16 = vsel %vm6329_vm1, %v583_v9, 0.0  ;;  %v712_v18 = vsel %vm6329_vm1, %v582_v11, 0.0  ;;  %v709_v19 = vsel %vm6329_vm1, %v581_v14, 0.0  ;;  %v727_v28 = vsel %vm6329_vm1, %v587_v23, 0.0 }
 0x3da   :  { %v3778_v15 = vpop.f32.mrf.mxu2  ;;  %716 = vadd.xlane.f32.xlu1 %v715_v16  ;;  %713 = vadd.xlane.f32.xlu0 %v712_v18  ;;  %v724_v30 = vsel %vm6329_vm1, %v586_v24, 0.0  ;;  %v718_v31 = vsel %vm6329_vm1, %v584_v25, 0.0  ;;  %v585_v36 = vmul.f32 %v6131_v33, %v3757_v7  ;;  %v736_v39 = vsel %vm6329_vm1, %v590_v34, 0.0 }
 0x3db   :  { %6344 = vst [vmem:[#allocation16_spill] sm:$0xff] %v3778_v15  ;;  %710 = vadd.xlane.f32.xlu2 %v709_v19  ;;  %v733_v41 = vsel %vm6329_vm1, %v589_v35, 0.0  ;;  %v593_v45 = vmul.f32 %v6121_v40, %v3757_v7  ;;  %v592_v46 = vmul.f32 %v6119_v43, %v3757_v7  ;;  %v588_v47 = vmul.f32 %v6130_v44, %v3757_v7  ;;  %v3911_v35 = vld [vmem:[%s6065_s4 + $0x60] sm:$0xff]  }
 0x3dc   :  { %v427_v22 = vpop.f32.mrf.mxu0  ;;  %v721_v42 = vsel %vm6329_vm1, %v585_v36, 0.0  ;;  %v596_v56 = vmul.f32 %v6116_v50, %v3757_v7  ;;  %v595_v57 = vmul.f32 %v6115_v53, %v3757_v7  ;;  %v591_v58 = vmul.f32 %v6124_v54, %v3757_v7  ;;  %6352 = vst [vmem:[#allocation24_spill] sm:$0xff] %v3911_v35  ;;  %v3916_v36 = vld [vmem:[%s6065_s4 + $0x58] sm:$0xff]  }
 0x3dd   :  { %v745_v49 = vsel %vm6329_vm1, %v593_v45, 0.0  ;;  %v742_v51 = vsel %vm6329_vm1, %v592_v46, 0.0  ;;  %v730_v52 = vsel %vm6329_vm1, %v588_v47, 0.0  ;;  %v3871_v61 = vperm.slane %v430_v55, 0  ;;  %v3891_v22 = vld [vmem:[%s6065_s4 + $0x50] sm:$0xff]   ;;  %6353 = vst [vmem:[#allocation25_spill] sm:$0xff] %v3916_v36 }
 0x3de   :  { %v754_v62 = vsel %vm6329_vm1, %v596_v56, 0.0  ;;  %v751_v0 = vsel %vm6329_vm1, %v595_v57, 0.0  ;;  %v739_v9 = vsel %vm6329_vm1, %v591_v58, 0.0  ;;  %v6117_v11 = vunpack.c.h.bf16 %v3818_v37  ;;  %6351 = vst [vmem:[#allocation23_spill] sm:$0xff] %v3891_v22  ;;  %v3936_v55 = vld [vmem:[%s6065_s4 + $0x68] sm:$0xff]  }
 0x3df   :  { %v6113_v14 = vunpack.c.h.bf16 %v3869_v60  ;;  %v599_v16 = vmul.f32 %v6110_v63, %v3871_v61  ;;  %v6102_v24 = vunpack.c.h.bf16 %v3891_v22  ;;  %v6101_v46 = vunpack.c.h.bf16 %v3916_v36  ;;  %6354 = vst [vmem:[#allocation26_spill] sm:$0xff] %v3936_v55 }
 0x3e0   :  { %v594_v18 = vmul.f32 %v6117_v11, %v3757_v7  ;;  %v6107_v7 = vunpack.c.l.bf16 %v3891_v22  ;;  %v6105_v47 = vunpack.c.h.bf16 %v3864_v59  ;;  %v6094_v57 = vunpack.c.h.bf16 %v3936_v55 }
 0x3e1   :  { %v598_v19 = vmul.f32 %v6113_v14, %v3871_v61  ;;  %v763_v23 = vsel %vm6329_vm1, %v599_v16, 0.0 }
 0x3e2   :  { %v2765_v27 = vpop.f32.mrf.mxu2  ;;  %728 = vadd.xlane.f32.xlu1 %v727_v28  ;;  %725 = vadd.xlane.f32.xlu0 %v724_v30  ;;  %v748_v25 = vsel %vm6329_vm1, %v594_v18, 0.0  ;;  %v6109_v28 = vunpack.c.l.bf16 %v3869_v60  ;;  %v602_v30 = vmul.f32 %v6102_v24, %v3871_v61  ;;  %v608_v16 = vmul.f32 %v6094_v57, %v3871_v61 }
 0x3e3   :  { %719 = vadd.xlane.f32.xlu2 %v718_v31  ;;  %v760_v27 = vsel %vm6329_vm1, %v598_v19, 0.0  ;;  %v601_v31 = vmul.f32 %v6107_v7, %v3871_v61 }
 0x3e4   :  { %v597_v34 = vmul.f32 %v6109_v28, %v3871_v61 }
 0x3e6   :  { %v757_v45 = vsel %vm6329_vm1, %v597_v34, 0.0 }
 0x3ea   :  { %737 = vadd.xlane.f32.xlu1 %v736_v39  ;;  %734 = vadd.xlane.f32.xlu0 %v733_v41  ;;  %v772_v39 = vsel %vm6329_vm1, %v602_v30, 0.0  ;;  %v6096_v41 = vunpack.c.l.bf16 %v3911_v35 }
 0x3eb   :  { %722 = vadd.xlane.f32.xlu2 %v721_v42  ;;  %v769_v42 = vsel %vm6329_vm1, %v601_v31, 0.0 }
 0x3f2   :  { %746 = vadd.xlane.f32.xlu1 %v745_v49  ;;  %743 = vadd.xlane.f32.xlu0 %v742_v51  ;;  %v605_v49 = vmul.f32 %v6096_v41, %v3871_v61  ;;  %v604_v51 = vmul.f32 %v6101_v46, %v3871_v61 }
 0x3f3   :  { %731 = vadd.xlane.f32.xlu2 %v730_v52  ;;  %v600_v52 = vmul.f32 %v6105_v47, %v3871_v61 }
 0x3f4   :  { %v781_v56 = vsel %vm6329_vm1, %v605_v49, 0.0  ;;  %v778_v58 = vsel %vm6329_vm1, %v604_v51, 0.0 }
 0x3fa   :  { %755 = vadd.xlane.f32.xlu1 %v754_v62  ;;  %752 = vadd.xlane.f32.xlu0 %v751_v0  ;;  %v766_v62 = vsel %vm6329_vm1, %v600_v52, 0.0  ;;  %v6091_v0 = vunpack.c.l.bf16 %v3936_v55 }
 0x3fb   :  { %740 = vadd.xlane.f32.xlu2 %v739_v9  ;;  %v6103_v9 = vunpack.c.l.bf16 %v3916_v36 }
 0x3fc   :  { %v607_v18 = vmul.f32 %v6091_v0, %v3871_v61 }
 0x3fd   :  { %v603_v19 = vmul.f32 %v6103_v9, %v3871_v61 }
 0x3fe   :  { %v787_v31 = vsel %vm6329_vm1, %v607_v18, 0.0 }
 0x3ff   :  { %v775_v34 = vsel %vm6329_vm1, %v603_v19, 0.0 }
 0x402   :  { %764 = vadd.xlane.f32.xlu1 %v763_v23  ;;  %761 = vadd.xlane.f32.xlu0 %v760_v27  ;;  %v3956_v23 = vld [vmem:[%s6065_s4 + $0x78] sm:$0xff]   ;;  %v790_v27 = vsel %vm6329_vm1, %v608_v16, 0.0 }
 0x403   :  { %749 = vadd.xlane.f32.xlu2 %v748_v25  ;;  %6355 = vst [vmem:[#allocation27_spill] sm:$0xff] %v3956_v23  ;;  %v3961_v25 = vld [vmem:[%s6065_s4 + $0x70] sm:$0xff]   ;;  %v6083_v30 = vunpack.c.l.bf16 %v3956_v23 }
 0x404   :  { %6356 = vst [vmem:[#allocation28_spill] sm:$0xff] %v3961_v25 }
 0x405   :  { %v611_v49 = vmul.f32 %v6083_v30, %v3871_v61 }
 0x40a   :  { %773 = vadd.xlane.f32.xlu1 %v772_v39  ;;  %770 = vadd.xlane.f32.xlu0 %v769_v42  ;;  %v6082_v39 = vunpack.c.h.bf16 %v3961_v25  ;;  %v6100_v42 = vunpack.c.h.bf16 %v3911_v35 }
 0x40b   :  { %758 = vadd.xlane.f32.xlu2 %v757_v45  ;;  %v431_v45 = vrot.slane %v3751_v3, 2 }
 0x40c   :  { %v610_v51 = vmul.f32 %v6082_v39, %v3871_v61  ;;  %v606_v52 = vmul.f32 %v6100_v42, %v3871_v61  ;;  %v6090_v39 = vunpack.c.h.bf16 %v3956_v23 }
 0x40e   :  { %v796_v18 = vsel %vm6329_vm1, %v610_v51, 0.0  ;;  %v784_v19 = vsel %vm6329_vm1, %v606_v52, 0.0  ;;  %v4004_v51 = vld [vmem:[%s6065_s4 + $0x90] sm:$0xff]   ;;  %v4009_v52 = vld [vmem:[%s6065_s4 + $0x88] sm:$0xff]  }
 0x40f   :  { %6358 = vst [vmem:[#allocation30_spill] sm:$0xff] %v4004_v51 }
 0x410   :  { %6359 = vst [vmem:[#allocation31_spill] sm:$0xff] %v4009_v52 }
 0x412   :  { %782 = vadd.xlane.f32.xlu1 %v781_v56  ;;  %779 = vadd.xlane.f32.xlu0 %v778_v58  ;;  %v3982_v56 = vld [vmem:[%s6065_s4 + $0x80] sm:$0xff]   ;;  %v3984_v58 = vperm.slane %v431_v45, 0 }
 0x413   :  { %767 = vadd.xlane.f32.xlu2 %v766_v62  ;;  %6357 = vst [vmem:[#allocation29_spill] sm:$0xff] %v3982_v56  ;;  %v799_v62 = vsel %vm6329_vm1, %v611_v49, 0.0  ;;  %v6081_v16 = vunpack.c.h.bf16 %v3982_v56 }
 0x41a   :  { %791 = vadd.xlane.f32.xlu1 %v790_v27  ;;  %788 = vadd.xlane.f32.xlu0 %v787_v31  ;;  %v6080_v27 = vunpack.c.l.bf16 %v3982_v56  ;;  %v6086_v31 = vunpack.c.l.bf16 %v3961_v25 }
 0x41b   :  { %776 = vadd.xlane.f32.xlu2 %v775_v34  ;;  %v614_v34 = vmul.f32 %v6081_v16, %v3984_v58  ;;  %v6085_v16 = vunpack.c.h.bf16 %v4009_v52 }
 0x41c   :  { %v613_v45 = vmul.f32 %v6080_v27, %v3984_v58  ;;  %v609_v49 = vmul.f32 %v6086_v31, %v3871_v61  ;;  %v6089_v31 = vunpack.c.l.bf16 %v4009_v52 }
 0x41e   :  { %v793_v27 = vsel %vm6329_vm1, %v609_v49, 0.0  ;;  %v4029_v49 = vld [vmem:[%s6065_s4 + $0x98] sm:$0xff]  }
 0x41f   :  { %6360 = vst [vmem:[#allocation32_spill] sm:$0xff] %v4029_v49 }
 0x422   :  { %800 = vadd.xlane.f32.xlu1 %v799_v62  ;;  %797 = vadd.xlane.f32.xlu0 %v796_v18  ;;  %v808_v62 = vsel %vm6329_vm1, %v614_v34, 0.0  ;;  %v6084_v18 = vunpack.c.l.bf16 %v4004_v51  ;;  %v616_v34 = vmul.f32 %v6085_v16, %v3984_v58  ;;  %v6088_v16 = vunpack.c.l.bf16 %v4029_v49 }
 0x423   :  { %785 = vadd.xlane.f32.xlu2 %v784_v19  ;;  %v805_v19 = vsel %vm6329_vm1, %v613_v45, 0.0  ;;  %v612_v45 = vmul.f32 %v6090_v39, %v3871_v61  ;;  %v6095_v39 = vunpack.c.h.bf16 %v4004_v51  ;;  %v434_v51 = vrot.slane %v3751_v3, 5 }
 0x424   :  { %v617_v30 = vmul.f32 %v6084_v18, %v3984_v58 }
 0x425   :  { %v802_v18 = vsel %vm6329_vm1, %v612_v45, 0.0  ;;  %v4049_v45 = vld [vmem:[%s6065_s4 + $0xa8] sm:$0xff]  }
 0x426   :  { %6361 = vst [vmem:[#allocation33_spill] sm:$0xff] %v4049_v45  ;;  %v6108_v46 = vunpack.c.h.bf16 %v4049_v45 }
 0x42a   :  { %809 = vadd.xlane.f32.xlu1 %v808_v62  ;;  %806 = vadd.xlane.f32.xlu0 %v805_v19  ;;  %v817_v62 = vsel %vm6329_vm1, %v617_v30, 0.0  ;;  %v814_v19 = vsel %vm6329_vm1, %v616_v34, 0.0  ;;  %v619_v30 = vmul.f32 %v6088_v16, %v3984_v58  ;;  %v615_v34 = vmul.f32 %v6089_v31, %v3984_v58 }
 0x42b   :  { %794 = vadd.xlane.f32.xlu2 %v793_v27  ;;  %v6087_v27 = vunpack.c.h.bf16 %v4029_v49 }
 0x42c   :  { %v811_v16 = vsel %vm6329_vm1, %v615_v34, 0.0  ;;  %v4074_v34 = vld [vmem:[%s6065_s4 + $0xb0] sm:$0xff]  }
 0x42d   :  { %v620_v61 = vmul.f32 %v6087_v27, %v3984_v58  ;;  %v823_v27 = vsel %vm6329_vm1, %v619_v30, 0.0  ;;  %v618_v30 = vmul.f32 %v6095_v39, %v3984_v58  ;;  %6363 = vst [vmem:[#allocation35_spill] sm:$0xff] %v4074_v34  ;;  %v432_v39 = vrot.slane %v3751_v3, 3 }
 0x432   :  { %818 = vadd.xlane.f32.xlu1 %v817_v62  ;;  %815 = vadd.xlane.f32.xlu0 %v814_v19  ;;  %v826_v62 = vsel %vm6329_vm1, %v620_v61, 0.0  ;;  %v6092_v19 = vunpack.c.l.bf16 %v4049_v45 }
 0x433   :  { %803 = vadd.xlane.f32.xlu2 %v802_v18  ;;  %v4054_v18 = vld [vmem:[%s6065_s4 + $0xa0] sm:$0xff]  }
 0x434   :  { %6362 = vst [vmem:[#allocation34_spill] sm:$0xff] %v4054_v18  ;;  %v6093_v31 = vunpack.c.h.bf16 %v4054_v18  ;;  %v623_v0 = vmul.f32 %v6092_v19, %v3984_v58  ;;  %v820_v19 = vsel %vm6329_vm1, %v618_v30, 0.0  ;;  %v6099_v57 = vunpack.c.l.bf16 %v4054_v18  ;;  %v4095_v30 = vld [vmem:[%s6065_s4 + $0xc0] sm:$0xff]  }
 0x435   :  { %6364 = vst [vmem:[#allocation36_spill] sm:$0xff] %v4095_v30 }
 0x436   :  { %v622_v61 = vmul.f32 %v6093_v31, %v3984_v58  ;;  %v6097_v31 = vunpack.c.l.bf16 %v4074_v34 }
 0x43a   :  { %827 = vadd.xlane.f32.xlu1 %v826_v62  ;;  %824 = vadd.xlane.f32.xlu0 %v823_v27  ;;  %v835_v27 = vsel %vm6329_vm1, %v623_v0, 0.0  ;;  %v832_v62 = vsel %vm6329_vm1, %v622_v61, 0.0  ;;  %v625_v0 = vmul.f32 %v6097_v31, %v3984_v58  ;;  %v621_v61 = vmul.f32 %v6099_v57, %v3984_v58 }
 0x43b   :  { %812 = vadd.xlane.f32.xlu2 %v811_v16  ;;  %v6098_v16 = vunpack.c.h.bf16 %v4074_v34  ;;  %v6104_v31 = vunpack.c.l.bf16 %v4095_v30 }
 0x43c   :  { %v829_v57 = vsel %vm6329_vm1, %v621_v61, 0.0  ;;  %v624_v61 = vmul.f32 %v6108_v46, %v3984_v58 }
 0x43d   :  { %v626_v41 = vmul.f32 %v6098_v16, %v3984_v58  ;;  %v841_v16 = vsel %vm6329_vm1, %v625_v0, 0.0 }
 0x43e   :  { %v838_v47 = vsel %vm6329_vm1, %v624_v61, 0.0 }
 0x442   :  { %836 = vadd.xlane.f32.xlu1 %v835_v27  ;;  %833 = vadd.xlane.f32.xlu0 %v832_v62  ;;  %v4102_v27 = vperm.slane %v432_v39, 0  ;;  %v844_v62 = vsel %vm6329_vm1, %v626_v41, 0.0 }
 0x443   :  { %821 = vadd.xlane.f32.xlu2 %v820_v19  ;;  %v4100_v19 = vld [vmem:[%s6065_s4 + $0xb8] sm:$0xff]  }
 0x444   :  { %6365 = vst [vmem:[#allocation37_spill] sm:$0xff] %v4100_v19  ;;  %v6106_v42 = vunpack.c.h.bf16 %v4100_v19  ;;  %v629_v39 = vmul.f32 %v6104_v31, %v4102_v27  ;;  %v6114_v7 = vunpack.c.l.bf16 %v4100_v19 }
 0x446   :  { %v628_v0 = vmul.f32 %v6106_v42, %v3984_v58  ;;  %v627_v61 = vmul.f32 %v6114_v7, %v3984_v58  ;;  %v6122_v7 = vunpack.c.h.bf16 %v4095_v30 }
 0x448   :  { %v850_v31 = vsel %vm6329_vm1, %v628_v0, 0.0  ;;  %v847_v14 = vsel %vm6329_vm1, %v627_v61, 0.0  ;;  %v630_v61 = vmul.f32 %v6122_v7, %v4102_v27 }
 0x44a   :  { %845 = vadd.xlane.f32.xlu1 %v844_v62  ;;  %842 = vadd.xlane.f32.xlu0 %v841_v16  ;;  %v853_v16 = vsel %vm6329_vm1, %v629_v39, 0.0  ;;  %v856_v43 = vsel %vm6329_vm1, %v630_v61, 0.0 }
 0x44b   :  { %830 = vadd.xlane.f32.xlu2 %v829_v57  ;;  %v4128_v57 = vld [vmem:[%s6065_s4 + $0xc8] sm:$0xff]  }
 0x44c   :  { %6366 = vst [vmem:[#allocation38_spill] sm:$0xff] %v4128_v57  ;;  %v6111_v62 = vunpack.c.h.bf16 %v4128_v57  ;;  %v6112_v42 = vunpack.c.l.bf16 %v4128_v57 }
 0x44d   :  { %v4110_v24 = vpop.xlane.xlu1 %716  ;;  %v4115_v41 = vpop.xlane.xlu0 %713 }
 0x44e   :  { %v4117_v9 = vpop.xlane.xlu2 %710  ;;  %v632_v28 = vmul.f32 %v6111_v62, %v4102_v27  ;;  %v631_v0 = vmul.f32 %v6112_v42, %v4102_v27 }
 0x450   :  { %v859_v42 = vsel %vm6329_vm1, %v631_v0, 0.0 }
 0x452   :  { %854 = vadd.xlane.f32.xlu1 %v853_v16  ;;  %851 = vadd.xlane.f32.xlu0 %v850_v31  ;;  %v4159_v31 = vld [vmem:[%s6065_s4 + $0xd0] sm:$0xff]   ;;  %v862_v16 = vsel %vm6329_vm1, %v632_v28, 0.0 }
 0x453   :  { %839 = vadd.xlane.f32.xlu2 %v838_v47  ;;  %v4154_v47 = vld [vmem:[%s6065_s4 + $0xd8] sm:$0xff]   ;;  %6368 = vst [vmem:[#allocation40_spill] sm:$0xff] %v4159_v31  ;;  %v6120_v58 = vunpack.c.h.bf16 %v4159_v31  ;;  %v6128_v40 = vunpack.c.l.bf16 %v4159_v31 }
 0x454   :  { %6367 = vst [vmem:[#allocation39_spill] sm:$0xff] %v4154_v47  ;;  %v6118_v62 = vunpack.c.l.bf16 %v4154_v47  ;;  %v6137_v17 = vunpack.c.h.bf16 %v4154_v47 }
 0x455   :  { %v4136_v46 = vpop.xlane.xlu1 %728  ;;  %v4141_v39 = vpop.xlane.xlu0 %725  ;;  %v634_v0 = vmul.f32 %v6120_v58, %v4102_v27  ;;  %v633_v61 = vmul.f32 %v6128_v40, %v4102_v27 }
 0x456   :  { %v4143_v63 = vpop.xlane.xlu2 %719  ;;  %v635_v50 = vmul.f32 %v6118_v62, %v4102_v27 }
 0x457   :  { %v868_v62 = vsel %vm6329_vm1, %v634_v0, 0.0  ;;  %v865_v32 = vsel %vm6329_vm1, %v633_v61, 0.0  ;;  %v636_v61 = vmul.f32 %v6137_v17, %v4102_v27  ;;  %v433_v17 = vrot.slane %v3751_v3, 4 }
 0x459   :  { %v874_v21 = vsel %vm6329_vm1, %v636_v61, 0.0  ;;  %v4274_v61 = vld [vmem:[%s6065_s4 + $0x100] sm:$0xff]  }
 0x45a   :  { %863 = vadd.xlane.f32.xlu1 %v862_v16  ;;  %860 = vadd.xlane.f32.xlu0 %v859_v42  ;;  %v871_v42 = vsel %vm6329_vm1, %v635_v50, 0.0  ;;  %6382 = vst [vmem:[#allocation54_spill] sm:$0xff] %v4274_v61  ;;  %v6165_v57 = vunpack.c.l.bf16 %v4274_v61 }
 0x45b   :  { %848 = vadd.xlane.f32.xlu2 %v847_v14  ;;  %v4185_v14 = vld [vmem:[%s6065_s4 + $0xe0] sm:$0xff]  }
 0x45c   :  { %6371 = vst [vmem:[#allocation43_spill] sm:$0xff] %v4185_v14  ;;  %v6125_v16 = vunpack.c.h.bf16 %v4185_v14  ;;  %v6126_v58 = vunpack.c.l.bf16 %v4185_v14 }
 0x45d   :  { %v4167_v53 = vpop.xlane.xlu1 %737  ;;  %v4172_v28 = vpop.xlane.xlu0 %734 }
 0x45e   :  { %6369 = vst [vmem:[#allocation41_spill] sm:$0xff] %v4167_v53  ;;  %v4174_v11 = vpop.xlane.xlu2 %722  ;;  %v638_v29 = vmul.f32 %v6125_v16, %v4102_v27  ;;  %v637_v0 = vmul.f32 %v6126_v58, %v4102_v27 }
 0x45f   :  { %6370 = vst [vmem:[#allocation42_spill] sm:$0xff] %v4172_v28 }
 0x460   :  { %v877_v58 = vsel %vm6329_vm1, %v637_v0, 0.0 }
 0x462   :  { %872 = vadd.xlane.f32.xlu1 %v871_v42  ;;  %869 = vadd.xlane.f32.xlu0 %v868_v62  ;;  %v4216_v62 = vld [vmem:[%s6065_s4 + $0xe8] sm:$0xff]   ;;  %v880_v42 = vsel %vm6329_vm1, %v638_v29, 0.0 }
 0x463   :  { %857 = vadd.xlane.f32.xlu2 %v856_v43  ;;  %v4211_v43 = vld [vmem:[%s6065_s4 + $0xf0] sm:$0xff]   ;;  %6375 = vst [vmem:[#allocation47_spill] sm:$0xff] %v4216_v62  ;;  %v6135_v40 = vunpack.c.h.bf16 %v4216_v62  ;;  %v6143_v5 = vunpack.c.l.bf16 %v4216_v62 }
 0x464   :  { %6374 = vst [vmem:[#allocation46_spill] sm:$0xff] %v4211_v43  ;;  %v6133_v16 = vunpack.c.l.bf16 %v4211_v43  ;;  %v6158_v62 = vunpack.c.h.bf16 %v4211_v43 }
 0x465   :  { %v4193_v7 = vpop.xlane.xlu1 %746  ;;  %v4198_v50 = vpop.xlane.xlu0 %743  ;;  %v640_v0 = vmul.f32 %v6135_v40, %v4102_v27 }
 0x466   :  { %6372 = vst [vmem:[#allocation44_spill] sm:$0xff] %v4193_v7  ;;  %v4200_v54 = vpop.xlane.xlu2 %731  ;;  %v641_v33 = vmul.f32 %v6133_v16, %v4102_v27 }
 0x467   :  { %6373 = vst [vmem:[#allocation45_spill] sm:$0xff] %v4198_v50  ;;  %v886_v16 = vsel %vm6329_vm1, %v640_v0, 0.0  ;;  %v4776_v50 = vadd.s32 4294967272, %v3703_v13 }
 0x46a   :  { %881 = vadd.xlane.f32.xlu1 %v880_v42  ;;  %878 = vadd.xlane.f32.xlu0 %v877_v58  ;;  %v889_v58 = vsel %vm6329_vm1, %v641_v33, 0.0 }
 0x46b   :  { %866 = vadd.xlane.f32.xlu2 %v865_v32  ;;  %v4242_v32 = vld [vmem:[%s6065_s4 + $0xf8] sm:$0xff]  }
 0x46c   :  { %6379 = vst [vmem:[#allocation51_spill] sm:$0xff] %v4242_v32  ;;  %v6140_v42 = vunpack.c.h.bf16 %v4242_v32  ;;  %v6142_v40 = vunpack.c.l.bf16 %v4242_v32  ;;  %v6155_v32 = vunpack.c.h.bf16 %v4274_v61 }
 0x46d   :  { %v4224_v44 = vpop.xlane.xlu1 %755  ;;  %v4229_v29 = vpop.xlane.xlu0 %752 }
 0x46e   :  { %6376 = vst [vmem:[#allocation48_spill] sm:$0xff] %v4224_v44  ;;  %v4231_v20 = vpop.xlane.xlu2 %740  ;;  %v644_v33 = vmul.f32 %v6140_v42, %v4102_v27  ;;  %v643_v0 = vmul.f32 %v6142_v40, %v4102_v27  ;;  %v4276_v42 = vperm.slane %v433_v17, 0 }
 0x46f   :  { %6377 = vst [vmem:[#allocation49_spill] sm:$0xff] %v4229_v29 }
 0x470   :  { %6378 = vst [vmem:[#allocation50_spill] sm:$0xff] %v4231_v20  ;;  %v898_v12 = vsel %vm6329_vm1, %v644_v33, 0.0  ;;  %v895_v15 = vsel %vm6329_vm1, %v643_v0, 0.0  ;;  %v642_v0 = vmul.f32 %v6158_v62, %v4102_v27  ;;  %v4815_v20 = vadd.s32 4294967256, %v3703_v13 }
 0x472   :  { %890 = vadd.xlane.f32.xlu1 %v889_v58  ;;  %887 = vadd.xlane.f32.xlu0 %v886_v16  ;;  %v4269_v16 = vld [vmem:[%s6065_s4 + $0x108] sm:$0xff]   ;;  %v892_v31 = vsel %vm6329_vm1, %v642_v0, 0.0  ;;  %v645_v0 = vmul.f32 %v6165_v57, %v4276_v42 }
 0x473   :  { %875 = vadd.xlane.f32.xlu2 %v874_v21  ;;  %v639_v21 = vmul.f32 %v6143_v5, %v4102_v27  ;;  %6381 = vst [vmem:[#allocation53_spill] sm:$0xff] %v4269_v16  ;;  %v6152_v40 = vunpack.c.l.bf16 %v4269_v16  ;;  %v6180_v61 = vunpack.c.h.bf16 %v4269_v16 }
 0x475   :  { %v4251_v4 = vpop.xlane.xlu1 %764  ;;  %v4258_v58 = vpop.xlane.xlu0 %761  ;;  %v883_v5 = vsel %vm6329_vm1, %v639_v21, 0.0  ;;  %v647_v17 = vmul.f32 %v6152_v40, %v4276_v42 }
 0x476   :  { %v4256_v6 = vpop.xlane.xlu2 %749 }
 0x477   :  { %6380 = vst [vmem:[#allocation52_spill] sm:$0xff] %v4256_v6 }
 0x47a   :  { %899 = vadd.xlane.f32.xlu1 %v898_v12  ;;  %896 = vadd.xlane.f32.xlu0 %v895_v15  ;;  %v646_v12 = vmul.f32 %v6155_v32, %v4276_v42  ;;  %v907_v15 = vsel %vm6329_vm1, %v647_v17, 0.0 }
 0x47b   :  { %884 = vadd.xlane.f32.xlu2 %v883_v5  ;;  %v4302_v5 = vld [vmem:[%s6065_s4 + $0x110] sm:$0xff]  }
 0x47c   :  { %6383 = vst [vmem:[#allocation55_spill] sm:$0xff] %v4302_v5  ;;  %v6161_v21 = vunpack.c.h.bf16 %v4302_v5  ;;  %v904_v40 = vsel %vm6329_vm1, %v646_v12, 0.0  ;;  %v6162_v32 = vunpack.c.l.bf16 %v4302_v5  ;;  %v901_v5 = vsel %vm6329_vm1, %v645_v0, 0.0 }
 0x47d   :  { %v4284_v14 = vpop.xlane.xlu1 %773  ;;  %v4289_v33 = vpop.xlane.xlu0 %770  ;;  %v648_v0 = vmul.f32 %v6180_v61, %v4276_v42 }
 0x47e   :  { %v4291_v47 = vpop.xlane.xlu2 %758  ;;  %v650_v62 = vmul.f32 %v6161_v21, %v4276_v42  ;;  %v649_v12 = vmul.f32 %v6162_v32, %v4276_v42 }
 0x47f   :  { %v910_v45 = vsel %vm6329_vm1, %v648_v0, 0.0 }
 0x480   :  { %v913_v32 = vsel %vm6329_vm1, %v649_v12, 0.0 }
 0x482   :  { %908 = vadd.xlane.f32.xlu1 %v907_v15  ;;  %905 = vadd.xlane.f32.xlu0 %v904_v40  ;;  %v4328_v40 = vld [vmem:[%s6065_s4 + $0x120] sm:$0xff]   ;;  %v916_v15 = vsel %vm6329_vm1, %v650_v62, 0.0 }
 0x483   :  { %893 = vadd.xlane.f32.xlu2 %v892_v31  ;;  %6386 = vst [vmem:[#allocation58_spill] sm:$0xff] %v4328_v40  ;;  %v4333_v31 = vld [vmem:[%s6065_s4 + $0x118] sm:$0xff]   ;;  %v6174_v21 = vunpack.c.l.bf16 %v4328_v40 }
 0x484   :  { %6387 = vst [vmem:[#allocation59_spill] sm:$0xff] %v4333_v31  ;;  %v6177_v57 = vunpack.c.h.bf16 %v4333_v31  ;;  %v6189_v18 = vunpack.c.l.bf16 %v4333_v31  ;;  %v6206_v31 = vunpack.c.h.bf16 %v4328_v40 }
 0x485   :  { %v4310_v27 = vpop.xlane.xlu1 %782  ;;  %v4315_v17 = vpop.xlane.xlu0 %779  ;;  %v653_v19 = vmul.f32 %v6174_v21, %v4276_v42 }
 0x486   :  { %6384 = vst [vmem:[#allocation56_spill] sm:$0xff] %v4310_v27  ;;  %v4317_v43 = vpop.xlane.xlu2 %767  ;;  %v652_v12 = vmul.f32 %v6177_v57, %v4276_v42  ;;  %v651_v0 = vmul.f32 %v6189_v18, %v4276_v42 }
 0x487   :  { %6385 = vst [vmem:[#allocation57_spill] sm:$0xff] %v4315_v17 }
 0x488   :  { %v922_v21 = vsel %vm6329_vm1, %v652_v12, 0.0 }
 0x48a   :  { %917 = vadd.xlane.f32.xlu1 %v916_v15  ;;  %914 = vadd.xlane.f32.xlu0 %v913_v32  ;;  %v4359_v32 = vld [vmem:[%s6065_s4 + $0x128] sm:$0xff]  }
 0x48b   :  { %902 = vadd.xlane.f32.xlu2 %v901_v5  ;;  %6390 = vst [vmem:[#allocation62_spill] sm:$0xff] %v4359_v32  ;;  %v925_v5 = vsel %vm6329_vm1, %v653_v19, 0.0  ;;  %v6185_v15 = vunpack.c.h.bf16 %v4359_v32  ;;  %v6186_v57 = vunpack.c.l.bf16 %v4359_v32  ;;  %v919_v32 = vsel %vm6329_vm1, %v651_v0, 0.0 }
 0x48c   :  { %v4419_v0 = vperm.slane %v434_v51, 0 }
 0x48d   :  { %v4341_v30 = vpop.xlane.xlu1 %791  ;;  %v4346_v62 = vpop.xlane.xlu0 %788  ;;  %v656_v16 = vmul.f32 %v6185_v15, %v4276_v42  ;;  %v655_v12 = vmul.f32 %v6186_v57, %v4276_v42 }
 0x48e   :  { %6388 = vst [vmem:[#allocation60_spill] sm:$0xff] %v4341_v30  ;;  %v4348_v34 = vpop.xlane.xlu2 %776 }
 0x48f   :  { %6389 = vst [vmem:[#allocation61_spill] sm:$0xff] %v4346_v62  ;;  %v931_v57 = vsel %vm6329_vm1, %v655_v12, 0.0 }
 0x492   :  { %926 = vadd.xlane.f32.xlu1 %v925_v5  ;;  %923 = vadd.xlane.f32.xlu0 %v922_v21  ;;  %v4390_v21 = vld [vmem:[%s6065_s4 + $0x130] sm:$0xff]   ;;  %v934_v5 = vsel %vm6329_vm1, %v656_v16, 0.0 }
 0x493   :  { %911 = vadd.xlane.f32.xlu2 %v910_v45  ;;  %v4385_v45 = vld [vmem:[%s6065_s4 + $0x138] sm:$0xff]   ;;  %6395 = vst [vmem:[#allocation67_spill] sm:$0xff] %v4390_v21  ;;  %v6203_v18 = vunpack.c.h.bf16 %v4390_v21 }
 0x494   :  { %6394 = vst [vmem:[#allocation66_spill] sm:$0xff] %v4385_v45  ;;  %v6198_v15 = vunpack.c.l.bf16 %v4385_v45 }
 0x495   :  { %v4367_v61 = vpop.xlane.xlu1 %800  ;;  %v4372_v19 = vpop.xlane.xlu0 %797  ;;  %v658_v12 = vmul.f32 %v6203_v18, %v4276_v42 }
 0x496   :  { %6391 = vst [vmem:[#allocation63_spill] sm:$0xff] %v4367_v61  ;;  %v4374_v49 = vpop.xlane.xlu2 %785  ;;  %v659_v16 = vmul.f32 %v6198_v15, %v4276_v42 }
 0x497   :  { %6392 = vst [vmem:[#allocation64_spill] sm:$0xff] %v4372_v19  ;;  %v940_v25 = vsel %vm6329_vm1, %v658_v12, 0.0 }
 0x498   :  { %6393 = vst [vmem:[#allocation65_spill] sm:$0xff] %v4374_v49  ;;  %v943_v15 = vsel %vm6329_vm1, %v659_v16, 0.0 }
 0x49a   :  { %935 = vadd.xlane.f32.xlu1 %v934_v5  ;;  %932 = vadd.xlane.f32.xlu0 %v931_v57  ;;  %v654_v57 = vmul.f32 %v6206_v31, %v4276_v42  ;;  %v6215_v31 = vunpack.c.l.bf16 %v4390_v21 }
 0x49b   :  { %920 = vadd.xlane.f32.xlu2 %v919_v32  ;;  %v4417_v32 = vld [vmem:[%s6065_s4 + $0x140] sm:$0xff]  }
 0x49c   :  { %6397 = vst [vmem:[#allocation69_spill] sm:$0xff] %v4417_v32  ;;  %v6211_v23 = vunpack.c.h.bf16 %v4417_v32  ;;  %v928_v18 = vsel %vm6329_vm1, %v654_v57, 0.0  ;;  %v6212_v55 = vunpack.c.l.bf16 %v4417_v32  ;;  %v657_v12 = vmul.f32 %v6215_v31, %v4276_v42 }
 0x49d   :  { %v4399_v52 = vpop.xlane.xlu1 %809  ;;  %v4404_v56 = vpop.xlane.xlu0 %806  ;;  %v6230_v32 = vunpack.c.h.bf16 %v4385_v45 }
 0x49e   :  { %v4406_v5 = vpop.xlane.xlu2 %794  ;;  %v662_v51 = vmul.f32 %v6211_v23, %v4419_v0  ;;  %v937_v21 = vsel %vm6329_vm1, %v657_v12, 0.0 }
 0x49f   :  { %6396 = vst [vmem:[#allocation68_spill] sm:$0xff] %v4406_v5  ;;  %v660_v12 = vmul.f32 %v6230_v32, %v4276_v42 }
 0x4a0   :  { %v952_v57 = vsel %vm6329_vm1, %v662_v51, 0.0 }
 0x4a1   :  { %v946_v60 = vsel %vm6329_vm1, %v660_v12, 0.0 }
 0x4a2   :  { %944 = vadd.xlane.f32.xlu1 %v943_v15  ;;  %941 = vadd.xlane.f32.xlu0 %v940_v25  ;;  %v661_v15 = vmul.f32 %v6212_v55, %v4419_v0  ;;  %v4445_v25 = vld [vmem:[%s6065_s4 + $0x150] sm:$0xff]  }
 0x4a3   :  { %929 = vadd.xlane.f32.xlu2 %v928_v18  ;;  %6399 = vst [vmem:[#allocation71_spill] sm:$0xff] %v4445_v25  ;;  %v4450_v18 = vld [vmem:[%s6065_s4 + $0x148] sm:$0xff]   ;;  %v6224_v23 = vunpack.c.l.bf16 %v4445_v25 }
 0x4a4   :  { %6400 = vst [vmem:[#allocation72_spill] sm:$0xff] %v4450_v18  ;;  %v949_v55 = vsel %vm6329_vm1, %v661_v15, 0.0  ;;  %v6227_v31 = vunpack.c.h.bf16 %v4450_v18  ;;  %v6237_v48 = vunpack.c.l.bf16 %v4450_v18  ;;  %v6252_v18 = vunpack.c.h.bf16 %v4445_v25 }
 0x4a5   :  { %v4427_v40 = vpop.xlane.xlu1 %818  ;;  %v4432_v16 = vpop.xlane.xlu0 %815  ;;  %v665_v22 = vmul.f32 %v6224_v23, %v4419_v0 }
 0x4a6   :  { %v4434_v35 = vpop.xlane.xlu2 %803  ;;  %v664_v15 = vmul.f32 %v6227_v31, %v4419_v0  ;;  %v663_v12 = vmul.f32 %v6237_v48, %v4419_v0 }
 0x4a7   :  { %6398 = vst [vmem:[#allocation70_spill] sm:$0xff] %v4434_v35 }
 0x4a8   :  { %v958_v23 = vsel %vm6329_vm1, %v664_v15, 0.0 }
 0x4aa   :  { %953 = vadd.xlane.f32.xlu1 %v952_v57  ;;  %950 = vadd.xlane.f32.xlu0 %v949_v55  ;;  %v4476_v55 = vld [vmem:[%s6065_s4 + $0x158] sm:$0xff]  }
 0x4ab   :  { %938 = vadd.xlane.f32.xlu2 %v937_v21  ;;  %6402 = vst [vmem:[#allocation74_spill] sm:$0xff] %v4476_v55  ;;  %v961_v21 = vsel %vm6329_vm1, %v665_v22, 0.0  ;;  %v6233_v57 = vunpack.c.h.bf16 %v4476_v55  ;;  %v6234_v31 = vunpack.c.l.bf16 %v4476_v55  ;;  %v955_v55 = vsel %vm6329_vm1, %v663_v12, 0.0 }
 0x4ac   :  { %v666_v12 = vmul.f32 %v6252_v18, %v4419_v0  ;;  %v435_v18 = vrot.slane %v3751_v3, 6 }
 0x4ad   :  { %v4458_v36 = vpop.xlane.xlu1 %827  ;;  %v4463_v51 = vpop.xlane.xlu0 %824  ;;  %v668_v32 = vmul.f32 %v6233_v57, %v4419_v0  ;;  %v667_v15 = vmul.f32 %v6234_v31, %v4419_v0 }
 0x4ae   :  { %6401 = vst [vmem:[#allocation73_spill] sm:$0xff] %v4458_v36  ;;  %v4465_v59 = vpop.xlane.xlu2 %812  ;;  %v964_v8 = vsel %vm6329_vm1, %v666_v12, 0.0  ;;  %v4565_v12 = vld [vmem:[%s6065_s4 + $0x178] sm:$0xff]  }
 0x4af   :  { %v967_v31 = vsel %vm6329_vm1, %v667_v15, 0.0  ;;  %6414 = vst [vmem:[#allocation86_spill] sm:$0xff] %v4565_v12 }
 0x4b2   :  { %962 = vadd.xlane.f32.xlu1 %v961_v21  ;;  %959 = vadd.xlane.f32.xlu0 %v958_v23  ;;  %v4507_v23 = vld [vmem:[%s6065_s4 + $0x160] sm:$0xff]   ;;  %v970_v21 = vsel %vm6329_vm1, %v668_v32, 0.0 }
 0x4b3   :  { %947 = vadd.xlane.f32.xlu2 %v946_v60  ;;  %v4502_v60 = vld [vmem:[%s6065_s4 + $0x168] sm:$0xff]   ;;  %6406 = vst [vmem:[#allocation78_spill] sm:$0xff] %v4507_v23  ;;  %v6249_v48 = vunpack.c.h.bf16 %v4507_v23  ;;  %v6263_v10 = vunpack.c.l.bf16 %v4507_v23  ;;  %v6267_v23 = vunpack.c.h.bf16 %v4565_v12 }
 0x4b4   :  { %6405 = vst [vmem:[#allocation77_spill] sm:$0xff] %v4502_v60  ;;  %v6246_v57 = vunpack.c.l.bf16 %v4502_v60 }
 0x4b5   :  { %v4484_v42 = vpop.xlane.xlu1 %836  ;;  %v4489_v22 = vpop.xlane.xlu0 %833  ;;  %v670_v15 = vmul.f32 %v6249_v48, %v4419_v0 }
 0x4b6   :  { %6403 = vst [vmem:[#allocation75_spill] sm:$0xff] %v4484_v42  ;;  %v4491_v45 = vpop.xlane.xlu2 %821  ;;  %v671_v38 = vmul.f32 %v6246_v57, %v4419_v0 }
 0x4b7   :  { %6404 = vst [vmem:[#allocation76_spill] sm:$0xff] %v4489_v22  ;;  %v976_v57 = vsel %vm6329_vm1, %v670_v15, 0.0 }
 0x4ba   :  { %971 = vadd.xlane.f32.xlu1 %v970_v21  ;;  %968 = vadd.xlane.f32.xlu0 %v967_v31  ;;  %v4533_v31 = vld [vmem:[%s6065_s4 + $0x170] sm:$0xff]  }
 0x4bb   :  { %956 = vadd.xlane.f32.xlu2 %v955_v55  ;;  %6410 = vst [vmem:[#allocation82_spill] sm:$0xff] %v4533_v31  ;;  %v979_v55 = vsel %vm6329_vm1, %v671_v38, 0.0  ;;  %v6257_v21 = vunpack.c.h.bf16 %v4533_v31  ;;  %v6260_v48 = vunpack.c.l.bf16 %v4533_v31 }
 0x4bd   :  { %v4515_v37 = vpop.xlane.xlu1 %845  ;;  %v4520_v32 = vpop.xlane.xlu0 %842  ;;  %v674_v38 = vmul.f32 %v6257_v21, %v4419_v0  ;;  %v673_v15 = vmul.f32 %v6260_v48, %v4419_v0  ;;  %v4567_v21 = vperm.slane %v435_v18, 0 }
 0x4be   :  { %6407 = vst [vmem:[#allocation79_spill] sm:$0xff] %v4515_v37  ;;  %v4522_v26 = vpop.xlane.xlu2 %830  ;;  %v6275_v37 = vunpack.c.l.bf16 %v4565_v12 }
 0x4bf   :  { %6408 = vst [vmem:[#allocation80_spill] sm:$0xff] %v4520_v32  ;;  %v988_v2 = vsel %vm6329_vm1, %v674_v38, 0.0  ;;  %v985_v31 = vsel %vm6329_vm1, %v673_v15, 0.0 }
 0x4c0   :  { %6409 = vst [vmem:[#allocation81_spill] sm:$0xff] %v4522_v26 }
 0x4c2   :  { %980 = vadd.xlane.f32.xlu1 %v979_v55  ;;  %977 = vadd.xlane.f32.xlu0 %v976_v57  ;;  %v4560_v57 = vld [vmem:[%s6065_s4 + $0x180] sm:$0xff]  }
 0x4c3   :  { %965 = vadd.xlane.f32.xlu2 %v964_v8  ;;  %v669_v8 = vmul.f32 %v6263_v10, %v4419_v0  ;;  %6413 = vst [vmem:[#allocation85_spill] sm:$0xff] %v4560_v57  ;;  %v6266_v48 = vunpack.c.l.bf16 %v4560_v57 }
 0x4c5   :  { %v4542_v25 = vpop.xlane.xlu1 %854  ;;  %v4547_v1 = vpop.xlane.xlu0 %851  ;;  %v973_v10 = vsel %vm6329_vm1, %v669_v8, 0.0  ;;  %v677_v18 = vmul.f32 %v6266_v48, %v4567_v21 }
 0x4c6   :  { %6411 = vst [vmem:[#allocation83_spill] sm:$0xff] %v4547_v1  ;;  %v4549_v55 = vpop.xlane.xlu2 %839  ;;  %v6268_v1 = vunpack.c.h.bf16 %v4502_v60 }
 0x4c7   :  { %6412 = vst [vmem:[#allocation84_spill] sm:$0xff] %v4549_v55 }
 0x4c8   :  { %v672_v15 = vmul.f32 %v6268_v1, %v4419_v0 }
 0x4ca   :  { %989 = vadd.xlane.f32.xlu1 %v988_v2  ;;  %986 = vadd.xlane.f32.xlu0 %v985_v31  ;;  %v676_v2 = vmul.f32 %v6267_v23, %v4419_v0  ;;  %v997_v31 = vsel %vm6329_vm1, %v677_v18, 0.0  ;;  %v982_v61 = vsel %vm6329_vm1, %v672_v15, 0.0  ;;  %v675_v15 = vmul.f32 %v6275_v37, %v4419_v0 }
 0x4cb   :  { %974 = vadd.xlane.f32.xlu2 %v973_v10  ;;  %v4593_v10 = vld [vmem:[%s6065_s4 + $0x188] sm:$0xff]   ;;  %v6280_v37 = vunpack.c.h.bf16 %v4560_v57 }
 0x4cc   :  { %6416 = vst [vmem:[#allocation88_spill] sm:$0xff] %v4593_v10  ;;  %v6271_v8 = vunpack.c.h.bf16 %v4593_v10  ;;  %v994_v48 = vsel %vm6329_vm1, %v676_v2, 0.0  ;;  %v6272_v23 = vunpack.c.l.bf16 %v4593_v10  ;;  %v991_v12 = vsel %vm6329_vm1, %v675_v15, 0.0 }
 0x4cd   :  { %v4575_v44 = vpop.xlane.xlu1 %863  ;;  %v4580_v38 = vpop.xlane.xlu0 %860  ;;  %v678_v15 = vmul.f32 %v6280_v37, %v4567_v21 }
 0x4ce   :  { %v4582_v35 = vpop.xlane.xlu2 %848  ;;  %v680_v60 = vmul.f32 %v6271_v8, %v4567_v21  ;;  %v679_v2 = vmul.f32 %v6272_v23, %v4567_v21 }
 0x4cf   :  { %6415 = vst [vmem:[#allocation87_spill] sm:$0xff] %v4582_v35  ;;  %v1000_v32 = vsel %vm6329_vm1, %v678_v15, 0.0 }
 0x4d0   :  { %v1003_v23 = vsel %vm6329_vm1, %v679_v2, 0.0 }
 0x4d2   :  { %998 = vadd.xlane.f32.xlu1 %v997_v31  ;;  %995 = vadd.xlane.f32.xlu0 %v994_v48  ;;  %v4619_v48 = vld [vmem:[%s6065_s4 + $0x198] sm:$0xff]   ;;  %v1006_v31 = vsel %vm6329_vm1, %v680_v60, 0.0 }
 0x4d3   :  { %983 = vadd.xlane.f32.xlu2 %v982_v61  ;;  %6418 = vst [vmem:[#allocation90_spill] sm:$0xff] %v4619_v48  ;;  %v4624_v61 = vld [vmem:[%s6065_s4 + $0x190] sm:$0xff]   ;;  %v6278_v8 = vunpack.c.l.bf16 %v4619_v48 }
 0x4d4   :  { %6419 = vst [vmem:[#allocation91_spill] sm:$0xff] %v4624_v61  ;;  %v6279_v0 = vunpack.c.h.bf16 %v4624_v61  ;;  %v6287_v7 = vunpack.c.l.bf16 %v4624_v61  ;;  %v6292_v61 = vunpack.c.h.bf16 %v4619_v48 }
 0x4d5   :  { %v4601_v1 = vpop.xlane.xlu1 %872  ;;  %v4606_v18 = vpop.xlane.xlu0 %869  ;;  %v683_v35 = vmul.f32 %v6278_v8, %v4567_v21 }
 0x4d6   :  { %6417 = vst [vmem:[#allocation89_spill] sm:$0xff] %v4601_v1  ;;  %v4608_v29 = vpop.xlane.xlu2 %857  ;;  %v682_v2 = vmul.f32 %v6279_v0, %v4567_v21  ;;  %v681_v15 = vmul.f32 %v6287_v7, %v4567_v21 }
 0x4d8   :  { %v1012_v8 = vsel %vm6329_vm1, %v682_v2, 0.0 }
 0x4da   :  { %1007 = vadd.xlane.f32.xlu1 %v1006_v31  ;;  %1004 = vadd.xlane.f32.xlu0 %v1003_v23  ;;  %v4650_v23 = vld [vmem:[%s6065_s4 + $0x1a0] sm:$0xff]  }
 0x4db   :  { %992 = vadd.xlane.f32.xlu2 %v991_v12  ;;  %6422 = vst [vmem:[#allocation94_spill] sm:$0xff] %v4650_v23  ;;  %v1015_v12 = vsel %vm6329_vm1, %v683_v35, 0.0  ;;  %v6283_v31 = vunpack.c.h.bf16 %v4650_v23  ;;  %v6284_v0 = vunpack.c.l.bf16 %v4650_v23  ;;  %v1009_v23 = vsel %vm6329_vm1, %v681_v15, 0.0 }
 0x4dc   :  { %v684_v15 = vmul.f32 %v6292_v61, %v4567_v21  ;;  %v436_v61 = vrot.slane %v3751_v3, 7  ;;  %v4730_v3 = vld [vmem:[%s6065_s4 + $0x1c8] sm:$0xff]  }
 0x4dd   :  { %v4632_v10 = vpop.xlane.xlu1 %881  ;;  %v4637_v60 = vpop.xlane.xlu0 %878  ;;  %v686_v57 = vmul.f32 %v6283_v31, %v4567_v21  ;;  %v685_v2 = vmul.f32 %v6284_v0, %v4567_v21  ;;  %6432 = vst [vmem:[#allocation104_spill] sm:$0xff] %v4730_v3 }
 0x4de   :  { %6420 = vst [vmem:[#allocation92_spill] sm:$0xff] %v4632_v10  ;;  %v4639_v19 = vpop.xlane.xlu2 %866  ;;  %v4766_v10 = vadd.s32 4294967288, %v3703_v13 }
 0x4df   :  { %6421 = vst [vmem:[#allocation93_spill] sm:$0xff] %v4637_v60  ;;  %v1021_v0 = vsel %vm6329_vm1, %v685_v2, 0.0 }
 0x4e2   :  { %1016 = vadd.xlane.f32.xlu1 %v1015_v12  ;;  %1013 = vadd.xlane.f32.xlu0 %v1012_v8  ;;  %v4681_v8 = vld [vmem:[%s6065_s4 + $0x1a8] sm:$0xff]   ;;  %v1024_v12 = vsel %vm6329_vm1, %v686_v57, 0.0 }
 0x4e3   :  { %1001 = vadd.xlane.f32.xlu2 %v1000_v32  ;;  %v4676_v32 = vld [vmem:[%s6065_s4 + $0x1b0] sm:$0xff]   ;;  %6426 = vst [vmem:[#allocation98_spill] sm:$0xff] %v4681_v8  ;;  %v6291_v7 = vunpack.c.h.bf16 %v4681_v8 }
 0x4e4   :  { %6425 = vst [vmem:[#allocation97_spill] sm:$0xff] %v4676_v32  ;;  %v6290_v31 = vunpack.c.l.bf16 %v4676_v32 }
 0x4e5   :  { %v4658_v37 = vpop.xlane.xlu1 %890  ;;  %v4663_v35 = vpop.xlane.xlu0 %887  ;;  %v688_v2 = vmul.f32 %v6291_v7, %v4567_v21 }
 0x4e6   :  { %6423 = vst [vmem:[#allocation95_spill] sm:$0xff] %v4658_v37  ;;  %v4665_v6 = vpop.xlane.xlu2 %875 }
 0x4e7   :  { %6424 = vst [vmem:[#allocation96_spill] sm:$0xff] %v4663_v35  ;;  %v689_v35 = vmul.f32 %v6290_v31, %v4567_v21  ;;  %v1030_v31 = vsel %vm6329_vm1, %v688_v2, 0.0 }
 0x4ea   :  { %1025 = vadd.xlane.f32.xlu1 %v1024_v12  ;;  %1022 = vadd.xlane.f32.xlu0 %v1021_v0  ;;  %v4707_v0 = vld [vmem:[%s6065_s4 + $0x1b8] sm:$0xff]  }
 0x4eb   :  { %1010 = vadd.xlane.f32.xlu2 %v1009_v23  ;;  %6430 = vst [vmem:[#allocation102_spill] sm:$0xff] %v4707_v0  ;;  %v1033_v23 = vsel %vm6329_vm1, %v689_v35, 0.0  ;;  %v6295_v12 = vunpack.c.h.bf16 %v4707_v0  ;;  %v6296_v7 = vunpack.c.l.bf16 %v4707_v0 }
 0x4ed   :  { %v4689_v37 = vpop.xlane.xlu1 %899  ;;  %v4694_v57 = vpop.xlane.xlu0 %896  ;;  %v692_v35 = vmul.f32 %v6295_v12, %v4567_v21  ;;  %v691_v2 = vmul.f32 %v6296_v7, %v4567_v21  ;;  %v6302_v12 = vunpack.c.l.bf16 %v4730_v3 }
 0x4ee   :  { %6427 = vst [vmem:[#allocation99_spill] sm:$0xff] %v4689_v37  ;;  %v4696_v30 = vpop.xlane.xlu2 %884  ;;  %v1018_v37 = vsel %vm6329_vm1, %v684_v15, 0.0 }
 0x4ef   :  { %6428 = vst [vmem:[#allocation100_spill] sm:$0xff] %v4694_v57  ;;  %v6297_v57 = vunpack.c.l.bf16 %v4681_v8  ;;  %v1039_v7 = vsel %vm6329_vm1, %v691_v2, 0.0  ;;  %v6304_v8 = vunpack.c.h.bf16 %v4676_v32 }
 0x4f0   :  { %6429 = vst [vmem:[#allocation101_spill] sm:$0xff] %v4696_v30 }
 0x4f1   :  { %v687_v15 = vmul.f32 %v6297_v57, %v4567_v21 }
 0x4f2   :  { %1034 = vadd.xlane.f32.xlu1 %v1033_v23  ;;  %1031 = vadd.xlane.f32.xlu0 %v1030_v31  ;;  %v4737_v31 = vperm.slane %v436_v61, 0  ;;  %v1042_v23 = vsel %vm6329_vm1, %v692_v35, 0.0 }
 0x4f3   :  { %1019 = vadd.xlane.f32.xlu2 %v1018_v37  ;;  %v4735_v37 = vld [vmem:[%s6065_s4 + $0x1c0] sm:$0xff]   ;;  %v1027_v57 = vsel %vm6329_vm1, %v687_v15, 0.0  ;;  %v690_v15 = vmul.f32 %v6304_v8, %v4567_v21 }
 0x4f4   :  { %6433 = vst [vmem:[#allocation105_spill] sm:$0xff] %v4735_v37  ;;  %v6303_v0 = vunpack.c.h.bf16 %v4735_v37  ;;  %v695_v61 = vmul.f32 %v6302_v12, %v4737_v31 }
 0x4f5   :  { %v909_v48 = vpop.xlane.xlu1 %908  ;;  %v906_v42 = vpop.xlane.xlu0 %905  ;;  %v1036_v8 = vsel %vm6329_vm1, %v690_v15, 0.0 }
 0x4f6   :  { %v4719_v5 = vpop.xlane.xlu2 %893  ;;  %v694_v2 = vmul.f32 %v6303_v0, %v4737_v31 }
 0x4f7   :  { %6431 = vst [vmem:[#allocation103_spill] sm:$0xff] %v4719_v5 }
 0x4f8   :  { %v1048_v21 = vsel %vm6329_vm1, %v694_v2, 0.0  ;;  %v4786_v2 = vld [vmem:[%s6065_s4 + $0x1e0] sm:$0xff]  }
 0x4f9   :  { %6436 = vst [vmem:[#allocation107_spill] sm:$0xff] %v4786_v2 }
 0x4fa   :  { %1043 = vadd.xlane.f32.xlu1 %v1042_v23  ;;  %1040 = vadd.xlane.f32.xlu0 %v1039_v7  ;;  %v4759_v7 = vld [vmem:[%s6065_s4 + $0x1d0] sm:$0xff]   ;;  %v4773_v23 = vadd.s32 4294967280, %v3703_v13 }
 0x4fb   :  { %1028 = vadd.xlane.f32.xlu2 %v1027_v57  ;;  %6434 = vst [vmem:[#allocation106_spill] sm:$0xff] %v4759_v7  ;;  %v1051_v57 = vsel %vm6329_vm1, %v695_v61, 0.0  ;;  %v1377_v61 = vperm.slane %v906_v42, %v4766_v10  ;;  %v4791_v42 = vld [vmem:[%s6065_s4 + $0x1d8] sm:$0xff]   ;;  %v6438_v32 = vunpack.c.l.bf16 %v4759_v7 }
 0x4fc   :  { %6437 = vst [vmem:[#allocation108_spill] sm:$0xff] %v4791_v42  ;;  %v1379_v22 = vperm.slane %v909_v48, %v4773_v23 }
 0x4fd   :  { %v4745_v5 = vpop.xlane.xlu1 %917  ;;  %v915_v35 = vpop.xlane.xlu0 %914  ;;  %v697_v62 = vmul.f32 %v6438_v32, %v4737_v31 }
 0x4fe   :  { %v903_v55 = vpop.xlane.xlu2 %902 }
 0x4ff   :  { %v1376_v0 = vperm.slane %v903_v55, %v3703_v13  ;;  %v6435_v55 = vunpack.c.h.bf16 %v4759_v7  ;;  %v1057_v48 = vsel %vm6329_vm1, %v697_v62, 0.0 }
 0x502   :  { %1052 = vadd.xlane.f32.xlu1 %v1051_v57  ;;  %1049 = vadd.xlane.f32.xlu0 %v1048_v21  ;;  %v698_v57 = vmul.f32 %v6435_v55, %v4737_v31  ;;  %v6439_v55 = vunpack.c.l.bf16 %v4735_v37 }
 0x503   :  { %1037 = vadd.xlane.f32.xlu2 %v1036_v8  ;;  %v1378_v8 = vsel %vm1225_vm9, %v1377_v61, %v1376_v0  ;;  %v4805_v0 = vadd.s32 4294967264, %v3703_v13 }
 0x504   :  { %v693_v30 = vmul.f32 %v6439_v55, %v4737_v31  ;;  %v1380_v61 = vsel %vm1229_vm10, %v1379_v22, %v1378_v8  ;;  %v1060_v32 = vsel %vm6329_vm1, %v698_v57, 0.0  ;;  %v6313_v55 = vunpack.c.h.bf16 %v4730_v3 }
 0x505   :  { %v4778_v12 = vpop.xlane.xlu1 %926  ;;  %v924_v15 = vpop.xlane.xlu0 %923  ;;  %v1383_v60 = vperm.slane %v915_v35, %v4805_v0  ;;  %v4818_v22 = vadd.s32 4294967248, %v3703_v13  ;;  %v6441_v35 = vunpack.c.h.bf16 %v4791_v42 }
 0x506   :  { %v912_v21 = vpop.xlane.xlu2 %911 }
 0x507   :  { %v1381_v53 = vperm.slane %v912_v21, %v4776_v50  ;;  %v1045_v21 = vsel %vm6329_vm1, %v693_v30, 0.0  ;;  %v6440_v30 = vunpack.c.l.bf16 %v4786_v2  ;;  %v700_v8 = vmul.f32 %v6441_v35, %v4737_v31 }
 0x509   :  { %v1382_v7 = vsel %vm1233_vm11, %v1381_v53, %v1380_v61  ;;  %v701_v62 = vmul.f32 %v6440_v30, %v4737_v31  ;;  %v4832_v61 = vld [vmem:[%s6065_s4 + $0x1e8] sm:$0xff]   ;;  %v1066_v49 = vsel %vm6329_vm1, %v700_v8, 0.0  ;;  %v4867_v8 = vld [vmem:[%s6065_s4 + $0x1f8] sm:$0xff]  }
 0x50a   :  { %1061 = vadd.xlane.f32.xlu1 %v1060_v32  ;;  %1058 = vadd.xlane.f32.xlu0 %v1057_v48  ;;  %v1384_v53 = vsel %vm1237_vm12, %v1383_v60, %v1382_v7  ;;  %6442 = vst [vmem:[#allocation109_spill] sm:$0xff] %v4832_v61  ;;  %v4835_v32 = vadd.s32 4294967240, %v3703_v13  ;;  %v1385_v60 = vperm.slane %v4745_v5, %v4815_v20  ;;  %v6314_v27 = vunpack.c.h.bf16 %v4832_v61 }
 0x50b   :  { %1046 = vadd.xlane.f32.xlu2 %v1045_v21  ;;  %v696_v21 = vmul.f32 %v6313_v55, %v4737_v31  ;;  %v1069_v5 = vsel %vm6329_vm1, %v701_v62, 0.0 }
 0x50c   :  { %v1389_v35 = vperm.slane %v924_v15, %v4835_v32  ;;  %v1386_v37 = vsel %vm1241_vm13, %v1385_v60, %v1384_v53  ;;  %v6318_v15 = vunpack.c.l.bf16 %v4791_v42  ;;  %v4854_v53 = vadd.s32 4294967232, %v3703_v13 }
 0x50d   :  { %v4821_v57 = vpop.xlane.xlu1 %935  ;;  %v933_v7 = vpop.xlane.xlu0 %932  ;;  %v1054_v55 = vsel %vm6329_vm1, %v696_v21, 0.0 }
 0x50e   :  { %v921_v48 = vpop.xlane.xlu2 %920 }
 0x50f   :  { %v1387_v30 = vperm.slane %v921_v48, %v4818_v22  ;;  %v6317_v48 = vunpack.c.l.bf16 %v4832_v61  ;;  %v6321_v61 = vunpack.c.l.bf16 %v4867_v8 }
 0x511   :  { %v1388_v36 = vsel %vm1245_vm14, %v1387_v30, %v1386_v37  ;;  %v4857_v37 = vadd.s32 4294967224, %v3703_v13  ;;  %v703_v30 = vmul.f32 %v6317_v48, %v4737_v31 }
 0x512   :  { %v1390_v3 = vsel %vm1249_vm15, %v1389_v35, %v1388_v36  ;;  %1070 = vadd.xlane.f32.xlu1 %v1069_v5  ;;  %1067 = vadd.xlane.f32.xlu0 %v1066_v49  ;;  %v704_v36 = vmul.f32 %v6314_v27, %v4737_v31  ;;  %v4870_v49 = vadd.s32 4294967216, %v3703_v13  ;;  %v699_v35 = vmul.f32 %v6318_v15, %v4737_v31  ;;  %v4883_v5 = vld [vmem:[%s6065_s4 + $0x1f0] sm:$0xff]  }
 0x513   :  { %1055 = vadd.xlane.f32.xlu2 %v1054_v55  ;;  %v1391_v55 = vperm.slane %v4778_v12, %v4854_v53  ;;  %6444 = vst [vmem:[#allocation111_spill] sm:$0xff] %v4883_v5  ;;  %v6322_v42 = vunpack.c.h.bf16 %v4883_v5  ;;  %v1075_v28 = vsel %vm6329_vm1, %v703_v30, 0.0 }
 0x514   :  { %v1395_v12 = vperm.slane %v933_v7, %v4870_v49  ;;  %v1078_v15 = vsel %vm6329_vm1, %v704_v36, 0.0  ;;  %v6323_v7 = vunpack.c.h.bf16 %v4786_v2 }
 0x515   :  { %v4859_v62 = vpop.xlane.xlu1 %944  ;;  %v942_v60 = vpop.xlane.xlu0 %941  ;;  %v706_v30 = vmul.f32 %v6322_v42, %v4737_v31 }
 0x516   :  { %6443 = vst [vmem:[#allocation110_spill] sm:$0xff] %v4859_v62  ;;  %v930_v21 = vpop.xlane.xlu2 %929  ;;  %v1392_v62 = vsel %vm1253_vm0, %v1391_v55, %v1390_v3  ;;  %v4897_v3 = vadd.s32 4294967208, %v3703_v13 }
 0x517   :  { %v1393_v27 = vperm.slane %v930_v21, %v4857_v37  ;;  %v1063_v21 = vsel %vm6329_vm1, %v699_v35, 0.0  ;;  %v702_v35 = vmul.f32 %v6323_v7, %v4737_v31  ;;  %v1084_v42 = vsel %vm6329_vm1, %v706_v30, 0.0 }
 0x518   :  { %v1397_v36 = vperm.slane %v4821_v57, %v4897_v3 }
 0x519   :  { %v1394_v48 = vsel %vm1257_vm2, %v1393_v27, %v1392_v62  ;;  %v4900_v27 = vadd.s32 4294967200, %v3703_v13  ;;  %v1072_v7 = vsel %vm6329_vm1, %v702_v35, 0.0 }
 0x51a   :  { %v1396_v26 = vsel %vm6332_vm3, %v1395_v12, %v1394_v48  ;;  %1079 = vadd.xlane.f32.xlu1 %v1078_v15  ;;  %1076 = vadd.xlane.f32.xlu0 %v1075_v28  ;;  %v707_v48 = vmul.f32 %v6321_v61, %v4737_v31  ;;  %v4906_v15 = vadd.s32 4294967192, %v3703_v13 }
 0x51b   :  { %1064 = vadd.xlane.f32.xlu2 %v1063_v21  ;;  %v1398_v61 = vsel %vm6331_vm4, %v1397_v36, %v1396_v26 }
 0x51c   :  { %v1401_v21 = vperm.slane %v942_v60, %v4906_v15  ;;  %v1087_v1 = vsel %vm6329_vm1, %v707_v48, 0.0 }
 0x51d   :  { %v954_v62 = vpop.xlane.xlu1 %953  ;;  %v951_v55 = vpop.xlane.xlu0 %950 }
 0x51e   :  { %v939_v28 = vpop.xlane.xlu2 %938  ;;  %v1408_v36 = vperm.slane %v954_v62, %v4766_v10  ;;  %v1407_v30 = vperm.slane %v951_v55, %v3703_v13 }
 0x51f   :  { %v1399_v12 = vperm.slane %v939_v28, %v4900_v27  ;;  %v6326_v28 = vunpack.c.l.bf16 %v4883_v5 }
 0x521   :  { %v1400_v57 = vsel %vm6330_vm5, %v1399_v12, %v1398_v61  ;;  %v705_v61 = vmul.f32 %v6326_v28, %v4737_v31 }
 0x522   :  { %v4922_v17 = vsel %vm6333_vm6, %v1401_v21, %v1400_v57  ;;  %1088 = vadd.xlane.f32.xlu1 %v1087_v1  ;;  %1085 = vadd.xlane.f32.xlu0 %v1084_v42  ;;  %v3266_v1 = vunpack.c.h.bf16 %v4867_v8  ;;  %v1409_v57 = vsel %vm1225_vm9, %v1408_v36, %v1407_v30 }
 0x523   :  { %6445 = vst [vmem:[#allocation112_spill] sm:$0xff] %v4922_v17  ;;  %1073 = vadd.xlane.f32.xlu2 %v1072_v7  ;;  %v1081_v48 = vsel %vm6329_vm1, %v705_v61, 0.0 }
 0x524   :  { %v708_v12 = vmul.f32 %v3266_v1, %v4737_v31 }
 0x525   :  { %v963_v60 = vpop.xlane.xlu1 %962  ;;  %v960_v2 = vpop.xlane.xlu0 %959 }
 0x526   :  { %v4927_v26 = vpop.xlane.xlu2 %947  ;;  %v1412_v61 = vperm.slane %v960_v2, %v4776_v50  ;;  %v1090_v62 = vsel %vm6329_vm1, %v708_v12, 0.0  ;;  %v1414_v5 = vperm.slane %v963_v60, %v4805_v0  ;;  %vm1500_vm1 = vcmask 1041409  }
 0x527   :  { %6446 = vst [vmem:[#allocation113_spill] sm:$0xff] %v4927_v26 }
 0x52b   :  { %1082 = vadd.xlane.f32.xlu2 %v1081_v48 }
 0x52d   :  { %v972_v35 = vpop.xlane.xlu1 %971  ;;  %v969_v42 = vpop.xlane.xlu0 %968 }
 0x52e   :  { %v957_v7 = vpop.xlane.xlu2 %956 }
 0x52f   :  { %v1410_v21 = vperm.slane %v957_v7, %v4773_v23  ;;  %v1418_v7 = vperm.slane %v969_v42, %v4818_v22 }
 0x531   :  { %v1411_v28 = vsel %vm1229_vm10, %v1410_v21, %v1409_v57 }
 0x532   :  { %v1413_v48 = vsel %vm1233_vm11, %v1412_v61, %v1411_v28  ;;  %v1420_v28 = vperm.slane %v972_v35, %v4835_v32 }
 0x533   :  { %1091 = vadd.xlane.f32.xlu2 %v1090_v62  ;;  %v1415_v36 = vsel %vm1237_vm12, %v1414_v5, %v1413_v48 }
 0x535   :  { %v981_v55 = vpop.xlane.xlu1 %980  ;;  %v978_v17 = vpop.xlane.xlu0 %977 }
 0x536   :  { %v966_v26 = vpop.xlane.xlu2 %965  ;;  %v1424_v61 = vperm.slane %v978_v17, %v4857_v37  ;;  %v1426_v62 = vperm.slane %v981_v55, %v4870_v49  ;;  %v1224_v55 = vperm.slane %v4115_v41, %v4766_v10  ;;  %v1228_v41 = vperm.slane %v4110_v24, %v4773_v23 }
 0x537   :  { %v1416_v31 = vperm.slane %v966_v26, %v4815_v20  ;;  %v1232_v24 = vperm.slane %v4143_v63, %v4776_v50 }
 0x539   :  { %v1417_v2 = vsel %vm1241_vm13, %v1416_v31, %v1415_v36 }
 0x53a   :  { %v1419_v30 = vsel %vm1245_vm14, %v1418_v7, %v1417_v2 }
 0x53b   :  { %v1421_v26 = vsel %vm1249_vm15, %v1420_v28, %v1419_v30 }
 0x53d   :  { %v4951_v21 = vpop.xlane.xlu1 %989  ;;  %v987_v12 = vpop.xlane.xlu0 %986 }
 0x53e   :  { %v975_v57 = vpop.xlane.xlu2 %974  ;;  %v1430_v36 = vperm.slane %v987_v12, %v4900_v27  ;;  %v1283_v12 = vperm.slane %v4291_v47, %v3703_v13  ;;  %v1345_v47 = vperm.slane %v4542_v25, %v3703_v13 }
 0x53f   :  { %v1422_v60 = vperm.slane %v975_v57, %v4854_v53 }
 0x541   :  { %v1423_v42 = vsel %vm1253_vm0, %v1422_v60, %v1421_v26  ;;  %v1346_v26 = vperm.slane %v4608_v29, %v4766_v10 }
 0x542   :  { %v1425_v5 = vsel %vm1257_vm2, %v1424_v61, %v1423_v42  ;;  %v1222_v61 = vperm.slane %v4117_v9, %v3703_v13  ;;  %v1284_v42 = vperm.slane %v4258_v58, %v4766_v10  ;;  %v1317_v9 = vperm.slane %v4465_v59, %v4773_v23 }
 0x543   :  { %v1427_v2 = vsel %vm6332_vm3, %v1426_v62, %v1425_v5  ;;  %v1315_v5 = vperm.slane %v4399_v52, %v4766_v10  ;;  %v1314_v62 = vperm.slane %v4404_v56, %v3703_v13  ;;  %v1288_v52 = vperm.slane %v4317_v43, %v4776_v50 }
 0x544   :  { %v1226_v29 = vsel %vm1225_vm9, %v1224_v55, %v1222_v61  ;;  %v1285_v58 = vsel %vm1225_vm9, %v1284_v42, %v1283_v12  ;;  %v1286_v59 = vperm.slane %v4251_v4, %v4773_v23  ;;  %v1347_v25 = vsel %vm1225_vm9, %v1346_v26, %v1345_v47 }
 0x545   :  { %v4959_v48 = vpop.xlane.xlu1 %998  ;;  %v4962_v31 = vpop.xlane.xlu0 %995  ;;  %v1348_v43 = vperm.slane %v4580_v38, %v4773_v23  ;;  %v1319_v4 = vperm.slane %v4432_v16, %v4776_v50  ;;  %v1290_v38 = vperm.slane %v4289_v33, %v4805_v0  ;;  %v1350_v42 = vperm.slane %v4575_v44, %v4776_v50 }
 0x546   :  { %v984_v7 = vpop.xlane.xlu2 %983  ;;  %v1287_v55 = vsel %vm1229_vm10, %v1286_v59, %v1285_v58  ;;  %v1321_v33 = vperm.slane %v4427_v40, %v4805_v0  ;;  %v1244_v59 = vperm.slane %v4136_v46, %v4818_v22  ;;  %v6448_v46 = vld [vmem:[#allocation89_spill] sm:$0xff] }
 0x547   :  { %v1428_v35 = vperm.slane %v984_v7, %v4897_v3  ;;  %v1289_v63 = vsel %vm1233_vm11, %v1288_v52, %v1287_v55  ;;  %v1349_v12 = vsel %vm1229_vm10, %v1348_v43, %v1347_v25 }
 0x548   :  { %v1351_v44 = vsel %vm1233_vm11, %v1350_v42, %v1349_v12 }
 0x549   :  { %v1429_v17 = vsel %vm6331_vm4, %v1428_v35, %v1427_v2  ;;  %v1316_v2 = vsel %vm1225_vm9, %v1315_v5, %v1314_v62  ;;  %v1240_v5 = vperm.slane %v4141_v39, %v4815_v20  ;;  %v1292_v39 = vperm.slane %v4284_v14, %v4815_v20 }
 0x54a   :  { %v4969_v30 = vsel %vm6330_vm5, %v1430_v36, %v1429_v17  ;;  %v1236_v36 = vperm.slane %v4174_v11, %v4805_v0  ;;  %v1230_v17 = vsel %vm1229_vm10, %v1228_v41, %v1226_v29  ;;  %v1318_v61 = vsel %vm1229_vm10, %v1317_v9, %v1316_v2 }
 0x54b   :  { %v1352_v11 = vperm.slane %v4639_v19, %v4805_v0  ;;  %v1234_v26 = vsel %vm1233_vm11, %v1232_v24, %v1230_v17  ;;  %v1320_v16 = vsel %vm1233_vm11, %v1319_v4, %v1318_v61  ;;  %v1323_v41 = vperm.slane %v4491_v45, %v4815_v20 }
 0x54c   :  { %v1238_v62 = vsel %vm1237_vm12, %v1236_v36, %v1234_v26  ;;  %v1291_v19 = vsel %vm1237_vm12, %v1290_v38, %v1289_v63  ;;  %v1294_v9 = vperm.slane %v4348_v34, %v4818_v22  ;;  %v1248_v34 = vperm.slane %v4200_v54, %v4835_v32  ;;  %v6449_v63 = vld [vmem:[#allocation42_spill] sm:$0xff]  ;;  %v6451_v38 = vld [vmem:[#allocation65_spill] sm:$0xff] }
 0x54d   :  { %v4971_v28 = vpop.xlane.xlu1 %1007  ;;  %v4973_v57 = vpop.xlane.xlu0 %1004  ;;  %v1353_v29 = vsel %vm1237_vm12, %v1352_v11, %v1351_v44  ;;  %v1242_v52 = vsel %vm1241_vm13, %v1240_v5, %v1238_v62  ;;  %v1322_v40 = vsel %vm1237_vm12, %v1321_v33, %v1320_v16  ;;  %v1354_v24 = vperm.slane %v4606_v18, %v4815_v20  ;;  %v6447_v18 = vld [vmem:[#allocation57_spill] sm:$0xff]  ;;  %v6454_v44 = vld [vmem:[#allocation50_spill] sm:$0xff] }
 0x54e   :  { %v4975_v60 = vpop.xlane.xlu2 %992  ;;  %v1293_v14 = vsel %vm1241_vm13, %v1292_v39, %v1291_v19  ;;  %v1324_v25 = vsel %vm1241_vm13, %v1323_v41, %v1322_v40  ;;  %v1325_v2 = vperm.slane %v4463_v51, %v4818_v22  ;;  %v1358_v54 = vperm.slane %v4665_v6, %v4835_v32  ;;  %v6450_v11 = vld [vmem:[#allocation81_spill] sm:$0xff]  ;;  %v6453_v41 = vld [vmem:[#allocation56_spill] sm:$0xff] }
 0x54f   :  { %v1295_v36 = vsel %vm1245_vm14, %v1294_v9, %v1293_v14  ;;  %v1355_v43 = vsel %vm1241_vm13, %v1354_v24, %v1353_v29  ;;  %v1246_v17 = vsel %vm1245_vm14, %v1244_v59, %v1242_v52  ;;  %v1296_v55 = vperm.slane %v6447_v18, %v4835_v32  ;;  %v6452_v5 = vld [vmem:[#allocation73_spill] sm:$0xff] }
 0x550   :  { %v1356_v61 = vperm.slane %v6448_v46, %v4818_v22  ;;  %v1252_v4 = vperm.slane %v6449_v63, %v4854_v53  ;;  %v1250_v12 = vsel %vm1249_vm15, %v1248_v34, %v1246_v17  ;;  %v1326_v51 = vsel %vm1245_vm14, %v1325_v2, %v1324_v25  ;;  %v6455_v52 = vld [vmem:[#allocation93_spill] sm:$0xff] }
 0x551   :  { %v1329_v26 = vperm.slane %v6450_v11, %v4854_v53  ;;  %v1297_v6 = vsel %vm1249_vm15, %v1296_v55, %v1295_v36  ;;  %v1300_v42 = vperm.slane %v6451_v38, %v4857_v37  ;;  %v1327_v62 = vperm.slane %v6452_v5, %v4835_v32  ;;  %v6456_v59 = vld [vmem:[#allocation41_spill] sm:$0xff] }
 0x552   :  { %v1357_v16 = vsel %vm1245_vm14, %v1356_v61, %v1355_v43  ;;  %v1298_v19 = vperm.slane %v6453_v41, %v4854_v53  ;;  %v1254_v33 = vsel %vm1253_vm0, %v1252_v4, %v1250_v12  ;;  %v1260_v39 = vperm.slane %v6454_v44, %v4870_v49  ;;  %v6458_v55 = vld [vmem:[#allocation101_spill] sm:$0xff]  ;;  %v6460_v12 = vld [vmem:[#allocation92_spill] sm:$0xff] }
 0x553   :  { %v1359_v9 = vsel %vm1249_vm15, %v1358_v54, %v1357_v16  ;;  %v1328_v29 = vsel %vm1249_vm15, %v1327_v62, %v1326_v51  ;;  %v1360_v34 = vperm.slane %v6455_v52, %v4854_v53  ;;  %v1256_v14 = vperm.slane %v6456_v59, %v4857_v37  ;;  %v6457_v54 = vld [vmem:[#allocation76_spill] sm:$0xff]  ;;  %v6459_v63 = vld [vmem:[#allocation61_spill] sm:$0xff] }
 0x554   :  { %v1299_v25 = vsel %vm1253_vm0, %v1298_v19, %v1297_v6  ;;  %v1330_v36 = vsel %vm1253_vm0, %v1329_v26, %v1328_v29  ;;  %v1331_v17 = vperm.slane %v6457_v54, %v4857_v37  ;;  %v1364_v46 = vperm.slane %v6458_v55, %v4870_v49  ;;  %v6461_v11 = vld [vmem:[#allocation45_spill] sm:$0xff]  ;;  %v6463_v16 = vld [vmem:[#allocation68_spill] sm:$0xff]  ;;  %v6464_v19 = vld [vmem:[#allocation75_spill] sm:$0xff] }
 0x555   :  { %v4997_v7 = vpop.xlane.xlu1 %1016  ;;  %v5003_v35 = vpop.xlane.xlu0 %1013  ;;  %v1301_v43 = vsel %vm1257_vm2, %v1300_v42, %v1299_v25  ;;  %v1361_v18 = vsel %vm1253_vm0, %v1360_v34, %v1359_v9  ;;  %v1258_v61 = vsel %vm1257_vm2, %v1256_v14, %v1254_v33  ;;  %v1302_v4 = vperm.slane %v6459_v63, %v4870_v49  ;;  %v6462_v42 = vld [vmem:[#allocation84_spill] sm:$0xff] }
 0x556   :  { %v5005_v56 = vpop.xlane.xlu2 %1001  ;;  %v1362_v51 = vperm.slane %v6460_v12, %v4857_v37  ;;  %v1264_v26 = vperm.slane %v6461_v11, %v4897_v3  ;;  %v1262_v6 = vsel %vm6332_vm3, %v1260_v39, %v1258_v61  ;;  %v1332_v38 = vsel %vm1257_vm2, %v1331_v17, %v1330_v36  ;;  %v6465_v44 = vld [vmem:[#allocation60_spill] sm:$0xff]  ;;  %v6470_v11 = vld [vmem:[#allocation103_spill] sm:$0xff] }
 0x557   :  { %v1335_v5 = vperm.slane %v6462_v42, %v4897_v3  ;;  %v1303_v62 = vsel %vm6332_vm3, %v1302_v4, %v1301_v43  ;;  %v1306_v41 = vperm.slane %v6463_v16, %v4900_v27  ;;  %v1333_v9 = vperm.slane %v6464_v19, %v4870_v49  ;;  %v6466_v34 = vld [vmem:[#allocation52_spill] sm:$0xff] }
 0x558   :  { %v1363_v33 = vsel %vm1257_vm2, %v1362_v51, %v1361_v18  ;;  %v1304_v29 = vperm.slane %v6465_v44, %v4897_v3  ;;  %v1266_v52 = vsel %vm6331_vm4, %v1264_v26, %v1262_v6  ;;  %v1272_v59 = vperm.slane %v6466_v34, %v4906_v15  ;;  %v6467_v25 = vld [vmem:[#allocation96_spill] sm:$0xff]  ;;  %v6475_v34 = vld [vmem:[#allocation79_spill] sm:$0xff] }
 0x559   :  { %v1365_v39 = vsel %vm6332_vm3, %v1364_v46, %v1363_v33  ;;  %v1334_v14 = vsel %vm6332_vm3, %v1333_v9, %v1332_v38  ;;  %v1366_v36 = vperm.slane %v6467_v25, %v4897_v3  ;;  %v6468_v43 = vld [vmem:[#allocation44_spill] sm:$0xff]  ;;  %v5139_v17 = vadd.s32 4294967184, %v3703_v13  ;;  %v6473_v9 = vld [vmem:[#allocation87_spill] sm:$0xff] }
 0x55a   :  { %v1268_v54 = vperm.slane %v6468_v43, %v4900_v27  ;;  %v1305_v18 = vsel %vm6331_vm4, %v1304_v29, %v1303_v62  ;;  %v1336_v55 = vsel %vm6331_vm4, %v1335_v5, %v1334_v14  ;;  %v6469_v4 = vld [vmem:[#allocation80_spill] sm:$0xff]  ;;  %v1370_v26 = vperm.slane %v6470_v11, %v4906_v15  ;;  %v6472_v62 = vld [vmem:[#allocation95_spill] sm:$0xff]  ;;  %v6474_v29 = vld [vmem:[#allocation49_spill] sm:$0xff] }
 0x55b   :  { %v1307_v63 = vsel %vm6330_vm5, %v1306_v41, %v1305_v18  ;;  %v1337_v12 = vperm.slane %v6469_v4, %v4900_v27  ;;  %v1367_v51 = vsel %vm6331_vm4, %v1366_v36, %v1365_v39  ;;  %v5154_v6 = vadd.s32 4294967176, %v3703_v13  ;;  %v6471_v42 = vld [vmem:[#allocation64_spill] sm:$0xff]  ;;  %v6476_v36 = vld [vmem:[#allocation63_spill] sm:$0xff]  ;;  %v6477_v43 = vld [vmem:[#allocation70_spill] sm:$0xff] }
 0x55c   :  { %v1270_v38 = vsel %vm6330_vm5, %v1268_v54, %v1266_v52  ;;  %v1308_v5 = vperm.slane %v6471_v42, %v4906_v15  ;;  %v1368_v16 = vperm.slane %v6472_v62, %v4900_v27  ;;  %v1341_v33 = vperm.slane %v6473_v9, %v5139_v17  ;;  %v6479_v11 = vld [vmem:[#allocation100_spill] sm:$0xff] }
 0x55d   :  { %v5043_v47 = vpop.xlane.xlu1 %1025  ;;  %v5048_v58 = vpop.xlane.xlu0 %1022  ;;  %v1274_v41 = vsel %vm6333_vm6, %v1272_v59, %v1270_v38  ;;  %v1338_v19 = vsel %vm6330_vm5, %v1337_v12, %v1336_v55  ;;  %v1276_v39 = vperm.slane %v6474_v29, %v5139_v17  ;;  %v1339_v14 = vperm.slane %v6475_v34, %v4906_v15  ;;  %v6478_v55 = vld [vmem:[#allocation48_spill] sm:$0xff] }
 0x55e   :  { %v5050_v45 = vpop.xlane.xlu2 %1010  ;;  %v1309_v52 = vsel %vm6333_vm6, %v1308_v5, %v1307_v63  ;;  %v1369_v25 = vsel %vm6330_vm5, %v1368_v16, %v1367_v51  ;;  %v1310_v59 = vperm.slane %v6476_v36, %v5139_v17  ;;  %v1312_v54 = vperm.slane %v6477_v43, %v5154_v6  ;;  %v6480_v5 = vld [vmem:[#allocation83_spill] sm:$0xff]  ;;  %v6481_v16 = vld [vmem:[#allocation113_spill] sm:$0xff]  ;;  %v6484_v43 = vld [vmem:[#allocation112_spill] sm:$0xff] }
 0x55f   :  { %v1371_v18 = vsel %vm6333_vm6, %v1370_v26, %v1369_v25  ;;  %v1280_v4 = vperm.slane %v6478_v55, %v5154_v6  ;;  %v1278_v12 = vsel %vm1277_vm7, %v1276_v39, %v1274_v41  ;;  %v1340_v63 = vsel %vm6333_vm6, %v1339_v14, %v1338_v19  ;;  %v6482_v39 = vld [vmem:[#allocation99_spill] sm:$0xff] }
 0x560   :  { %v1372_v38 = vperm.slane %v6479_v11, %v5139_v17  ;;  %v1311_v51 = vsel %vm1277_vm7, %v1310_v59, %v1309_v52  ;;  %v1342_v42 = vsel %vm1277_vm7, %v1341_v33, %v1340_v63  ;;  %v1343_v62 = vperm.slane %v6480_v5, %v5154_v6  ;;  %v6483_v33 = vld [vmem:[#allocation110_spill] sm:$0xff] }
 0x561   :  { %v1405_v9 = vperm.slane %v6481_v16, %v5154_v6  ;;  %v1434_v41 = vperm.slane %v4975_v60, %v5139_v17  ;;  %v1313_v29 = vsel %vm1281_vm8, %v1312_v54, %v1311_v51  ;;  %v1374_v52 = vperm.slane %v6482_v39, %v5154_v6 }
 0x562   :  { %v1373_v26 = vsel %vm1277_vm7, %v1372_v38, %v1371_v18  ;;  %v1403_v34 = vperm.slane %v6483_v33, %v5139_v17  ;;  %v1432_v14 = vperm.slane %v4951_v21, %v4906_v15  ;;  %v1282_v25 = vsel %vm1281_vm8, %v1280_v4, %v1278_v12 }
 0x563   :  { %vm1502_vm5 = vcmask 1042434   ;;  %v1344_v36 = vsel %vm1281_vm8, %v1343_v62, %v1342_v42  ;;  %v1375_v60 = vsel %vm1281_vm8, %v1374_v52, %v1373_v26  ;;  %vm1504_vm4 = vcmask 1043459  }
 0x564   :  { %v1404_v54 = vsel %vm1277_vm7, %v1403_v34, %v6484_v43  ;;  %v1433_v18 = vsel %vm6333_vm6, %v1432_v14, %v4969_v30  ;;  %v1501_v55 = vsel %vm1500_vm1, %v1313_v29, %v1282_v25  ;;  %vm1506_vm3 = vcmask 1044484  }
 0x565   :  { %v5094_v40 = vpop.xlane.xlu0 %1031  ;;  %v5102_v2 = vpop.xlane.xlu1 %1034  ;;  %v1406_v63 = vsel %vm1281_vm8, %v1405_v9, %v1404_v54  ;;  %v1435_v21 = vsel %vm1277_vm7, %v1434_v41, %v1433_v18  ;;  %v1503_v4 = vsel %vm1502_vm5, %v1344_v36, %v1501_v55  ;;  %v1436_v12 = vperm.slane %v4962_v31, %v5154_v6 }
 0x566   :  { %v5096_v24 = vpop.xlane.xlu2 %1019  ;;  %v1505_v38 = vsel %vm1504_vm4, %v1375_v60, %v1503_v4  ;;  %vm1508_vm6 = vcmask 1045509   ;;  %v1439_v62 = vperm.slane %v5005_v56, %v4766_v10  ;;  %v1438_v26 = vperm.slane %v4959_v48, %v3703_v13 }
 0x567   :  { %v1437_v51 = vsel %vm1281_vm8, %v1436_v12, %v1435_v21  ;;  %v1507_v30 = vsel %vm1506_vm3, %v1406_v63, %v1505_v38  ;;  %v1441_v9 = vperm.slane %v4973_v57, %v4773_v23  ;;  %v1445_v33 = vperm.slane %v5050_v45, %v4805_v0 }
 0x568   :  { %v5219_v5 = vsel %vm1508_vm6, %v1437_v51, %v1507_v30  ;;  %v1440_v31 = vsel %vm1225_vm9, %v1439_v62, %v1438_v26  ;;  %v1443_v48 = vperm.slane %v4971_v28, %v4776_v50  ;;  %v1447_v60 = vperm.slane %v5003_v35, %v4815_v20 }
 0x569   :  { %v1442_v52 = vsel %vm1229_vm10, %v1441_v9, %v1440_v31  ;;  %v1455_v38 = vperm.slane %v5043_v47, %v4857_v37 }
 0x56a   :  { %v1444_v57 = vsel %vm1233_vm11, %v1443_v48, %v1442_v52 }
 0x56b   :  { %v1446_v36 = vsel %vm1237_vm12, %v1445_v33, %v1444_v57 }
 0x56c   :  { %v1448_v28 = vsel %vm1241_vm13, %v1447_v60, %v1446_v36 }
 0x56d   :  { %v5143_v46 = vpop.xlane.xlu0 %1040  ;;  %v5165_v44 = vpop.xlane.xlu1 %1043 }
 0x56e   :  { %v5145_v61 = vpop.xlane.xlu2 %1028 }
 0x575   :  { %v1050_v59 = vpop.xlane.xlu0 %1049  ;;  %v1053_v11 = vpop.xlane.xlu1 %1052 }
 0x576   :  { %v5193_v19 = vpop.xlane.xlu2 %1037  ;;  %v1470_v56 = vperm.slane %v1050_v59, %v4766_v10  ;;  %v1472_v25 = vperm.slane %v1053_v11, %v4773_v23  ;;  %v1451_v59 = vperm.slane %v5096_v24, %v4835_v32  ;;  %v1449_v23 = vperm.slane %v4997_v7, %v4818_v22 }
 0x577   :  { %v1453_v24 = vperm.slane %v5048_v58, %v4854_v53  ;;  %v1457_v11 = vperm.slane %v5145_v61, %v4870_v49  ;;  %v1459_v61 = vperm.slane %v5094_v40, %v4897_v3  ;;  %v1463_v9 = vperm.slane %v5193_v19, %v4906_v15 }
 0x578   :  { %v1450_v63 = vsel %vm1245_vm14, %v1449_v23, %v1448_v28  ;;  %v1465_v19 = vperm.slane %v5143_v46, %v5139_v17 }
 0x579   :  { %v1452_v4 = vsel %vm1249_vm15, %v1451_v59, %v1450_v63 }
 0x57a   :  { %v1454_v7 = vsel %vm1253_vm0, %v1453_v24, %v1452_v4 }
 0x57d   :  { %v1059_v16 = vpop.xlane.xlu0 %1058  ;;  %v1062_v41 = vpop.xlane.xlu1 %1061 }
 0x57e   :  { %v1047_v42 = vpop.xlane.xlu2 %1046  ;;  %v1478_v21 = vperm.slane %v1062_v41, %v4815_v20 }
 0x57f   :  { %v1469_v29 = vperm.slane %v1047_v42, %v3703_v13  ;;  %v1456_v42 = vsel %vm1257_vm2, %v1455_v38, %v1454_v7 }
 0x581   :  { %v1471_v34 = vsel %vm1225_vm9, %v1470_v56, %v1469_v29  ;;  %vm6485_vm9 = vcmask 720512  }
 0x582   :  { %v1473_v45 = vsel %vm1229_vm10, %v1472_v25, %v1471_v34  ;;  %v1458_v26 = vsel %vm6485_vm9, %v1457_v11, %v1456_v42  ;;  %vm6486_vm10 = vcmask 786112  }
 0x583   :  { %v1460_v31 = vsel %vm6486_vm10, %v1459_v61, %v1458_v26 }
 0x585   :  { %v1068_v43 = vpop.xlane.xlu0 %1067  ;;  %v1071_v18 = vpop.xlane.xlu1 %1070 }
 0x586   :  { %v1056_v39 = vpop.xlane.xlu2 %1055  ;;  %v1484_v62 = vperm.slane %v1071_v18, %v4854_v53  ;;  %v1461_v53 = vperm.slane %v5102_v2, %v4900_v27 }
 0x587   :  { %v1474_v14 = vperm.slane %v1056_v39, %v4776_v50  ;;  %v1476_v50 = vperm.slane %v1059_v16, %v4805_v0 }
 0x589   :  { %v1475_v10 = vsel %vm1233_vm11, %v1474_v14, %v1473_v45  ;;  %vm6487_vm11 = vmmov %vm6485_vm9  ;;  %vm1512_vm9 = vcmask 1047559  }
 0x58a   :  { %v1477_v55 = vsel %vm1237_vm12, %v1476_v50, %v1475_v10  ;;  %vm6488_vm12 = vcmask 851712  }
 0x58b   :  { %v1479_v0 = vsel %vm1241_vm13, %v1478_v21, %v1477_v55  ;;  %v1462_v39 = vsel %vm6488_vm12, %v1461_v53, %v1460_v31  ;;  %vm6489_vm13 = vcmask 917312   ;;  %v6496_v31 = vld [vmem:[#allocation12_spill] sm:$0xff] }
 0x58c   :  { %v1464_v33 = vsel %vm6489_vm13, %v1463_v9, %v1462_v39  ;;  %v6497_v9 = vunpack.c.l.bf16 %v6496_v31  ;;  %v6500_v39 = vunpack.c.h.bf16 %v6496_v31 }
 0x58d   :  { %v1077_v20 = vpop.xlane.xlu0 %1076  ;;  %v1080_v16 = vpop.xlane.xlu1 %1079  ;;  %v1466_v14 = vsel %vm1277_vm7, %v1465_v19, %v1464_v33 }
 0x58e   :  { %v1065_v54 = vpop.xlane.xlu2 %1064  ;;  %v1490_v40 = vperm.slane %v1080_v16, %v4897_v3  ;;  %v1467_v3 = vperm.slane %v5165_v44, %v5154_v6 }
 0x58f   :  { %v1480_v35 = vperm.slane %v1065_v54, %v4818_v22  ;;  %v1482_v22 = vperm.slane %v1068_v43, %v4835_v32 }
 0x590   :  { %v1468_v36 = vsel %vm1281_vm8, %v1467_v3, %v1466_v14  ;;  %v6504_v14 = vld [vmem:[#allocation15_spill] sm:$0xff] }
 0x591   :  { %v1481_v12 = vsel %vm1245_vm14, %v1480_v35, %v1479_v0  ;;  %vm6490_vm14 = vmmov %vm6486_vm10  ;;  %vm1093_vm10 = vcmp.ge.s32.totalorder %v3703_v13, 8  ;;  %v6505_v3 = vunpack.c.h.bf16 %v6504_v14 }
 0x592   :  { %v1483_v30 = vsel %vm1249_vm15, %v1482_v22, %v1481_v12  ;;  %vm6491_vm15 = vmmov %vm6488_vm12 }
 0x593   :  { %v1485_v32 = vsel %vm1253_vm0, %v1484_v62, %v1483_v30  ;;  %vm6492_vm0 = vmmov %vm6489_vm13  ;;  %v6494_v62 = vld [vmem:[#allocation13_spill] sm:$0xff] }
 0x594   :  { %v6495_v26 = vunpack.c.l.bf16 %v6494_v62  ;;  %v6498_v53 = vunpack.c.h.bf16 %v6494_v62 }
 0x595   :  { %v1086_v56 = vpop.xlane.xlu0 %1085  ;;  %v1089_v2 = vpop.xlane.xlu1 %1088 }
 0x596   :  { %v1074_v51 = vpop.xlane.xlu2 %1073  ;;  %v1494_v34 = vperm.slane %v1086_v56, %v4906_v15  ;;  %v1496_v57 = vperm.slane %v1089_v2, %v5139_v17 }
 0x597   :  { %v1486_v58 = vperm.slane %v1074_v51, %v4857_v37  ;;  %v1488_v37 = vperm.slane %v1077_v20, %v4870_v49 }
 0x599   :  { %v1487_v47 = vsel %vm1257_vm2, %v1486_v58, %v1485_v32  ;;  %vm1510_vm2 = vcmask 1046534  }
 0x59a   :  { %v1489_v41 = vsel %vm6487_vm11, %v1488_v37, %v1487_v47  ;;  %v1511_v44 = vsel %vm1510_vm2, %v1468_v36, %v5219_v5 }
 0x59b   :  { %v1491_v49 = vsel %vm6490_vm14, %v1490_v40, %v1489_v41 }
 0x59e   :  { %v1083_v29 = vpop.xlane.xlu2 %1082 }
 0x59f   :  { %v1492_v52 = vperm.slane %v1083_v29, %v4900_v27 }
 0x5a1   :  { %v1493_v48 = vsel %vm6491_vm15, %v1492_v52, %v1491_v49 }
 0x5a2   :  { %v1495_v27 = vsel %vm6492_vm0, %v1494_v34, %v1493_v48 }
 0x5a3   :  { %v1497_v15 = vsel %vm1277_vm7, %v1496_v57, %v1495_v27  ;;  %vm6499_vm7 = vcmask 261120   ;;  %v6506_v57 = vunpack.c.l.bf16 %v6504_v14 }
 0x5a4   :  { %vm6502_vm11 = vmmov %vm6499_vm7 }
 0x5a5   :  { %vm6503_vm12 = vmmov %vm6499_vm7 }
 0x5a6   :  { %v1092_v25 = vpop.xlane.xlu2 %1091  ;;  %vm6507_vm13 = vmmov %vm6499_vm7 }
 0x5a7   :  { %v1498_v46 = vperm.slane %v1092_v25, %v5154_v6  ;;  %v6493_v6 = vlaneseq  ;;  %vm6508_vm14 = vmmov %vm6499_vm7 }
 0x5a8   :  { %vm6514_vm15 = vmmov %vm6499_vm7 }
 0x5a9   :  { %v1499_v60 = vsel %vm1281_vm8, %v1498_v46, %v1497_v15  ;;  %v5304_v50 = vshrl.u32 %v6493_v6, 7  ;;  %vm6501_vm8 = vmmov %vm6499_vm7 }
 0x5aa   :  { %v1513_v43 = vsel %vm1512_vm9, %v1499_v60, %v1511_v44  ;;  %vm6515_vm0 = vmmov %vm6499_vm7 }
 0x5ab   :  { %v1515_v45 = vsel %vm1093_vm10, -inf, %v1513_v43  ;;  %3340 = vset.pattern.permute.xlu2 %v5304_v50  ;;  %v5308_v13 = vadd.s32 16, %v5304_v50  ;;  %v5311_v5 = vadd.s32 8, %v5304_v50  ;;  %v5320_v35 = vadd.s32 32, %v5304_v50  ;;  %vm6516_vm10 = vmmov %vm6515_vm0 }
 0x5ac   :  { %1516 = vmax.xlane.f32.xlu0 %v1515_v45  ;;  %v5323_v63 = vadd.s32 64, %v5304_v50  ;;  %v5326_v21 = vadd.s32 24, %v5304_v50  ;;  %v5332_v4 = vadd.s32 48, %v5304_v50  ;;  %v5335_v24 = vadd.s32 104, %v5304_v50 }
 0x5ad   :  { %3342 = vset.pattern.permute.xlu1 %v5308_v13  ;;  %3341 = vset.pattern.permute.xlu0 %v5311_v5  ;;  %v5338_v0 = vadd.s32 40, %v5304_v50  ;;  %v5344_v12 = vadd.s32 72, %v5304_v50  ;;  %v5347_v7 = vadd.s32 56, %v5304_v50  ;;  %v5357_v22 = vadd.s32 88, %v5304_v50 }
 0x5ae   :  { %v5360_v38 = vadd.s32 80, %v5304_v50  ;;  %v5367_v20 = vadd.s32 112, %v5304_v50  ;;  %v5370_v51 = vadd.s32 96, %v5304_v50  ;;  %v5377_v30 = vadd.s32 120, %v5304_v50 }
 0x61f   :  { %v1517_v17 = vpop.xlane.xlu0 %1516 }
 0x620   :  { %v1518_v10 = vsub.f32 %v1515_v45, %v1517_v17 }
 0x622   :  { %v1519_v28 = vmul.f32 1.442695, %v1518_v10  ;;  %v6509_v10 = vld [vmem:[#allocation14_spill] sm:$0xff] }
 0x623   :  { %v6511_v6 = vunpack.c.l.bf16 %v6509_v10 }
 0x624   :  { %3459 = vpow2.f32 %v1519_v28  ;;  %v6510_v28 = vunpack.c.h.bf16 %v6509_v10 }
 0x62a   :  { %v3460_v59 = vpop.eup %3459 }
 0x62b   :  { %1521 = vadd.xlane.f32.xlu1 %v3460_v59 }
 0x69e   :  { %v1522_v54 = vpop.xlane.xlu1 %1521 }
 0x69f   :  { %3461 = vrcp.f32 %v1522_v54 }
 0x6a5   :  { %v3462_v23 = vpop.eup %3461 }
 0x6a6   :  { %v5315_v18 = vmul.f32 %v3462_v23, %v3460_v59  ;;  %v6512_v23 = vld [vmem:[#allocation17_spill] sm:$0xff] }
 0x6a8   :  { %v1526_v55 = vperm.slane %v5315_v18, 0  ;;  %1525 = vst [vmem:[#allocation6] sm:$0xff] %v5315_v18  ;;  %v5353_v11 = vperm.slane %v5315_v18, 1  ;;  %v5383_v58 = vperm.slane %v5315_v18, 2  ;;  %v5421_v44 = vperm.slane %v5315_v18, 3 }
 0x6a9   :  { %2890 = dma.vmem_to_hbm [thread:$0]  %s2886_s7, 128, %s2888_s16, [#allocation5]  }
 0x6aa   :  { %1543 = vperm.xlu1 %3342, %v1526_v55   ;;  %1537 = vperm.xlu0 %3341, %v1526_v55  }
 0x6ab   :  { %1531 = vperm.xlu2 %3340, %v1526_v55  }
 0x6b2   :  { %3344 = vset.pattern.permute.xlu1 %v5320_v35  ;;  %3348 = vset.pattern.permute.xlu0 %v5323_v63 }
 0x6b3   :  { %3343 = vset.pattern.permute.xlu2 %v5326_v21 }
 0x6ba   :  { %1555 = vperm.xlu1 %3344, %v1526_v55   ;;  %1579 = vperm.xlu0 %3348, %v1526_v55  }
 0x6bb   :  { %1549 = vperm.xlu2 %3343, %v1526_v55  }
 0x6c2   :  { %3346 = vset.pattern.permute.xlu1 %v5332_v4  ;;  %3353 = vset.pattern.permute.xlu0 %v5335_v24 }
 0x6c3   :  { %3345 = vset.pattern.permute.xlu2 %v5338_v0 }
 0x6ca   :  { %1567 = vperm.xlu1 %3346, %v1526_v55   ;;  %1609 = vperm.xlu0 %3353, %v1526_v55  }
 0x6cb   :  { %1561 = vperm.xlu2 %3345, %v1526_v55  }
 0x6d2   :  { %3349 = vset.pattern.permute.xlu1 %v5344_v12  ;;  %3358 = vset.pattern.permute.xlu0 %v5308_v13 }
 0x6d3   :  { %3347 = vset.pattern.permute.xlu2 %v5347_v7 }
 0x6da   :  { %1585 = vperm.xlu1 %3349, %v1526_v55   ;;  %1640 = vperm.xlu0 %3358, %v5353_v11  }
 0x6db   :  { %1573 = vperm.xlu2 %3347, %v1526_v55  }
 0x6e2   :  { %3351 = vset.pattern.permute.xlu1 %v5357_v22  ;;  %3363 = vset.pattern.permute.xlu0 %v5347_v7 }
 0x6e3   :  { %3350 = vset.pattern.permute.xlu2 %v5360_v38 }
 0x6ea   :  { %1597 = vperm.xlu1 %3351, %v1526_v55   ;;  %1670 = vperm.xlu0 %3363, %v5353_v11  }
 0x6eb   :  { %1591 = vperm.xlu2 %3350, %v1526_v55  }
 0x6f2   :  { %3354 = vset.pattern.permute.xlu1 %v5367_v20  ;;  %3368 = vset.pattern.permute.xlu0 %v5370_v51 }
 0x6f3   :  { %3352 = vset.pattern.permute.xlu2 %v5370_v51 }
 0x6fa   :  { %1615 = vperm.xlu1 %3354, %v1526_v55   ;;  %1700 = vperm.xlu0 %3368, %v5353_v11  }
 0x6fb   :  { %1603 = vperm.xlu2 %3352, %v1526_v55  }
 0x702   :  { %3356 = vset.pattern.permute.xlu1 %v5304_v50  ;;  %3373 = vset.pattern.permute.xlu0 %v5311_v5 }
 0x703   :  { %3355 = vset.pattern.permute.xlu2 %v5377_v30 }
 0x705   :  { %v1532_v42 = vpop.permute.xlu2 %1531 }
 0x706   :  { %v2302_v16 = vmul.f32 %v6495_v26, %v1532_v42 }
 0x708   :  { %v2430_v29 = vsel %vm6499_vm7, %v2302_v16, 0.0  ;;  %vm6520_vm7 = vmmov %vm6515_vm0 }
 0x70a   :  { %1628 = vperm.xlu1 %3356, %v5353_v11   ;;  %1731 = vperm.xlu0 %3373, %v5383_v58  }
 0x70b   :  { %1621 = vperm.xlu2 %3355, %v1526_v55   ;;  %v6513_v55 = vunpack.c.l.bf16 %v6512_v23 }
 0x712   :  { %3359 = vset.pattern.permute.xlu1 %v5326_v21  ;;  %3378 = vset.pattern.permute.xlu0 %v5332_v4 }
 0x713   :  { %3357 = vset.pattern.permute.xlu2 %v5311_v5 }
 0x715   :  { %v1550_v61 = vpop.permute.xlu2 %1549 }
 0x716   :  { %v2305_v40 = vmul.f32 %v6500_v39, %v1550_v61 }
 0x718   :  { %v2435_v49 = vsel %vm6503_vm12, %v2305_v40, 0.0  ;;  %vm6527_vm12 = vmmov %vm6515_vm0 }
 0x71a   :  { %1646 = vperm.xlu1 %3359, %v5353_v11   ;;  %1761 = vperm.xlu0 %3378, %v5383_v58  }
 0x71b   :  { %1634 = vperm.xlu2 %3357, %v5353_v11  }
 0x71c   :  { %v1544_v32 = vpop.permute.xlu1 %1543  ;;  %v1538_v47 = vpop.permute.xlu0 %1537 }
 0x71d   :  { %v2304_v37 = vmul.f32 %v6497_v9, %v1544_v32  ;;  %v2303_v41 = vmul.f32 %v6498_v53, %v1538_v47 }
 0x71f   :  { %v2431_v52 = vsel %vm6501_vm8, %v2303_v41, 0.0  ;;  %v2433_v56 = vsel %vm6502_vm11, %v2304_v37, 0.0  ;;  %v6517_v37 = vld [vmem:[#allocation19_spill] sm:$0xff]  ;;  %vm6521_vm8 = vmmov %vm6515_vm0 }
 0x720   :  { %v2432_v33 = vadd.f32 %v2431_v52, %v2430_v29  ;;  %v6518_v53 = vunpack.c.l.bf16 %v6517_v37  ;;  %v6519_v29 = vunpack.c.h.bf16 %v6512_v23  ;;  %vm6526_vm11 = vmmov %vm6515_vm0 }
 0x722   :  { %v2434_v19 = vadd.f32 %v2433_v56, %v2432_v33  ;;  %3361 = vset.pattern.permute.xlu1 %v5338_v0  ;;  %3383 = vset.pattern.permute.xlu0 %v5357_v22 }
 0x723   :  { %3360 = vset.pattern.permute.xlu2 %v5320_v35 }
 0x724   :  { %v2436_v48 = vadd.f32 %v2435_v49, %v2434_v19 }
 0x725   :  { %v1562_v2 = vpop.permute.xlu2 %1561 }
 0x726   :  { %v2307_v27 = vmul.f32 %v6505_v3, %v1562_v2  ;;  %v6522_v2 = vld [vmem:[#allocation18_spill] sm:$0xff]  ;;  %v6524_v3 = vunpack.c.h.bf16 %v6517_v37  ;;  %v6536_v37 = vld [vmem:[#allocation21_spill] sm:$0xff] }
 0x728   :  { %v2439_v15 = vsel %vm6508_vm14, %v2307_v27, 0.0  ;;  %vm6532_vm14 = vmmov %vm6515_vm0 }
 0x72a   :  { %1658 = vperm.xlu1 %3361, %v5353_v11   ;;  %1791 = vperm.xlu0 %3383, %v5383_v58  }
 0x72b   :  { %1652 = vperm.xlu2 %3360, %v5353_v11  }
 0x72c   :  { %v1556_v34 = vpop.permute.xlu1 %1555  ;;  %v1580_v45 = vpop.permute.xlu0 %1579 }
 0x72d   :  { %v2306_v25 = vmul.f32 %v6506_v57, %v1556_v34  ;;  %v2310_v42 = vmul.f32 %v6513_v55, %v1580_v45  ;;  %v6523_v34 = vunpack.c.l.bf16 %v6522_v2  ;;  %v6525_v57 = vunpack.c.h.bf16 %v6522_v2 }
 0x72f   :  { %v2437_v36 = vsel %vm6507_vm13, %v2306_v25, 0.0  ;;  %v2445_v32 = vsel %vm6516_vm10, %v2310_v42, 0.0  ;;  %vm6528_vm13 = vmmov %vm6515_vm0 }
 0x730   :  { %v2438_v46 = vadd.f32 %v2437_v36, %v2436_v48  ;;  %vm6539_vm10 = vmmov %vm6515_vm0 }
 0x732   :  { %3364 = vset.pattern.permute.xlu1 %v5323_v63  ;;  %3388 = vset.pattern.permute.xlu0 %v5304_v50  ;;  %v2440_v60 = vadd.f32 %v2439_v15, %v2438_v46 }
 0x733   :  { %3362 = vset.pattern.permute.xlu2 %v5332_v4 }
 0x735   :  { %v1574_v43 = vpop.permute.xlu2 %1573 }
 0x736   :  { %v2309_v59 = vmul.f32 %v6510_v28, %v1574_v43  ;;  %v6529_v28 = vld [vmem:[#allocation20_spill] sm:$0xff] }
 0x738   :  { %v2443_v16 = vsel %vm6515_vm0, %v2309_v59, 0.0  ;;  %v6530_v59 = vunpack.c.h.bf16 %v6529_v28 }
 0x73a   :  { %1676 = vperm.xlu1 %3364, %v5353_v11   ;;  %1822 = vperm.xlu0 %3388, %v5421_v44  }
 0x73b   :  { %1664 = vperm.xlu2 %3362, %v5353_v11  }
 0x73c   :  { %v1568_v17 = vpop.permute.xlu1 %1567  ;;  %v1610_v49 = vpop.permute.xlu0 %1609 }
 0x73d   :  { %v2308_v54 = vmul.f32 %v6511_v6, %v1568_v17  ;;  %v2315_v25 = vmul.f32 %v6525_v57, %v1610_v49 }
 0x73f   :  { %v2441_v62 = vsel %vm6514_vm15, %v2308_v54, 0.0  ;;  %v2455_v43 = vsel %vm6528_vm13, %v2315_v25, 0.0  ;;  %v6531_v54 = vunpack.c.l.bf16 %v6529_v28  ;;  %vm6533_vm15 = vmmov %vm6515_vm0 }
 0x740   :  { %v2442_v26 = vadd.f32 %v2441_v62, %v2440_v60  ;;  %vm6551_vm13 = vmmov %vm6515_vm0 }
 0x742   :  { %v2444_v61 = vadd.f32 %v2443_v16, %v2442_v26  ;;  %3366 = vset.pattern.permute.xlu1 %v5360_v38  ;;  %3393 = vset.pattern.permute.xlu0 %v5338_v0 }
 0x743   :  { %3365 = vset.pattern.permute.xlu2 %v5344_v12 }
 0x744   :  { %v2446_v47 = vadd.f32 %v2445_v32, %v2444_v61  ;;  %v6534_v32 = vld [vmem:[#allocation22_spill] sm:$0xff] }
 0x745   :  { %v1592_v31 = vpop.permute.xlu2 %1591 }
 0x746   :  { %v2312_v41 = vmul.f32 %v6518_v53, %v1592_v31  ;;  %v6537_v53 = vunpack.c.l.bf16 %v6536_v37 }
 0x748   :  { %v2449_v33 = vsel %vm6521_vm8, %v2312_v41, 0.0  ;;  %vm6544_vm8 = vmmov %vm6515_vm0 }
 0x74a   :  { %1688 = vperm.xlu1 %3366, %v5353_v11   ;;  %1852 = vperm.xlu0 %3393, %v5421_v44  }
 0x74b   :  { %1682 = vperm.xlu2 %3365, %v5353_v11  }
 0x74c   :  { %v1586_v9 = vpop.permute.xlu1 %1585  ;;  %v1641_v61 = vpop.permute.xlu0 %1640 }
 0x74d   :  { %v2311_v39 = vmul.f32 %v6519_v29, %v1586_v9  ;;  %v2320_v41 = vmul.f32 %v6537_v53, %v1641_v61  ;;  %v6538_v29 = vunpack.c.l.bf16 %v6534_v32 }
 0x74f   :  { %v2447_v40 = vsel %vm6520_vm7, %v2311_v39, 0.0  ;;  %vm6540_vm7 = vmmov %vm6515_vm0 }
 0x750   :  { %v2448_v52 = vadd.f32 %v2447_v40, %v2446_v47  ;;  %v6535_v47 = vunpack.c.h.bf16 %v6534_v32 }
 0x752   :  { %3369 = vset.pattern.permute.xlu1 %v5335_v24  ;;  %3398 = vset.pattern.permute.xlu0 %v5360_v38  ;;  %v2450_v56 = vadd.f32 %v2449_v33, %v2448_v52  ;;  %v5494_v33 = vperm.slane %v5315_v18, 7 }
 0x753   :  { %3367 = vset.pattern.permute.xlu2 %v5357_v22 }
 0x755   :  { %v1604_v19 = vpop.permute.xlu2 %1603 }
 0x756   :  { %v2314_v14 = vmul.f32 %v6523_v34, %v1604_v19  ;;  %v2470_v19 = vsel %vm6540_vm7, %v2320_v41, 0.0  ;;  %v6541_v34 = vld [vmem:[#allocation23_spill] sm:$0xff]  ;;  %vm6563_vm7 = vmmov %vm6515_vm0 }
 0x758   :  { %v2453_v15 = vsel %vm6527_vm12, %v2314_v14, 0.0  ;;  %v6542_v14 = vunpack.c.l.bf16 %v6541_v34  ;;  %vm6550_vm12 = vmmov %vm6515_vm0 }
 0x75a   :  { %1706 = vperm.xlu1 %3369, %v5353_v11   ;;  %1882 = vperm.xlu0 %3398, %v5421_v44  }
 0x75b   :  { %1694 = vperm.xlu2 %3367, %v5353_v11  }
 0x75c   :  { %v1598_v48 = vpop.permute.xlu1 %1597 }
 0x75d   :  { %v2313_v27 = vmul.f32 %v6524_v3, %v1598_v48 }
 0x75f   :  { %v2451_v36 = vsel %vm6526_vm11, %v2313_v27, 0.0  ;;  %v6543_v27 = vunpack.c.h.bf16 %v6536_v37  ;;  %vm6545_vm11 = vmmov %vm6515_vm0 }
 0x760   :  { %v2452_v46 = vadd.f32 %v2451_v36, %v2450_v56 }
 0x762   :  { %v2454_v60 = vadd.f32 %v2453_v15, %v2452_v46  ;;  %3371 = vset.pattern.permute.xlu1 %v5377_v30  ;;  %3403 = vset.pattern.permute.xlu0 %v5377_v30 }
 0x763   :  { %3370 = vset.pattern.permute.xlu2 %v5367_v20 }
 0x764   :  { %v2456_v45 = vadd.f32 %v2455_v43, %v2454_v60  ;;  %v1671_v43 = vpop.permute.xlu0 %1670 }
 0x765   :  { %v1622_v17 = vpop.permute.xlu2 %1621 }
 0x766   :  { %v2317_v6 = vmul.f32 %v6530_v59, %v1622_v17  ;;  %v6546_v17 = vld [vmem:[#allocation25_spill] sm:$0xff]  ;;  %v6548_v59 = vunpack.c.h.bf16 %v6541_v34 }
 0x768   :  { %v2459_v62 = vsel %vm6533_vm15, %v2317_v6, 0.0  ;;  %vm6556_vm15 = vmmov %vm6515_vm0 }
 0x76a   :  { %1718 = vperm.xlu1 %3371, %v5353_v11   ;;  %1912 = vperm.xlu0 %3403, %v5421_v44  }
 0x76b   :  { %1712 = vperm.xlu2 %3370, %v5353_v11   ;;  %v5480_v11 = vperm.slane %v5315_v18, 5 }
 0x76c   :  { %v1616_v10 = vpop.permute.xlu1 %1615 }
 0x76d   :  { %v2316_v23 = vmul.f32 %v6531_v54, %v1616_v10  ;;  %v6547_v10 = vunpack.c.l.bf16 %v6546_v17  ;;  %v6549_v54 = vunpack.c.h.bf16 %v6546_v17 }
 0x76f   :  { %v2457_v55 = vsel %vm6532_vm14, %v2316_v23, 0.0  ;;  %v2325_v23 = vmul.f32 %v6549_v54, %v1671_v43  ;;  %vm6552_vm14 = vmmov %vm6515_vm0 }
 0x770   :  { %v2458_v42 = vadd.f32 %v2457_v55, %v2456_v45 }
 0x771   :  { %v2480_v61 = vsel %vm6552_vm14, %v2325_v23, 0.0  ;;  %vm6574_vm14 = vmmov %vm6515_vm0 }
 0x772   :  { %v5474_v26 = vadd.f32 %v2459_v62, %v2458_v42  ;;  %3374 = vset.pattern.permute.xlu1 %v5308_v13  ;;  %3408 = vset.pattern.permute.xlu0 %v5311_v5 }
 0x773   :  { %3372 = vset.pattern.permute.xlu2 %v5304_v50 }
 0x775   :  { %v1635_v16 = vpop.permute.xlu2 %1634 }
 0x776   :  { %v2319_v31 = vmul.f32 %v6535_v47, %v1635_v16 }
 0x778   :  { %v2468_v40 = vsel %vm6515_vm0, %v2319_v31, 0.0 }
 0x77a   :  { %1737 = vperm.xlu1 %3374, %v5383_v58   ;;  %2022 = vperm.xlu0 %3408, %v5480_v11  }
 0x77b   :  { %1725 = vperm.xlu2 %3372, %v5383_v58  }
 0x77c   :  { %v1629_v9 = vpop.permute.xlu1 %1628 }
 0x77d   :  { %v2318_v39 = vmul.f32 %v6538_v29, %v1629_v9  ;;  %v6553_v9 = vld [vmem:[#allocation24_spill] sm:$0xff] }
 0x77e   :  { %v6554_v37 = vunpack.c.h.bf16 %v6553_v9  ;;  %v6555_v41 = vunpack.c.l.bf16 %v6553_v9 }
 0x77f   :  { %v2467_v52 = vsel %vm6539_vm10, %v2318_v39, 0.0  ;;  %vm6562_vm10 = vmmov %vm6515_vm0 }
 0x780   :  { %v2469_v56 = vadd.f32 %v2468_v40, %v2467_v52 }
 0x782   :  { %3376 = vset.pattern.permute.xlu1 %v5320_v35  ;;  %2216 = vperm.xlu0 %3408, %v5494_v33   ;;  %v2471_v49 = vadd.f32 %v2470_v19, %v2469_v56 }
 0x783   :  { %3375 = vset.pattern.permute.xlu2 %v5326_v21 }
 0x785   :  { %v1653_v48 = vpop.permute.xlu2 %1652 }
 0x786   :  { %v2322_v3 = vmul.f32 %v6542_v14, %v1653_v48 }
 0x788   :  { %v2474_v46 = vsel %vm6545_vm11, %v2322_v3, 0.0  ;;  %vm6568_vm11 = vmmov %vm6515_vm0 }
 0x78a   :  { %1749 = vperm.xlu1 %3376, %v5383_v58   ;;  %3415 = vset.pattern.permute.xlu0 %v5326_v21 }
 0x78b   :  { %1743 = vperm.xlu2 %3375, %v5383_v58  }
 0x78c   :  { %v1647_v2 = vpop.permute.xlu1 %1646 }
 0x78d   :  { %v2321_v57 = vmul.f32 %v6543_v27, %v1647_v2  ;;  %v6557_v2 = vld [vmem:[#allocation26_spill] sm:$0xff] }
 0x78e   :  { %v6558_v34 = vunpack.c.h.bf16 %v6557_v2  ;;  %v6559_v3 = vunpack.c.l.bf16 %v6557_v2 }
 0x78f   :  { %v2472_v25 = vsel %vm6544_vm8, %v2321_v57, 0.0  ;;  %v6560_v57 = vld [vmem:[#allocation28_spill] sm:$0xff]  ;;  %vm6564_vm8 = vmmov %vm6515_vm0 }
 0x790   :  { %v2473_v36 = vadd.f32 %v2472_v25, %v2471_v49  ;;  %v1701_v49 = vpop.permute.xlu0 %1700  ;;  %v6561_v25 = vunpack.c.l.bf16 %v6560_v57  ;;  %v6567_v23 = vunpack.c.h.bf16 %v6560_v57 }
 0x792   :  { %3379 = vset.pattern.permute.xlu1 %v5347_v7  ;;  %2034 = vperm.xlu0 %3415, %v5480_v11   ;;  %v2475_v15 = vadd.f32 %v2474_v46, %v2473_v36  ;;  %v2330_v36 = vmul.f32 %v6561_v25, %v1701_v49 }
 0x793   :  { %3377 = vset.pattern.permute.xlu2 %v5338_v0 }
 0x795   :  { %v1665_v60 = vpop.permute.xlu2 %1664 }
 0x796   :  { %v2324_v28 = vmul.f32 %v6547_v10, %v1665_v60 }
 0x798   :  { %v2478_v62 = vsel %vm6551_vm13, %v2324_v28, 0.0  ;;  %vm6573_vm13 = vmmov %vm6515_vm0 }
 0x79a   :  { %1767 = vperm.xlu1 %3379, %v5383_v58   ;;  %2228 = vperm.xlu0 %3415, %v5494_v33  }
 0x79b   :  { %1755 = vperm.xlu2 %3377, %v5383_v58  }
 0x79c   :  { %v1659_v45 = vpop.permute.xlu1 %1658 }
 0x79d   :  { %v2323_v6 = vmul.f32 %v6548_v59, %v1659_v45  ;;  %v2490_v45 = vsel %vm6564_vm8, %v2330_v36, 0.0  ;;  %v6565_v59 = vld [vmem:[#allocation27_spill] sm:$0xff]  ;;  %vm6588_vm8 = vmmov %vm6515_vm0 }
 0x79f   :  { %v2476_v55 = vsel %vm6550_vm12, %v2323_v6, 0.0  ;;  %v6566_v6 = vunpack.c.l.bf16 %v6565_v59  ;;  %vm6569_vm12 = vmmov %vm6515_vm0 }
 0x7a0   :  { %v2477_v42 = vadd.f32 %v2476_v55, %v2475_v15 }
 0x7a2   :  { %v2479_v16 = vadd.f32 %v2478_v62, %v2477_v42  ;;  %3381 = vset.pattern.permute.xlu1 %v5344_v12  ;;  %3420 = vset.pattern.permute.xlu0 %v5338_v0 }
 0x7a3   :  { %3380 = vset.pattern.permute.xlu2 %v5323_v63 }
 0x7a4   :  { %v2481_v32 = vadd.f32 %v2480_v61, %v2479_v16  ;;  %v1732_v16 = vpop.permute.xlu0 %1731 }
 0x7a5   :  { %v1683_v47 = vpop.permute.xlu2 %1682 }
 0x7a6   :  { %v2327_v53 = vmul.f32 %v6554_v37, %v1683_v47  ;;  %v2461_v47 = vrot.slane %v5474_v26, 4 }
 0x7a8   :  { %v2484_v52 = vsel %vm6515_vm0, %v2327_v53, 0.0 }
 0x7aa   :  { %1779 = vperm.xlu1 %3381, %v5383_v58   ;;  %2046 = vperm.xlu0 %3420, %v5480_v11  }
 0x7ab   :  { %1773 = vperm.xlu2 %3380, %v5383_v58  }
 0x7ac   :  { %v1677_v31 = vpop.permute.xlu1 %1676 }
 0x7ad   :  { %v2326_v29 = vmul.f32 %v6555_v41, %v1677_v31  ;;  %v6570_v31 = vld [vmem:[#allocation29_spill] sm:$0xff] }
 0x7ae   :  { %v6571_v9 = vunpack.c.h.bf16 %v6570_v31  ;;  %v6572_v41 = vunpack.c.l.bf16 %v6570_v31  ;;  %v1762_v31 = vpop.permute.xlu0 %1761 }
 0x7af   :  { %v2482_v39 = vsel %vm6556_vm15, %v2326_v29, 0.0  ;;  %vm6576_vm15 = vmmov %vm6515_vm0 }
 0x7b0   :  { %v2483_v40 = vadd.f32 %v2482_v39, %v2481_v32  ;;  %v2335_v37 = vmul.f32 %v6571_v9, %v1732_v16  ;;  %v2462_v39 = vadd.f32 %v2461_v47, %v5474_v26 }
 0x7b2   :  { %3384 = vset.pattern.permute.xlu1 %v5370_v51  ;;  %2240 = vperm.xlu0 %3420, %v5494_v33   ;;  %v2485_v56 = vadd.f32 %v2484_v52, %v2483_v40  ;;  %v2505_v40 = vsel %vm6573_vm13, %v2335_v37, 0.0  ;;  %v6581_v37 = vld [vmem:[#allocation30_spill] sm:$0xff]  ;;  %vm6598_vm13 = vmmov %vm6515_vm0 }
 0x7b3   :  { %3382 = vset.pattern.permute.xlu2 %v5360_v38 }
 0x7b5   :  { %v1695_v19 = vpop.permute.xlu2 %1694 }
 0x7b6   :  { %v2329_v14 = vmul.f32 %v6558_v34, %v1695_v19  ;;  %v2463_v19 = vrot.slane %v2462_v39, 2 }
 0x7b8   :  { %v2488_v60 = vsel %vm6563_vm7, %v2329_v14, 0.0  ;;  %v2464_v14 = vadd.f32 %v2463_v19, %v2462_v39  ;;  %vm6587_vm7 = vmmov %vm6515_vm0 }
 0x7ba   :  { %1797 = vperm.xlu1 %3384, %v5383_v58   ;;  %3425 = vset.pattern.permute.xlu0 %v5347_v7 }
 0x7bb   :  { %1785 = vperm.xlu2 %3382, %v5383_v58  }
 0x7bc   :  { %v1689_v48 = vpop.permute.xlu1 %1688 }
 0x7bd   :  { %v2328_v27 = vmul.f32 %v6559_v3, %v1689_v48  ;;  %v6575_v48 = vunpack.c.h.bf16 %v6565_v59 }
 0x7bf   :  { %v2486_v46 = vsel %vm6562_vm10, %v2328_v27, 0.0  ;;  %v2465_v27 = vrot.slane %v2464_v14, 1  ;;  %vm6580_vm10 = vmmov %vm6515_vm0 }
 0x7c0   :  { %v2487_v15 = vadd.f32 %v2486_v46, %v2485_v56 }
 0x7c2   :  { %v2489_v43 = vadd.f32 %v2488_v60, %v2487_v15  ;;  %3386 = vset.pattern.permute.xlu1 %v5367_v20  ;;  %2058 = vperm.xlu0 %3425, %v5480_v11  }
 0x7c3   :  { %3385 = vset.pattern.permute.xlu2 %v5335_v24 }
 0x7c4   :  { %v2491_v17 = vadd.f32 %v2490_v45, %v2489_v43 }
 0x7c5   :  { %v1713_v10 = vpop.permute.xlu2 %1712 }
 0x7c6   :  { %v2332_v54 = vmul.f32 %v6566_v6, %v1713_v10 }
 0x7c8   :  { %v2494_v61 = vsel %vm6569_vm12, %v2332_v54, 0.0  ;;  %vm6593_vm12 = vmmov %vm6515_vm0 }
 0x7ca   :  { %1809 = vperm.xlu1 %3386, %v5383_v58   ;;  %2252 = vperm.xlu0 %3425, %v5494_v33  }
 0x7cb   :  { %1803 = vperm.xlu2 %3385, %v5383_v58  }
 0x7cc   :  { %v1707_v28 = vpop.permute.xlu1 %1706 }
 0x7cd   :  { %v2331_v55 = vmul.f32 %v6567_v23, %v1707_v28 }
 0x7cf   :  { %v2492_v42 = vsel %vm6568_vm11, %v2331_v55, 0.0  ;;  %vm6592_vm11 = vmmov %vm6515_vm0 }
 0x7d0   :  { %v2493_v62 = vadd.f32 %v2492_v42, %v2491_v17  ;;  %v6577_v17 = vld [vmem:[#allocation31_spill] sm:$0xff] }
 0x7d1   :  { %v6578_v10 = vunpack.c.h.bf16 %v6577_v17  ;;  %v6579_v59 = vunpack.c.l.bf16 %v6577_v17  ;;  %v1792_v17 = vpop.permute.xlu0 %1791 }
 0x7d2   :  { %3389 = vset.pattern.permute.xlu1 %v5311_v5  ;;  %3430 = vset.pattern.permute.xlu0 %v5344_v12  ;;  %v2495_v32 = vadd.f32 %v2494_v61, %v2493_v62 }
 0x7d3   :  { %3387 = vset.pattern.permute.xlu2 %v5377_v30 }
 0x7d5   :  { %v1726_v53 = vpop.permute.xlu2 %1725 }
 0x7d6   :  { %v2334_v29 = vmul.f32 %v6572_v41, %v1726_v53  ;;  %v6582_v53 = vunpack.c.h.bf16 %v6581_v37 }
 0x7d8   :  { %v2504_v52 = vsel %vm6574_vm14, %v2334_v29, 0.0  ;;  %v6583_v29 = vunpack.c.l.bf16 %v6581_v37  ;;  %vm6599_vm14 = vmmov %vm6515_vm0 }
 0x7d9   :  { %v2506_v56 = vadd.f32 %v2505_v40, %v2504_v52  ;;  %v6584_v40 = vld [vmem:[#allocation32_spill] sm:$0xff] }
 0x7da   :  { %1828 = vperm.xlu1 %3389, %v5421_v44   ;;  %2070 = vperm.xlu0 %3430, %v5480_v11   ;;  %v6585_v52 = vunpack.c.l.bf16 %v6584_v40 }
 0x7db   :  { %1815 = vperm.xlu2 %3387, %v5383_v58   ;;  %v2466_v58 = vadd.f32 %v2465_v27, %v2464_v14  ;;  %v6589_v27 = vld [vmem:[#allocation34_spill] sm:$0xff] }
 0x7dc   :  { %v1719_v49 = vpop.permute.xlu1 %1718 }
 0x7dd   :  { %v2333_v2 = vmul.f32 %v6575_v48, %v1719_v49  ;;  %v2726_v60 = vpack.c.bf16 %v2466_v58, %v2466_v58  ;;  %v6591_v58 = vunpack.c.h.bf16 %v6584_v40 }
 0x7df   :  { %v2496_v34 = vsel %vm6576_vm15, %v2333_v2, 0.0  ;;  %v2775_v55 = vunpack.c.l.b16 %v2726_v60  ;;  %vm6600_vm15 = vmmov %vm6515_vm0 }
 0x7e0   :  { %v2497_v26 = vadd.f32 %v2496_v34, %v2495_v32 }
 0x7e2   :  { %v2498_v3 = vrot.slane %v2497_v26, 4  ;;  %3391 = vset.pattern.permute.xlu1 %v5326_v21  ;;  %2264 = vperm.xlu0 %3430, %v5494_v33  }
 0x7e3   :  { %3390 = vset.pattern.permute.xlu2 %v5308_v13 }
 0x7e4   :  { %v2499_v57 = vadd.f32 %v2498_v3, %v2497_v26 }
 0x7e5   :  { %v1744_v15 = vpop.permute.xlu2 %1743 }
 0x7e6   :  { %v2500_v25 = vrot.slane %v2499_v57, 2  ;;  %v2337_v28 = vmul.f32 %v6578_v10, %v1744_v15 }
 0x7e8   :  { %v2501_v36 = vadd.f32 %v2500_v25, %v2499_v57  ;;  %v2509_v16 = vsel %vm6580_vm10, %v2337_v28, 0.0  ;;  %v6590_v57 = vunpack.c.l.bf16 %v6589_v27  ;;  %v6594_v28 = vld [vmem:[#allocation33_spill] sm:$0xff]  ;;  %vm6604_vm10 = vmmov %vm6515_vm0 }
 0x7ea   :  { %v2502_v46 = vrot.slane %v2501_v36, 1  ;;  %1840 = vperm.xlu1 %3391, %v5421_v44   ;;  %3435 = vset.pattern.permute.xlu0 %v5357_v22 }
 0x7eb   :  { %1834 = vperm.xlu2 %3390, %v5421_v44  }
 0x7ec   :  { %v2503_v43 = vadd.f32 %v2502_v46, %v2501_v36  ;;  %v1738_v45 = vpop.permute.xlu1 %1737 }
 0x7ed   :  { %v2336_v6 = vmul.f32 %v6579_v59, %v1738_v45  ;;  %v6595_v59 = vunpack.c.l.bf16 %v6594_v28 }
 0x7ee   :  { %v2727_v54 = vpack.c.bf16 %v2503_v43, %v2503_v43 }
 0x7ef   :  { %v2507_v23 = vsel %vm6515_vm0, %v2336_v6, 0.0 }
 0x7f0   :  { %v2776_v42 = vunpack.c.l.b16 %v2727_v54  ;;  %v2508_v62 = vadd.f32 %v2507_v23, %v2506_v56  ;;  %v2340_v56 = vmul.f32 %v6585_v52, %v1762_v31  ;;  %v6596_v54 = vunpack.c.h.bf16 %v6589_v27 }
 0x7f2   :  { %v5593_v61 = vsel %vm1500_vm1, %v2776_v42, %v2775_v55  ;;  %3394 = vset.pattern.permute.xlu1 %v5332_v4  ;;  %2082 = vperm.xlu0 %3435, %v5480_v11   ;;  %v2510_v32 = vadd.f32 %v2509_v16, %v2508_v62  ;;  %vm6586_vm1 = vmmov %vm6515_vm0  ;;  %v2515_v34 = vsel %vm6588_vm8, %v2340_v56, 0.0  ;;  %v6597_v55 = vunpack.c.h.bf16 %v6594_v28  ;;  %v6610_v28 = vld [vmem:[#allocation36_spill] sm:$0xff] }
 0x7f3   :  { %3392 = vset.pattern.permute.xlu2 %v5320_v35  ;;  %vm6615_vm8 = vmmov %vm6515_vm0 }
 0x7f4   :  { %v2345_v42 = vmul.f32 %v6597_v55, %v1792_v17  ;;  %v6612_v55 = vld [vmem:[#allocation38_spill] sm:$0xff] }
 0x7f5   :  { %v1756_v47 = vpop.permute.xlu2 %1755 }
 0x7f6   :  { %v2339_v41 = vmul.f32 %v6582_v53, %v1756_v47  ;;  %v2525_v31 = vsel %vm6600_vm15, %v2345_v42, 0.0  ;;  %v6613_v42 = vunpack.c.l.bf16 %v6612_v55  ;;  %vm6628_vm15 = vmmov %vm6515_vm0 }
 0x7f8   :  { %v2513_v48 = vsel %vm6587_vm7, %v2339_v41, 0.0  ;;  %v6601_v41 = vld [vmem:[#allocation35_spill] sm:$0xff]  ;;  %vm6609_vm7 = vmmov %vm6515_vm0 }
 0x7f9   :  { %v6603_v40 = vunpack.c.l.bf16 %v6601_v41 }
 0x7fa   :  { %1858 = vperm.xlu1 %3394, %v5421_v44   ;;  %2276 = vperm.xlu0 %3435, %v5494_v33  }
 0x7fb   :  { %1846 = vperm.xlu2 %3392, %v5421_v44  }
 0x7fc   :  { %v1750_v9 = vpop.permute.xlu1 %1749 }
 0x7fd   :  { %v2338_v39 = vmul.f32 %v6583_v29, %v1750_v9  ;;  %v6602_v29 = vunpack.c.h.bf16 %v6601_v41 }
 0x7ff   :  { %v2511_v19 = vsel %vm6586_vm1, %v2338_v39, 0.0  ;;  %vm6608_vm1 = vmmov %vm6515_vm0 }
 0x800   :  { %v2512_v49 = vadd.f32 %v2511_v19, %v2510_v32 }
 0x802   :  { %v2514_v2 = vadd.f32 %v2513_v48, %v2512_v49  ;;  %3396 = vset.pattern.permute.xlu1 %v5323_v63  ;;  %3440 = vset.pattern.permute.xlu0 %v5335_v24 }
 0x803   :  { %3395 = vset.pattern.permute.xlu2 %v5347_v7 }
 0x804   :  { %v2516_v14 = vadd.f32 %v2515_v34, %v2514_v2  ;;  %v5651_v2 = vperm.slane %v5315_v18, 4 }
 0x805   :  { %v1774_v26 = vpop.permute.xlu2 %1773 }
 0x806   :  { %v2342_v25 = vmul.f32 %v6590_v57, %v1774_v26  ;;  %v6605_v26 = vld [vmem:[#allocation37_spill] sm:$0xff] }
 0x807   :  { %v6607_v57 = vunpack.c.l.bf16 %v6605_v26 }
 0x808   :  { %v2519_v60 = vsel %vm6593_vm12, %v2342_v25, 0.0  ;;  %vm6617_vm12 = vmmov %vm6515_vm0 }
 0x80a   :  { %1870 = vperm.xlu1 %3396, %v5421_v44   ;;  %2094 = vperm.xlu0 %3440, %v5480_v11  }
 0x80b   :  { %1864 = vperm.xlu2 %3395, %v5421_v44  }
 0x80c   :  { %v1768_v3 = vpop.permute.xlu1 %1767 }
 0x80d   :  { %v2341_v36 = vmul.f32 %v6591_v58, %v1768_v3  ;;  %v6606_v3 = vunpack.c.h.bf16 %v6605_v26  ;;  %v6620_v26 = vunpack.c.h.bf16 %v6612_v55 }
 0x80f   :  { %v2517_v46 = vsel %vm6592_vm11, %v2341_v36, 0.0  ;;  %vm6616_vm11 = vmmov %vm6515_vm0 }
 0x810   :  { %v2518_v15 = vadd.f32 %v2517_v46, %v2516_v14 }
 0x812   :  { %3399 = vset.pattern.permute.xlu1 %v5357_v22  ;;  %2288 = vperm.xlu0 %3440, %v5494_v33   ;;  %v2520_v43 = vadd.f32 %v2519_v60, %v2518_v15 }
 0x813   :  { %3397 = vset.pattern.permute.xlu2 %v5344_v12 }
 0x815   :  { %v1786_v45 = vpop.permute.xlu2 %1785 }
 0x816   :  { %v2344_v6 = vmul.f32 %v6595_v59, %v1786_v45  ;;  %v6611_v59 = vunpack.c.l.bf16 %v6610_v28 }
 0x818   :  { %v2523_v32 = vsel %vm6599_vm14, %v2344_v6, 0.0  ;;  %vm6624_vm14 = vmmov %vm6515_vm0 }
 0x81a   :  { %1888 = vperm.xlu1 %3399, %v5421_v44   ;;  %3445 = vset.pattern.permute.xlu0 %v5377_v30 }
 0x81b   :  { %1876 = vperm.xlu2 %3397, %v5421_v44  }
 0x81c   :  { %v1780_v10 = vpop.permute.xlu1 %1779 }
 0x81d   :  { %v2343_v23 = vmul.f32 %v6596_v54, %v1780_v10 }
 0x81f   :  { %v2521_v62 = vsel %vm6598_vm13, %v2343_v23, 0.0  ;;  %vm6623_vm13 = vmmov %vm6515_vm0 }
 0x820   :  { %v2522_v16 = vadd.f32 %v2521_v62, %v2520_v43 }
 0x822   :  { %v2524_v47 = vadd.f32 %v2523_v32, %v2522_v16  ;;  %3401 = vset.pattern.permute.xlu1 %v5335_v24  ;;  %2106 = vperm.xlu0 %3445, %v5480_v11   ;;  %v6614_v16 = vunpack.c.h.bf16 %v6610_v28 }
 0x823   :  { %3400 = vset.pattern.permute.xlu2 %v5370_v51 }
 0x824   :  { %v2526_v9 = vadd.f32 %v2525_v31, %v2524_v47 }
 0x825   :  { %v1804_v37 = vpop.permute.xlu2 %1803 }
 0x826   :  { %v2347_v39 = vmul.f32 %v6602_v29, %v1804_v37 }
 0x828   :  { %v2529_v49 = vsel %vm6604_vm10, %v2347_v39, 0.0  ;;  %vm6634_vm10 = vmmov %vm6515_vm0 }
 0x82a   :  { %1900 = vperm.xlu1 %3401, %v5421_v44  }
 0x82b   :  { %1894 = vperm.xlu2 %3400, %v5421_v44  }
 0x82c   :  { %v1798_v53 = vpop.permute.xlu1 %1797 }
 0x82d   :  { %v2346_v52 = vmul.f32 %v6603_v40, %v1798_v53 }
 0x82f   :  { %v2527_v56 = vsel %vm6515_vm0, %v2346_v52, 0.0  ;;  %v5681_v52 = vperm.slane %v5315_v18, 6 }
 0x830   :  { %v2528_v19 = vadd.f32 %v2527_v56, %v2526_v9 }
 0x832   :  { %3404 = vset.pattern.permute.xlu1 %v5304_v50  ;;  %v2530_v48 = vadd.f32 %v2529_v49, %v2528_v19 }
 0x833   :  { %3402 = vset.pattern.permute.xlu2 %v5367_v20 }
 0x835   :  { %v1816_v34 = vpop.permute.xlu2 %1815 }
 0x836   :  { %v2349_v27 = vmul.f32 %v6606_v3, %v1816_v34 }
 0x838   :  { %v2533_v46 = vsel %vm6609_vm7, %v2349_v27, 0.0  ;;  %vm6636_vm7 = vmmov %vm6515_vm0 }
 0x83a   :  { %1919 = vperm.xlu1 %3404, %v5651_v2  }
 0x83b   :  { %1906 = vperm.xlu2 %3402, %v5421_v44   ;;  %v1823_v44 = vpop.permute.xlu0 %1822 }
 0x83c   :  { %v1810_v14 = vpop.permute.xlu1 %1809  ;;  %v2350_v6 = vmul.f32 %v6611_v59, %v1823_v44 }
 0x83d   :  { %v2348_v25 = vmul.f32 %v6607_v57, %v1810_v14 }
 0x83e   :  { %v2541_v31 = vsel %vm6615_vm8, %v2350_v6, 0.0  ;;  %vm6640_vm8 = vmmov %vm6515_vm0 }
 0x83f   :  { %v2531_v58 = vsel %vm6608_vm1, %v2348_v25, 0.0  ;;  %vm6635_vm1 = vmmov %vm6515_vm0 }
 0x840   :  { %v2532_v36 = vadd.f32 %v2531_v58, %v2530_v48  ;;  %v6618_v48 = vld [vmem:[#allocation40_spill] sm:$0xff] }
 0x841   :  { %v6619_v34 = vunpack.c.l.bf16 %v6618_v48  ;;  %v6621_v27 = vunpack.c.h.bf16 %v6618_v48  ;;  %v6637_v48 = vld [vmem:[#allocation46_spill] sm:$0xff] }
 0x842   :  { %v2534_v15 = vadd.f32 %v2533_v46, %v2532_v36  ;;  %3406 = vset.pattern.permute.xlu1 %v5308_v13 }
 0x843   :  { %3405 = vset.pattern.permute.xlu2 %v5311_v5  ;;  %v1853_v19 = vpop.permute.xlu0 %1852 }
 0x844   :  { %v2535_v60 = vrot.slane %v2534_v15, 4 }
 0x845   :  { %v1835_v10 = vpop.permute.xlu2 %1834 }
 0x846   :  { %v2536_v43 = vadd.f32 %v2535_v60, %v2534_v15  ;;  %v2352_v62 = vmul.f32 %v6613_v42, %v1835_v10  ;;  %v6629_v42 = vld [vmem:[#allocation43_spill] sm:$0xff] }
 0x848   :  { %v2537_v45 = vrot.slane %v2536_v43, 2  ;;  %v2544_v41 = vsel %vm6617_vm12, %v2352_v62, 0.0  ;;  %v6630_v62 = vunpack.c.h.bf16 %v6629_v42  ;;  %vm6646_vm12 = vmmov %vm6515_vm0 }
 0x84a   :  { %v2538_v17 = vadd.f32 %v2537_v45, %v2536_v43  ;;  %1931 = vperm.xlu1 %3406, %v5651_v2   ;;  %v6625_v43 = vld [vmem:[#allocation39_spill] sm:$0xff] }
 0x84b   :  { %1925 = vperm.xlu2 %3405, %v5651_v2   ;;  %v6626_v44 = vunpack.c.h.bf16 %v6625_v43 }
 0x84c   :  { %v2539_v54 = vrot.slane %v2538_v17, 1  ;;  %v1829_v23 = vpop.permute.xlu1 %1828 }
 0x84d   :  { %v2351_v32 = vmul.f32 %v6614_v16, %v1829_v23  ;;  %v1883_v23 = vpop.permute.xlu0 %1882 }
 0x84e   :  { %v2540_v47 = vadd.f32 %v2539_v54, %v2538_v17  ;;  %v6627_v17 = vunpack.c.l.bf16 %v6625_v43 }
 0x84f   :  { %v2542_v9 = vsel %vm6616_vm11, %v2351_v32, 0.0  ;;  %v6631_v32 = vunpack.c.l.bf16 %v6629_v42  ;;  %vm6641_vm11 = vmmov %vm6515_vm0 }
 0x850   :  { %v2728_v37 = vpack.c.bf16 %v2540_v47, %v2540_v47  ;;  %v2543_v53 = vadd.f32 %v2542_v9, %v2541_v31  ;;  %v6632_v31 = vld [vmem:[#allocation47_spill] sm:$0xff] }
 0x851   :  { %v6633_v9 = vunpack.c.l.bf16 %v6632_v31 }
 0x852   :  { %v2777_v29 = vunpack.c.l.b16 %v2728_v37  ;;  %3409 = vset.pattern.permute.xlu1 %v5304_v50  ;;  %v2545_v39 = vadd.f32 %v2544_v41, %v2543_v53 }
 0x853   :  { %3407 = vset.pattern.permute.xlu2 %v5304_v50  ;;  %v2360_v37 = vmul.f32 %v6633_v9, %v1883_v23 }
 0x854   :  { %v5678_v40 = vsel %vm1502_vm5, %v2777_v29, %v5593_v61  ;;  %v2355_v61 = vmul.f32 %v6621_v27, %v1853_v19  ;;  %vm6622_vm5 = vmmov %vm6515_vm0 }
 0x855   :  { %v1847_v56 = vpop.permute.xlu2 %1846 }
 0x856   :  { %v2354_v14 = vmul.f32 %v6619_v34, %v1847_v56  ;;  %v2550_v36 = vsel %vm6624_vm14, %v2355_v61, 0.0  ;;  %v6638_v34 = vunpack.c.l.bf16 %v6637_v48  ;;  %vm6652_vm14 = vmmov %vm6515_vm0 }
 0x858   :  { %v2548_v25 = vsel %vm6623_vm13, %v2354_v14, 0.0  ;;  %vm6648_vm13 = vmmov %vm6515_vm0 }
 0x85a   :  { %2113 = vperm.xlu1 %3409, %v5681_v52  }
 0x85b   :  { %2016 = vperm.xlu2 %3407, %v5480_v11  }
 0x85c   :  { %v1841_v49 = vpop.permute.xlu1 %1840 }
 0x85d   :  { %v2353_v3 = vmul.f32 %v6620_v26, %v1841_v49  ;;  %v6639_v26 = vunpack.c.h.bf16 %v6632_v31 }
 0x85f   :  { %v2546_v57 = vsel %vm6622_vm5, %v2353_v3, 0.0  ;;  %vm6647_vm5 = vmmov %vm6515_vm0 }
 0x860   :  { %v2547_v18 = vadd.f32 %v2546_v57, %v2545_v39  ;;  %v2560_v39 = vsel %vm6636_vm7, %v2360_v37, 0.0  ;;  %v6654_v37 = vld [vmem:[#allocation69_spill] sm:$0xff]  ;;  %vm6664_vm7 = vmmov %vm6515_vm0 }
 0x862   :  { %v2549_v58 = vadd.f32 %v2548_v25, %v2547_v18  ;;  %3411 = vset.pattern.permute.xlu1 %v5308_v13  ;;  %v1913_v25 = vpop.permute.xlu0 %1912 }
 0x863   :  { %3410 = vset.pattern.permute.xlu2 %v5311_v5 }
 0x864   :  { %v2551_v46 = vadd.f32 %v2550_v36, %v2549_v58  ;;  %v6642_v36 = vld [vmem:[#allocation51_spill] sm:$0xff] }
 0x865   :  { %v1865_v15 = vpop.permute.xlu2 %1864 }
 0x866   :  { %v2357_v45 = vmul.f32 %v6626_v44, %v1865_v15  ;;  %v6645_v44 = vunpack.c.h.bf16 %v6642_v36 }
 0x868   :  { %v2554_v6 = vsel %vm6515_vm0, %v2357_v45, 0.0  ;;  %v2365_v45 = vmul.f32 %v6645_v44, %v1913_v25 }
 0x86a   :  { %2028 = vperm.xlu1 %3411, %v5480_v11   ;;  %v2023_v9 = vpop.permute.xlu0 %2022 }
 0x86b   :  { %2119 = vperm.xlu2 %3410, %v5681_v52  }
 0x86c   :  { %v1859_v60 = vpop.permute.xlu1 %1858 }
 0x86d   :  { %v2356_v10 = vmul.f32 %v6627_v17, %v1859_v60  ;;  %v6644_v60 = vunpack.c.h.bf16 %v6637_v48 }
 0x86f   :  { %v2552_v28 = vsel %vm6628_vm15, %v2356_v10, 0.0  ;;  %vm6653_vm15 = vmmov %vm6515_vm0 }
 0x870   :  { %v2553_v59 = vadd.f32 %v2552_v28, %v2551_v46  ;;  %v6643_v46 = vunpack.c.l.bf16 %v6642_v36 }
 0x872   :  { %3413 = vset.pattern.permute.xlu1 %v5326_v21  ;;  %v2555_v5 = vadd.f32 %v2554_v6, %v2553_v59  ;;  %v2570_v59 = vsel %vm6648_vm13, %v2365_v45, 0.0  ;;  %v2217_v45 = vpop.permute.xlu0 %2216  ;;  %vm6675_vm13 = vmmov %vm6515_vm0 }
 0x873   :  { %3412 = vset.pattern.permute.xlu2 %v5304_v50 }
 0x875   :  { %v1877_v54 = vpop.permute.xlu2 %1876 }
 0x876   :  { %v2359_v16 = vmul.f32 %v6630_v62, %v1877_v54  ;;  %v6649_v54 = vld [vmem:[#allocation54_spill] sm:$0xff] }
 0x877   :  { %v6650_v23 = vunpack.c.h.bf16 %v6649_v54  ;;  %v6651_v62 = vunpack.c.l.bf16 %v6649_v54 }
 0x878   :  { %v2558_v50 = vsel %vm6635_vm1, %v2359_v16, 0.0  ;;  %vm6660_vm1 = vmmov %vm6515_vm0 }
 0x87a   :  { %1937 = vperm.xlu1 %3413, %v5651_v2  }
 0x87b   :  { %2210 = vperm.xlu2 %3412, %v5494_v33  }
 0x87c   :  { %v1871_v55 = vpop.permute.xlu1 %1870 }
 0x87d   :  { %v2358_v47 = vmul.f32 %v6631_v32, %v1871_v55 }
 0x87f   :  { %v2556_v53 = vsel %vm6634_vm10, %v2358_v47, 0.0  ;;  %vm6657_vm10 = vmmov %vm6515_vm0 }
 0x880   :  { %v2557_v41 = vadd.f32 %v2556_v53, %v2555_v5  ;;  %v6655_v53 = vunpack.c.h.bf16 %v6654_v37 }
 0x882   :  { %v2559_v29 = vadd.f32 %v2558_v50, %v2557_v41  ;;  %3416 = vset.pattern.permute.xlu1 %v5308_v13  ;;  %v2383_v41 = vmul.f32 %v6655_v53, %v2023_v9 }
 0x883   :  { %3414 = vset.pattern.permute.xlu2 %v5308_v13 }
 0x884   :  { %v2561_v56 = vadd.f32 %v2560_v39, %v2559_v29  ;;  %v6656_v29 = vunpack.c.l.bf16 %v6654_v37 }
 0x885   :  { %v1895_v19 = vpop.permute.xlu2 %1894 }
 0x886   :  { %v2362_v14 = vmul.f32 %v6638_v34, %v1895_v19 }
 0x888   :  { %v2564_v57 = vsel %vm6641_vm11, %v2362_v14, 0.0  ;;  %vm6669_vm11 = vmmov %vm6515_vm0 }
 0x88a   :  { %2222 = vperm.xlu1 %3416, %v5494_v33  }
 0x88b   :  { %2125 = vperm.xlu2 %3414, %v5681_v52  }
 0x88c   :  { %v1889_v49 = vpop.permute.xlu1 %1888 }
 0x88d   :  { %v2361_v3 = vmul.f32 %v6639_v26, %v1889_v49 }
 0x88f   :  { %v2562_v27 = vsel %vm6640_vm8, %v2361_v3, 0.0  ;;  %vm6665_vm8 = vmmov %vm6515_vm0 }
 0x890   :  { %v2563_v61 = vadd.f32 %v2562_v27, %v2561_v56  ;;  %v2616_v56 = vsel %vm6515_vm0, %v2383_v41, 0.0 }
 0x892   :  { %3418 = vset.pattern.permute.xlu1 %v5326_v21  ;;  %v2565_v13 = vadd.f32 %v2564_v57, %v2563_v61 }
 0x893   :  { %3417 = vset.pattern.permute.xlu2 %v5320_v35 }
 0x895   :  { %v1907_v18 = vpop.permute.xlu2 %1906 }
 0x896   :  { %v2364_v15 = vmul.f32 %v6643_v46, %v1907_v18  ;;  %v6661_v18 = vld [vmem:[#allocation85_spill] sm:$0xff] }
 0x897   :  { %v6662_v25 = vunpack.c.h.bf16 %v6661_v18 }
 0x898   :  { %v2568_v10 = vsel %vm6647_vm5, %v2364_v15, 0.0  ;;  %v6663_v15 = vunpack.c.l.bf16 %v6661_v18  ;;  %vm6674_vm5 = vmmov %vm6515_vm0 }
 0x89a   :  { %2131 = vperm.xlu1 %3418, %v5681_v52  }
 0x89b   :  { %1943 = vperm.xlu2 %3417, %v5651_v2  }
 0x89c   :  { %v1901_v58 = vpop.permute.xlu1 %1900 }
 0x89d   :  { %v2363_v43 = vmul.f32 %v6644_v60, %v1901_v58 }
 0x89f   :  { %v2566_v21 = vsel %vm6646_vm12, %v2363_v43, 0.0  ;;  %vm6670_vm12 = vmmov %vm6515_vm0 }
 0x8a0   :  { %v2567_v17 = vadd.f32 %v2566_v21, %v2565_v13 }
 0x8a2   :  { %v2569_v28 = vadd.f32 %v2568_v10, %v2567_v17  ;;  %3419 = vset.pattern.permute.xlu1 %v5338_v0  ;;  %v6666_v17 = vld [vmem:[#allocation105_spill] sm:$0xff] }
 0x8a3   :  { %2040 = vperm.xlu2 %3417, %v5480_v11   ;;  %v6667_v10 = vunpack.c.h.bf16 %v6666_v17 }
 0x8a4   :  { %v2571_v6 = vadd.f32 %v2570_v59, %v2569_v28 }
 0x8a5   :  { %v1926_v5 = vpop.permute.xlu2 %1925  ;;  %v2415_v28 = vmul.f32 %v6667_v10, %v2217_v45 }
 0x8a6   :  { %v2367_v55 = vmul.f32 %v6650_v23, %v1926_v5  ;;  %v2572_v27 = vrot.slane %v2571_v6, 4  ;;  %v6668_v5 = vunpack.c.l.bf16 %v6666_v17 }
 0x8a7   :  { %v2690_v23 = vsel %vm6669_vm11, %v2415_v28, 0.0  ;;  %vm6698_vm11 = vmmov %vm6515_vm0 }
 0x8a8   :  { %v2579_v32 = vsel %vm6652_vm14, %v2367_v55, 0.0  ;;  %v2573_v61 = vadd.f32 %v2572_v27, %v2571_v6  ;;  %vm6678_vm14 = vmmov %vm6515_vm0 }
 0x8aa   :  { %1949 = vperm.xlu1 %3419, %v5651_v2   ;;  %v2574_v13 = vrot.slane %v2573_v61, 2 }
 0x8ab   :  { %2137 = vperm.xlu2 %3417, %v5681_v52  }
 0x8ac   :  { %v1920_v42 = vpop.permute.xlu1 %1919  ;;  %v2575_v46 = vadd.f32 %v2574_v13, %v2573_v61 }
 0x8ad   :  { %v2366_v16 = vmul.f32 %v6651_v62, %v1920_v42 }
 0x8ae   :  { %v2576_v21 = vrot.slane %v2575_v46, 1 }
 0x8af   :  { %v2578_v47 = vsel %vm6653_vm15, %v2366_v16, 0.0  ;;  %v2035_v16 = vpop.permute.xlu0 %2034  ;;  %vm6683_vm15 = vmmov %vm6515_vm0 }
 0x8b0   :  { %v2580_v31 = vadd.f32 %v2579_v32, %v2578_v47  ;;  %v2577_v59 = vadd.f32 %v2576_v21, %v2575_v46  ;;  %v6671_v47 = vld [vmem:[#allocation72_spill] sm:$0xff] }
 0x8b1   :  { %v6673_v53 = vunpack.c.l.bf16 %v6671_v47 }
 0x8b2   :  { %3421 = vset.pattern.permute.xlu1 %v5320_v35  ;;  %v6658_v35 = vld [vmem:[#allocation53_spill] sm:$0xff]  ;;  %v2729_v42 = vpack.c.bf16 %v2577_v59, %v2577_v59 }
 0x8b3   :  { %3422 = vset.pattern.permute.xlu2 %v5332_v4  ;;  %v6659_v34 = vunpack.c.l.bf16 %v6658_v35 }
 0x8b4   :  { %v2778_v37 = vunpack.c.l.b16 %v2729_v42 }
 0x8b5   :  { %v2017_v50 = vpop.permute.xlu2 %2016 }
 0x8b6   :  { %v2382_v39 = vmul.f32 %v6656_v29, %v2017_v50 }
 0x8b7   :  { %v2229_v59 = vpop.permute.xlu0 %2228 }
 0x8b8   :  { %v2615_v19 = vsel %vm6657_vm10, %v2382_v39, 0.0  ;;  %vm6688_vm10 = vmmov %vm6515_vm0 }
 0x8b9   :  { %v2617_v49 = vadd.f32 %v2616_v56, %v2615_v19  ;;  %v5791_v56 = vsel %vm1504_vm4, %v2778_v37, %v5678_v40  ;;  %v6679_v40 = vunpack.c.h.bf16 %v6658_v35  ;;  %vm6680_vm4 = vmmov %vm6515_vm0  ;;  %v6693_v37 = vld [vmem:[#allocation91_spill] sm:$0xff] }
 0x8ba   :  { %2234 = vperm.xlu1 %3421, %v5494_v33  }
 0x8bb   :  { %1955 = vperm.xlu2 %3422, %v5651_v2  }
 0x8bc   :  { %v1932_v48 = vpop.permute.xlu1 %1931 }
 0x8bd   :  { %v2368_v14 = vmul.f32 %v6659_v34, %v1932_v48  ;;  %v6676_v34 = vld [vmem:[#allocation88_spill] sm:$0xff] }
 0x8be   :  { %v6691_v42 = vunpack.c.h.bf16 %v6676_v34 }
 0x8bf   :  { %v2581_v26 = vsel %vm6660_vm1, %v2368_v14, 0.0  ;;  %v6677_v14 = vunpack.c.l.bf16 %v6676_v34  ;;  %vm6690_vm1 = vmmov %vm6515_vm0 }
 0x8c0   :  { %v2582_v3 = vadd.f32 %v2581_v26, %v2580_v31  ;;  %v6672_v31 = vunpack.c.h.bf16 %v6671_v47 }
 0x8c2   :  { %3423 = vset.pattern.permute.xlu1 %v5338_v0  ;;  %v2385_v9 = vmul.f32 %v6672_v31, %v2035_v16 }
 0x8c3   :  { %2052 = vperm.xlu2 %3422, %v5480_v11  }
 0x8c4   :  { %v2620_v39 = vsel %vm6675_vm13, %v2385_v9, 0.0  ;;  %v2047_v9 = vpop.permute.xlu0 %2046  ;;  %vm6705_vm13 = vmmov %vm6515_vm0 }
 0x8c5   :  { %v2120_v57 = vpop.permute.xlu2 %2119 }
 0x8c6   :  { %v2399_v58 = vmul.f32 %v6662_v25, %v2120_v57  ;;  %v6681_v25 = vld [vmem:[#allocation55_spill] sm:$0xff] }
 0x8c8   :  { %v2653_v43 = vsel %vm6664_vm7, %v2399_v58, 0.0  ;;  %v6682_v58 = vunpack.c.l.bf16 %v6681_v25  ;;  %vm6692_vm7 = vmmov %vm6515_vm0 }
 0x8ca   :  { %2143 = vperm.xlu1 %3423, %v5681_v52  }
 0x8cb   :  { %2149 = vperm.xlu2 %3422, %v5681_v52  }
 0x8cc   :  { %v2114_v36 = vpop.permute.xlu1 %2113 }
 0x8cd   :  { %v2398_v60 = vmul.f32 %v6663_v15, %v2114_v36 }
 0x8cf   :  { %v2652_v0 = vsel %vm6665_vm8, %v2398_v60, 0.0  ;;  %v6684_v60 = vld [vmem:[#allocation104_spill] sm:$0xff]  ;;  %vm6696_vm8 = vmmov %vm6515_vm0 }
 0x8d0   :  { %v2654_v44 = vadd.f32 %v2653_v43, %v2652_v0  ;;  %v6685_v43 = vunpack.c.l.bf16 %v6684_v60 }
 0x8d2   :  { %3424 = vset.pattern.permute.xlu1 %v5347_v7 }
 0x8d3   :  { %3427 = vset.pattern.permute.xlu2 %v5323_v63 }
 0x8d5   :  { %v2211_v6 = vpop.permute.xlu2 %2210 }
 0x8d6   :  { %v2414_v54 = vmul.f32 %v6668_v5, %v2211_v6  ;;  %v6689_v6 = vunpack.c.h.bf16 %v6684_v60 }
 0x8d8   :  { %v2689_v55 = vsel %vm6670_vm12, %v2414_v54, 0.0  ;;  %v2417_v5 = vmul.f32 %v6689_v6, %v2229_v59  ;;  %vm6701_vm12 = vmmov %vm6515_vm0  ;;  %v6710_v59 = vunpack.c.h.bf16 %v6693_v37 }
 0x8d9   :  { %v2691_v62 = vadd.f32 %v2690_v23, %v2689_v55 }
 0x8da   :  { %1961 = vperm.xlu1 %3424, %v5651_v2   ;;  %v2694_v54 = vsel %vm6690_vm1, %v2417_v5, 0.0  ;;  %vm6719_vm1 = vmmov %vm6515_vm0 }
 0x8db   :  { %1967 = vperm.xlu2 %3427, %v5651_v2  }
 0x8dc   :  { %v2029_v32 = vpop.permute.xlu1 %2028 }
 0x8dd   :  { %v2384_v41 = vmul.f32 %v6673_v53, %v2029_v32  ;;  %v6694_v53 = vunpack.c.l.bf16 %v6693_v37 }
 0x8df   :  { %v2618_v50 = vsel %vm6674_vm5, %v2384_v41, 0.0  ;;  %vm6702_vm5 = vmmov %vm6515_vm0 }
 0x8e0   :  { %v2619_v29 = vadd.f32 %v2618_v50, %v2617_v49 }
 0x8e2   :  { %3426 = vset.pattern.permute.xlu1 %v5332_v4  ;;  %v2621_v19 = vadd.f32 %v2620_v39, %v2619_v29 }
 0x8e3   :  { %2064 = vperm.xlu2 %3427, %v5480_v11  }
 0x8e5   :  { %v2126_v48 = vpop.permute.xlu2 %2125 }
 0x8e6   :  { %v2400_v26 = vmul.f32 %v6677_v14, %v2126_v48  ;;  %v6697_v48 = vunpack.c.h.bf16 %v6681_v25  ;;  %v6703_v25 = vld [vmem:[#allocation59_spill] sm:$0xff] }
 0x8e8   :  { %v2655_v27 = vsel %vm6678_vm14, %v2400_v26, 0.0  ;;  %vm6708_vm14 = vmmov %vm6515_vm0 }
 0x8e9   :  { %v2656_v61 = vadd.f32 %v2655_v27, %v2654_v44  ;;  %v6686_v44 = vld [vmem:[#allocation71_spill] sm:$0xff]  ;;  %v6699_v27 = vld [vmem:[#allocation74_spill] sm:$0xff] }
 0x8ea   :  { %2246 = vperm.xlu1 %3426, %v5494_v33   ;;  %v6695_v50 = vunpack.c.h.bf16 %v6686_v44 }
 0x8eb   :  { %2161 = vperm.xlu2 %3427, %v5681_v52  }
 0x8ec   :  { %v1938_v49 = vpop.permute.xlu1 %1937  ;;  %v2387_v29 = vmul.f32 %v6695_v50, %v2047_v9  ;;  %v6715_v9 = vld [vmem:[#allocation90_spill] sm:$0xff] }
 0x8ed   :  { %v2369_v57 = vmul.f32 %v6679_v40, %v1938_v49  ;;  %v6716_v37 = vunpack.c.l.bf16 %v6715_v9 }
 0x8ee   :  { %v2624_v26 = vsel %vm6698_vm11, %v2387_v29, 0.0  ;;  %v6718_v29 = vunpack.c.h.bf16 %v6703_v25  ;;  %vm6727_vm11 = vmmov %vm6515_vm0 }
 0x8ef   :  { %v2583_v4 = vsel %vm6680_vm4, %v2369_v57, 0.0  ;;  %vm6711_vm4 = vmmov %vm6515_vm0 }
 0x8f0   :  { %v2584_v13 = vadd.f32 %v2583_v4, %v2582_v3 }
 0x8f2   :  { %3428 = vset.pattern.permute.xlu1 %v5347_v7  ;;  %v6687_v7 = vunpack.c.l.bf16 %v6686_v44  ;;  %v2241_v44 = vpop.permute.xlu0 %2240 }
 0x8f3   :  { %3432 = vset.pattern.permute.xlu2 %v5360_v38 }
 0x8f5   :  { %v1944_v18 = vpop.permute.xlu2 %1943 }
 0x8f6   :  { %v2370_v36 = vmul.f32 %v6682_v58, %v1944_v18  ;;  %v6704_v58 = vunpack.c.l.bf16 %v6703_v25 }
 0x8f8   :  { %v2585_v46 = vsel %vm6683_vm15, %v2370_v36, 0.0  ;;  %vm6714_vm15 = vmmov %vm6515_vm0 }
 0x8f9   :  { %v2586_v15 = vadd.f32 %v2585_v46, %v2584_v13 }
 0x8fa   :  { %2155 = vperm.xlu1 %3428, %v5681_v52  }
 0x8fb   :  { %1979 = vperm.xlu2 %3432, %v5651_v2  }
 0x8fc   :  { %v2223_v35 = vpop.permute.xlu1 %2222 }
 0x8fd   :  { %v2416_v0 = vmul.f32 %v6685_v43, %v2223_v35  ;;  %v2041_v3 = vpop.permute.xlu2 %2040  ;;  %v6706_v43 = vld [vmem:[#allocation106_spill] sm:$0xff] }
 0x8fe   :  { %v2386_v45 = vmul.f32 %v6687_v7, %v2041_v3 }
 0x8ff   :  { %v2692_v21 = vsel %vm6515_vm0, %v2416_v0, 0.0 }
 0x900   :  { %v2693_v17 = vadd.f32 %v2692_v21, %v2691_v62  ;;  %v2622_v10 = vsel %vm6688_vm10, %v2386_v45, 0.0  ;;  %v2059_v21 = vpop.permute.xlu0 %2058  ;;  %vm6717_vm10 = vmmov %vm6515_vm0 }
 0x901   :  { %v2623_v28 = vadd.f32 %v2622_v10, %v2621_v19 }
 0x902   :  { %3429 = vset.pattern.permute.xlu1 %v5344_v12  ;;  %v2695_v16 = vadd.f32 %v2694_v54, %v2693_v17  ;;  %v6709_v17 = vunpack.c.h.bf16 %v6699_v27 }
 0x903   :  { %2076 = vperm.xlu2 %3432, %v5480_v11   ;;  %v2625_v57 = vadd.f32 %v2624_v26, %v2623_v28 }
 0x904   :  { %v2389_v10 = vmul.f32 %v6709_v17, %v2059_v21 }
 0x905   :  { %v2138_v55 = vpop.permute.xlu2 %2137 }
 0x906   :  { %v2402_v41 = vmul.f32 %v6694_v53, %v2138_v55  ;;  %v2628_v54 = vsel %vm6711_vm4, %v2389_v10, 0.0  ;;  %vm6739_vm4 = vmmov %vm6515_vm0 }
 0x908   :  { %v2659_v39 = vsel %vm6696_vm8, %v2402_v41, 0.0  ;;  %vm6724_vm8 = vmmov %vm6515_vm0 }
 0x90a   :  { %1973 = vperm.xlu1 %3429, %v5651_v2  }
 0x90b   :  { %2173 = vperm.xlu2 %3432, %v5681_v52  }
 0x90c   :  { %v2132_v23 = vpop.permute.xlu1 %2131 }
 0x90d   :  { %v2401_v62 = vmul.f32 %v6691_v42, %v2132_v23  ;;  %v6712_v23 = vld [vmem:[#allocation78_spill] sm:$0xff] }
 0x90e   :  { %v6713_v55 = vunpack.c.l.bf16 %v6712_v23 }
 0x90f   :  { %v2657_v32 = vsel %vm6692_vm7, %v2401_v62, 0.0  ;;  %vm6723_vm7 = vmmov %vm6515_vm0 }
 0x910   :  { %v2658_v47 = vadd.f32 %v2657_v32, %v2656_v61  ;;  %v6700_v61 = vunpack.c.l.bf16 %v6699_v27 }
 0x912   :  { %3431 = vset.pattern.permute.xlu1 %v5323_v63  ;;  %v2660_v14 = vadd.f32 %v2659_v39, %v2658_v47 }
 0x913   :  { %3437 = vset.pattern.permute.xlu2 %v5370_v51 }
 0x915   :  { %v1956_v31 = vpop.permute.xlu2 %1955 }
 0x916   :  { %v2372_v36 = vmul.f32 %v6704_v58, %v1956_v31 }
 0x918   :  { %v2589_v46 = vsel %vm6705_vm13, %v2372_v36, 0.0  ;;  %v6728_v36 = vunpack.c.h.bf16 %v6715_v9  ;;  %vm6734_vm13 = vmmov %vm6515_vm0 }
 0x91a   :  { %2258 = vperm.xlu1 %3431, %v5494_v33  }
 0x91b   :  { %1991 = vperm.xlu2 %3437, %v5651_v2  }
 0x91c   :  { %v1950_v19 = vpop.permute.xlu1 %1949 }
 0x91d   :  { %v2371_v63 = vmul.f32 %v6697_v48, %v1950_v19  ;;  %v2053_v34 = vpop.permute.xlu2 %2052 }
 0x91e   :  { %v2388_v49 = vmul.f32 %v6700_v61, %v2053_v34 }
 0x91f   :  { %v2587_v40 = vsel %vm6701_vm12, %v2371_v63, 0.0  ;;  %vm6729_vm12 = vmmov %vm6515_vm0 }
 0x920   :  { %v2588_v4 = vadd.f32 %v2587_v40, %v2586_v15  ;;  %v2626_v13 = vsel %vm6702_vm5, %v2388_v49, 0.0  ;;  %v6707_v15 = vunpack.c.l.bf16 %v6706_v43  ;;  %v6725_v40 = vld [vmem:[#allocation108_spill] sm:$0xff]  ;;  %vm6732_vm5 = vmmov %vm6515_vm0 }
 0x921   :  { %v2627_v18 = vadd.f32 %v2626_v13, %v2625_v57  ;;  %v6726_v57 = vunpack.c.l.bf16 %v6725_v40 }
 0x922   :  { %3433 = vset.pattern.permute.xlu1 %v5344_v12  ;;  %v2590_v3 = vadd.f32 %v2589_v46, %v2588_v4 }
 0x923   :  { %2088 = vperm.xlu2 %3437, %v5480_v11  }
 0x925   :  { %v2150_v60 = vpop.permute.xlu2 %2149 }
 0x926   :  { %v2404_v53 = vmul.f32 %v6716_v37, %v2150_v60 }
 0x928   :  { %v2663_v41 = vsel %vm6717_vm10, %v2404_v53, 0.0  ;;  %vm6748_vm10 = vmmov %vm6515_vm0 }
 0x92a   :  { %2167 = vperm.xlu1 %3433, %v5681_v52  }
 0x92b   :  { %2185 = vperm.xlu2 %3437, %v5681_v52  }
 0x92c   :  { %v2235_v35 = vpop.permute.xlu1 %2234 }
 0x92d   :  { %v2418_v0 = vmul.f32 %v6707_v15, %v2235_v35  ;;  %v6730_v15 = vld [vmem:[#allocation94_spill] sm:$0xff] }
 0x92f   :  { %v2696_v12 = vsel %vm6708_vm14, %v2418_v0, 0.0  ;;  %v6731_v0 = vunpack.c.l.bf16 %v6730_v15  ;;  %vm6736_vm14 = vmmov %vm6515_vm0 }
 0x930   :  { %v2697_v7 = vadd.f32 %v2696_v12, %v2695_v16  ;;  %v2629_v16 = vadd.f32 %v2628_v54, %v2627_v18  ;;  %v6737_v54 = vld [vmem:[#allocation107_spill] sm:$0xff] }
 0x932   :  { %3434 = vset.pattern.permute.xlu1 %v5357_v22 }
 0x933   :  { %3442 = vset.pattern.permute.xlu2 %v5367_v20 }
 0x935   :  { %v1968_v45 = vpop.permute.xlu2 %1967 }
 0x93a   :  { %1985 = vperm.xlu1 %3434, %v5651_v2  }
 0x93b   :  { %2003 = vperm.xlu2 %3442, %v5651_v2  }
 0x93c   :  { %v2144_v28 = vpop.permute.xlu1 %2143 }
 0x93d   :  { %v2403_v6 = vmul.f32 %v6710_v59, %v2144_v28  ;;  %v2065_v5 = vpop.permute.xlu2 %2064  ;;  %v6735_v28 = vunpack.c.h.bf16 %v6725_v40 }
 0x93e   :  { %v2390_v42 = vmul.f32 %v6713_v55, %v2065_v5  ;;  %v6738_v55 = vunpack.c.l.bf16 %v6737_v54 }
 0x93f   :  { %v2661_v62 = vsel %vm6714_vm15, %v2403_v6, 0.0  ;;  %vm6744_vm15 = vmmov %vm6515_vm0 }
 0x940   :  { %v2662_v32 = vadd.f32 %v2661_v62, %v2660_v14  ;;  %v2630_v47 = vsel %vm6515_vm0, %v2390_v42, 0.0  ;;  %v6722_v14 = vunpack.c.h.bf16 %v6706_v43 }
 0x941   :  { %v5865_v31 = vadd.f32 %v2630_v47, %v2629_v16 }
 0x942   :  { %3436 = vset.pattern.permute.xlu1 %v5360_v38  ;;  %v2664_v19 = vadd.f32 %v2663_v41, %v2662_v32  ;;  %v6720_v38 = vld [vmem:[#allocation58_spill] sm:$0xff]  ;;  %v2419_v26 = vmul.f32 %v6722_v14, %v2241_v44 }
 0x943   :  { %2100 = vperm.xlu2 %3442, %v5480_v11   ;;  %v6721_v11 = vunpack.c.l.bf16 %v6720_v38 }
 0x944   :  { %v2698_v49 = vsel %vm6724_vm8, %v2419_v26, 0.0  ;;  %vm6757_vm8 = vmmov %vm6515_vm0 }
 0x945   :  { %v2374_v34 = vmul.f32 %v6721_v11, %v1968_v45  ;;  %v2699_v13 = vadd.f32 %v2698_v49, %v2697_v7  ;;  %v2162_v43 = vpop.permute.xlu2 %2161  ;;  %v6733_v7 = vunpack.c.h.bf16 %v6720_v38  ;;  %v6741_v11 = vld [vmem:[#allocation77_spill] sm:$0xff] }
 0x947   :  { %v2593_v27 = vsel %vm6723_vm7, %v2374_v34, 0.0  ;;  %v6742_v34 = vunpack.c.l.bf16 %v6741_v11  ;;  %vm6753_vm7 = vmmov %vm6515_vm0 }
 0x94a   :  { %2270 = vperm.xlu1 %3436, %v5494_v33  }
 0x94b   :  { %2197 = vperm.xlu2 %3442, %v5681_v52  }
 0x94c   :  { %v1962_v50 = vpop.permute.xlu1 %1961 }
 0x94d   :  { %v2373_v39 = vmul.f32 %v6718_v29, %v1962_v50 }
 0x94f   :  { %v2591_v48 = vsel %vm6719_vm1, %v2373_v39, 0.0  ;;  %vm6752_vm1 = vmmov %vm6515_vm0 }
 0x950   :  { %v2592_v63 = vadd.f32 %v2591_v48, %v2590_v3  ;;  %v2406_v3 = vmul.f32 %v6731_v0, %v2162_v43 }
 0x952   :  { %3438 = vset.pattern.permute.xlu1 %v5357_v22  ;;  %v2594_v4 = vadd.f32 %v2593_v27, %v2592_v63  ;;  %v2667_v44 = vsel %vm6732_vm5, %v2406_v3, 0.0  ;;  %vm6762_vm5 = vmmov %vm6515_vm0 }
 0x953   :  { %3447 = vset.pattern.permute.xlu2 %v5377_v30 }
 0x95a   :  { %2179 = vperm.xlu1 %3438, %v5681_v52  }
 0x95b   :  { %2203 = vperm.xlu2 %3447, %v5681_v52  }
 0x95c   :  { %v2247_v61 = vpop.permute.xlu1 %2246 }
 0x95d   :  { %v2420_v22 = vmul.f32 %v6726_v57, %v2247_v61  ;;  %v6743_v61 = vunpack.c.h.bf16 %v6730_v15 }
 0x95f   :  { %v2700_v18 = vsel %vm6727_vm11, %v2420_v22, 0.0  ;;  %vm6758_vm11 = vmmov %vm6515_vm0 }
 0x960   :  { %v2701_v25 = vadd.f32 %v2700_v18, %v2699_v13  ;;  %v6746_v18 = vld [vmem:[#allocation82_spill] sm:$0xff] }
 0x962   :  { %3439 = vset.pattern.permute.xlu1 %v5335_v24 }
 0x96a   :  { %1997 = vperm.xlu1 %3439, %v5651_v2  }
 0x96c   :  { %v2156_v58 = vpop.permute.xlu1 %2155 }
 0x96d   :  { %v2405_v46 = vmul.f32 %v6728_v36, %v2156_v58 }
 0x96f   :  { %v2665_v35 = vsel %vm6729_vm12, %v2405_v46, 0.0  ;;  %vm6761_vm12 = vmmov %vm6515_vm0 }
 0x970   :  { %v2666_v60 = vadd.f32 %v2665_v35, %v2664_v19  ;;  %v6749_v35 = vld [vmem:[#allocation98_spill] sm:$0xff] }
 0x971   :  { %v6751_v15 = vunpack.c.h.bf16 %v6749_v35 }
 0x972   :  { %3441 = vset.pattern.permute.xlu1 %v5370_v51  ;;  %v2668_v21 = vadd.f32 %v2667_v44, %v2666_v60  ;;  %v2253_v51 = vpop.permute.xlu0 %2252  ;;  %v6750_v60 = vunpack.c.l.bf16 %v6749_v35 }
 0x973   :  { %v2421_v59 = vmul.f32 %v6735_v28, %v2253_v51  ;;  %v6755_v28 = vld [vmem:[#allocation86_spill] sm:$0xff] }
 0x975   :  { %v2702_v5 = vsel %vm6736_vm14, %v2421_v59, 0.0  ;;  %v6756_v59 = vunpack.c.l.bf16 %v6755_v28  ;;  %vm6772_vm14 = vmmov %vm6515_vm0 }
 0x976   :  { %v2703_v62 = vadd.f32 %v2702_v5, %v2701_v25 }
 0x97a   :  { %2282 = vperm.xlu1 %3441, %v5494_v33   ;;  %v2071_v9 = vpop.permute.xlu0 %2070 }
 0x97c   :  { %v1974_v12 = vpop.permute.xlu1 %1973 }
 0x97d   :  { %v2375_v45 = vmul.f32 %v6733_v7, %v1974_v12 }
 0x97f   :  { %v2595_v17 = vsel %vm6734_vm13, %v2375_v45, 0.0  ;;  %vm6766_vm13 = vmmov %vm6515_vm0 }
 0x980   :  { %v5903_v10 = vadd.f32 %v2595_v17, %v2594_v4  ;;  %v6745_v4 = vunpack.c.h.bf16 %v6741_v11  ;;  %v6754_v17 = vunpack.c.h.bf16 %v6746_v18 }
 0x982   :  { %3443 = vset.pattern.permute.xlu1 %v5335_v24  ;;  %v1980_v24 = vpop.permute.xlu2 %1979  ;;  %v5923_v41 = vpop.permute.xlu0 %2264 }
 0x98a   :  { %2191 = vperm.xlu1 %3443, %v5681_v52   ;;  %v2077_v52 = vpop.permute.xlu2 %2076 }
 0x98b   :  { %v2392_v14 = vmul.f32 %v6742_v34, %v2077_v52 }
 0x98c   :  { %v2259_v6 = vpop.permute.xlu1 %2258 }
 0x98d   :  { %v2422_v42 = vmul.f32 %v6738_v55, %v2259_v6  ;;  %v2634_v57 = vsel %vm6515_vm0, %v2392_v14, 0.0 }
 0x98f   :  { %v2704_v16 = vsel %vm6739_vm4, %v2422_v42, 0.0  ;;  %vm6773_vm4 = vmmov %vm6515_vm0 }
 0x990   :  { %v5913_v32 = vadd.f32 %v2704_v16, %v2703_v62  ;;  %v6759_v62 = vld [vmem:[#allocation97_spill] sm:$0xff] }
 0x991   :  { %v6760_v16 = vunpack.c.l.bf16 %v6759_v62 }
 0x992   :  { %3444 = vset.pattern.permute.xlu1 %v5377_v30  ;;  %v2174_v47 = vpop.permute.xlu2 %2173 }
 0x993   :  { %v2408_v43 = vmul.f32 %v6750_v60, %v2174_v47 }
 0x995   :  { %v2671_v5 = vsel %vm6757_vm8, %v2408_v43, 0.0  ;;  %vm6781_vm8 = vmmov %vm6515_vm0 }
 0x99a   :  { %2009 = vperm.xlu1 %3444, %v5651_v2   ;;  %v5921_v37 = vpop.permute.xlu2 %1991  ;;  %v2083_v2 = vpop.permute.xlu0 %2082 }
 0x99b   :  { %v2393_v13 = vmul.f32 %v6745_v4, %v2083_v2  ;;  %v6770_v4 = vunpack.c.h.bf16 %v6759_v62 }
 0x99c   :  { %v2168_v53 = vpop.permute.xlu1 %2167 }
 0x99d   :  { %v2407_v49 = vmul.f32 %v6743_v61, %v2168_v53  ;;  %v2636_v3 = vsel %vm6752_vm1, %v2393_v13, 0.0  ;;  %vm6778_vm1 = vmmov %vm6515_vm0 }
 0x99f   :  { %v2669_v46 = vsel %vm6748_vm10, %v2407_v49, 0.0  ;;  %vm6775_vm10 = vmmov %vm6515_vm0 }
 0x9a0   :  { %v2670_v44 = vadd.f32 %v2669_v46, %v2668_v21 }
 0x9a2   :  { %3446 = vset.pattern.permute.xlu1 %v5367_v20  ;;  %v2089_v50 = vpop.permute.xlu2 %2088  ;;  %v5927_v19 = vpop.permute.xlu0 %2276  ;;  %v2672_v47 = vadd.f32 %v2671_v5, %v2670_v44 }
 0x9aa   :  { %2294 = vperm.xlu1 %3446, %v5494_v33   ;;  %v2186_v39 = vpop.permute.xlu2 %2185  ;;  %v2095_v63 = vpop.permute.xlu0 %2094 }
 0x9ab   :  { %v2395_v51 = vmul.f32 %v6754_v17, %v2095_v63  ;;  %v2410_v52 = vmul.f32 %v6760_v16, %v2186_v39  ;;  %v6767_v39 = vld [vmem:[#allocation102_spill] sm:$0xff] }
 0x9ac   :  { %v1986_v29 = vpop.permute.xlu1 %1985  ;;  %v6768_v49 = vunpack.c.l.bf16 %v6767_v39 }
 0x9ad   :  { %v2675_v34 = vsel %vm6766_vm13, %v2410_v52, 0.0  ;;  %vm6791_vm13 = vmmov %vm6515_vm0 }
 0x9b2   :  { %3448 = vset.pattern.permute.xlu1 %v5377_v30  ;;  %v5929_v48 = vpop.permute.xlu2 %2003  ;;  %v5944_v58 = vpop.permute.xlu0 %2288 }
 0x9ba   :  { %2300 = vperm.xlu1 %3448, %v5494_v33   ;;  %v6740_v33 = vunpack.c.h.bf16 %v6712_v23  ;;  %v2101_v26 = vpop.permute.xlu2 %2100  ;;  %v6747_v23 = vunpack.c.l.bf16 %v6746_v18  ;;  %v2107_v21 = vpop.permute.xlu0 %2106 }
 0x9bb   :  { %v2396_v6 = vmul.f32 %v6756_v59, %v2101_v26 }
 0x9bc   :  { %v5925_v20 = vpop.permute.xlu1 %2270  ;;  %v2391_v38 = vmul.f32 %v6740_v33, %v2071_v9  ;;  %v2394_v25 = vmul.f32 %v6747_v23, %v2089_v50  ;;  %v2640_v9 = vsel %vm6761_vm12, %v2395_v51, 0.0  ;;  %v6764_v33 = vld [vmem:[#allocation62_spill] sm:$0xff]  ;;  %v6771_v23 = vunpack.c.h.bf16 %v6767_v39  ;;  %vm6786_vm12 = vmmov %vm6515_vm0 }
 0x9bd   :  { %v2642_v53 = vsel %vm6762_vm5, %v2396_v6, 0.0  ;;  %vm6790_vm5 = vmmov %vm6515_vm0 }
 0x9be   :  { %v2632_v40 = vsel %vm6744_vm15, %v2391_v38, 0.0  ;;  %v6765_v38 = vunpack.c.l.bf16 %v6764_v33  ;;  %vm6774_vm15 = vmmov %vm6515_vm0 }
 0x9bf   :  { %v2633_v22 = vadd.f32 %v2632_v40, %v5865_v31  ;;  %v2638_v31 = vsel %vm6753_vm7, %v2394_v25, 0.0  ;;  %vm6780_vm7 = vmmov %vm6515_vm0 }
 0x9c0   :  { %v2376_v11 = vmul.f32 %v6765_v38, %v1980_v24 }
 0x9c1   :  { %v2635_v36 = vadd.f32 %v2634_v57, %v2633_v22  ;;  %v6769_v57 = vunpack.c.h.bf16 %v6764_v33 }
 0x9c2   :  { %v2198_v12 = vpop.permute.xlu2 %2197  ;;  %v2597_v35 = vsel %vm6774_vm15, %v2376_v11, 0.0  ;;  %vm6802_vm15 = vmmov %vm6515_vm0 }
 0x9c3   :  { %v2637_v45 = vadd.f32 %v2636_v3, %v2635_v36  ;;  %v2412_v40 = vmul.f32 %v6768_v49, %v2198_v12  ;;  %v2377_v22 = vmul.f32 %v6769_v57, %v1986_v29  ;;  %v2598_v29 = vadd.f32 %v2597_v35, %v5903_v10  ;;  %v6776_v3 = vld [vmem:[#allocation67_spill] sm:$0xff]  ;;  %v6782_v10 = vld [vmem:[#allocation66_spill] sm:$0xff] }
 0x9c4   :  { %v6783_v62 = vunpack.c.l.bf16 %v6782_v10 }
 0x9c5   :  { %v2639_v55 = vadd.f32 %v2638_v31, %v2637_v45  ;;  %v2679_v43 = vsel %vm6515_vm0, %v2412_v40, 0.0  ;;  %v6777_v31 = vunpack.c.l.bf16 %v6776_v3  ;;  %v6779_v45 = vunpack.c.h.bf16 %v6776_v3 }
 0x9c6   :  { %v2380_v16 = vmul.f32 %v6783_v62, %v5929_v48 }
 0x9c7   :  { %v2641_v2 = vadd.f32 %v2640_v9, %v2639_v55  ;;  %v2378_v44 = vmul.f32 %v6777_v31, %v5921_v37 }
 0x9c9   :  { %v2643_v61 = vadd.f32 %v2642_v53, %v2641_v2  ;;  %v2601_v5 = vsel %vm6780_vm7, %v2378_v44, 0.0  ;;  %v6785_v53 = vunpack.c.h.bf16 %v6782_v10 }
 0x9ca   :  { %v2204_v14 = vpop.permute.xlu2 %2203 }
 0x9cb   :  { %v2413_v25 = vmul.f32 %v6771_v23, %v2204_v14 }
 0x9cc   :  { %v2180_v30 = vpop.permute.xlu1 %2179 }
 0x9cd   :  { %v2409_v0 = vmul.f32 %v6751_v15, %v2180_v30  ;;  %v6763_v30 = vunpack.c.h.bf16 %v6755_v28  ;;  %v2599_v15 = vsel %vm6775_vm10, %v2377_v22, 0.0  ;;  %v2681_v12 = vsel %vm6778_vm1, %v2413_v25, 0.0 }
 0x9ce   :  { %v2600_v51 = vadd.f32 %v2599_v15, %v2598_v29  ;;  %v6787_v22 = vunpack.c.h.bf16 %v6737_v54  ;;  %v3006_v54 = vld [vmem:[%s6072_s11 + $0x8] sm:$0xff] }
 0x9cf   :  { %v2673_v42 = vsel %vm6758_vm11, %v2409_v0, 0.0  ;;  %v2397_v63 = vmul.f32 %v6763_v30, %v2107_v21  ;;  %vm6784_vm11 = vmmov %vm6515_vm0  ;;  %2812 = vmatpush.bf16.msrb.mxu3 %v3006_v54 }
 0x9d0   :  { %v2674_v50 = vadd.f32 %v2673_v42, %v2672_v47  ;;  %v2602_v42 = vadd.f32 %v2601_v5, %v2600_v51  ;;  %v2605_v9 = vsel %vm6784_vm11, %v2380_v16, 0.0 }
 0x9d1   :  { %v2644_v36 = vsel %vm6773_vm4, %v2397_v63, 0.0  ;;  %vm6796_vm4 = vmmov %vm6515_vm0 }
 0x9d2   :  { %v2676_v18 = vadd.f32 %v2675_v34, %v2674_v50  ;;  %v2645_v60 = vadd.f32 %v2644_v36, %v2643_v61 }
 0x9d4   :  { %v2646_v59 = vrot.slane %v2645_v60, 4 }
 0x9d6   :  { %v2647_v52 = vadd.f32 %v2646_v59, %v2645_v60 }
 0x9dc   :  { %v1998_v27 = vpop.permute.xlu1 %1997 }
 0x9dd   :  { %v2379_v17 = vmul.f32 %v6779_v45, %v1998_v27  ;;  %v2648_v27 = vrot.slane %v2647_v52, 2 }
 0x9df   :  { %v2603_v55 = vsel %vm6781_vm8, %v2379_v17, 0.0  ;;  %v2649_v38 = vadd.f32 %v2648_v27, %v2647_v52 }
 0x9e0   :  { %v2604_v37 = vadd.f32 %v2603_v55, %v2602_v42 }
 0x9e1   :  { %v2650_v48 = vrot.slane %v2649_v38, 1 }
 0x9e2   :  { %v2606_v30 = vadd.f32 %v2605_v9, %v2604_v37 }
 0x9e3   :  { %v2651_v49 = vadd.f32 %v2650_v48, %v2649_v38 }
 0x9ec   :  { %v5953_v7 = vpop.permute.xlu1 %2282 }
 0x9fc   :  { %v2192_v26 = vpop.permute.xlu1 %2191 }
 0x9fd   :  { %v2411_v13 = vmul.f32 %v6770_v4, %v2192_v26  ;;  %v2423_v4 = vmul.f32 %v6787_v22, %v5923_v41 }
 0x9ff   :  { %v2677_v24 = vsel %vm6772_vm14, %v2411_v13, 0.0  ;;  %v6788_v13 = vld [vmem:[#allocation109_spill] sm:$0xff]  ;;  %v2706_v35 = vsel %vm6790_vm5, %v2423_v4, 0.0  ;;  %vm6795_vm14 = vmmov %vm6515_vm0 }
 0xa00   :  { %v2678_v46 = vadd.f32 %v2677_v24, %v2676_v18  ;;  %v6789_v18 = vunpack.c.l.bf16 %v6788_v13  ;;  %v2731_v24 = vpack.c.bf16 %v2651_v49, %v2651_v49  ;;  %v6792_v41 = vunpack.c.h.bf16 %v6788_v13  ;;  %v3450_v49 = vld [vmem:[%s6075_s14] ss:$0 sm:$0xff] }
 0xa02   :  { %v2680_v0 = vadd.f32 %v2679_v43, %v2678_v46  ;;  %v2424_v23 = vmul.f32 %v6789_v18, %v5925_v20  ;;  %v2707_v43 = vadd.f32 %v2706_v35, %v5913_v32  ;;  %v2425_v29 = vmul.f32 %v6792_v41, %v5927_v19  ;;  %v3005_v32 = vld [vmem:[%s6072_s11] sm:$0xff] }
 0xa03   :  { %v2780_v20 = vunpack.c.l.b16 %v2731_v24  ;;  %2813 = vmatpush.bf16.msrb.mxu3 %v3005_v32 }
 0xa04   :  { %v2682_v28 = vadd.f32 %v2681_v12, %v2680_v0  ;;  %v2708_v60 = vsel %vm6791_vm13, %v2424_v23, 0.0  ;;  %v6793_v0 = vld [vmem:[#allocation111_spill] sm:$0xff] }
 0xa05   :  { %v6794_v3 = vunpack.c.l.bf16 %v6793_v0  ;;  %v2709_v44 = vadd.f32 %v2708_v60, %v2707_v43  ;;  %v6797_v5 = vunpack.c.h.bf16 %v6793_v0 }
 0xa06   :  { %v2683_v6 = vrot.slane %v2682_v28, 4 }
 0xa07   :  { %v2426_v31 = vmul.f32 %v6794_v3, %v5953_v7  ;;  %v3010_v7 = vld [vmem:[%s6074_s13 + $0x8] sm:$0xff]  ;;  %v2427_v55 = vmul.f32 %v6797_v5, %v5944_v58 }
 0xa08   :  { %v2684_v47 = vadd.f32 %v2683_v6, %v2682_v28  ;;  %v2710_v28 = vsel %vm6795_vm14, %v2425_v29, 0.0  ;;  %2850 = vmatpush.bf16.msrb.mxu1 %v3010_v7 }
 0xa09   :  { %v2712_v59 = vsel %vm6796_vm4, %v2426_v31, 0.0  ;;  %v2711_v6 = vadd.f32 %v2710_v28, %v2709_v44 }
 0xa0a   :  { %v2685_v2 = vrot.slane %v2684_v47, 2 }
 0xa0b   :  { %v2713_v10 = vadd.f32 %v2712_v59, %v2711_v6 }
 0xa0c   :  { %v2010_v21 = vpop.permute.xlu1 %2009  ;;  %v2686_v11 = vadd.f32 %v2685_v2, %v2684_v47 }
 0xa0d   :  { %v2381_v50 = vmul.f32 %v6785_v53, %v2010_v21 }
 0xa0e   :  { %v2687_v26 = vrot.slane %v2686_v11, 1 }
 0xa0f   :  { %v2607_v63 = vsel %vm6786_vm12, %v2381_v50, 0.0 }
 0xa10   :  { %v2608_v33 = vadd.f32 %v2607_v63, %v2606_v30  ;;  %v2688_v40 = vadd.f32 %v2687_v26, %v2686_v11 }
 0xa12   :  { %v2609_v34 = vrot.slane %v2608_v33, 4  ;;  %v2732_v36 = vpack.c.bf16 %v2688_v40, %v2688_v40 }
 0xa14   :  { %v2610_v14 = vadd.f32 %v2609_v34, %v2608_v33  ;;  %v2781_v12 = vunpack.c.l.b16 %v2732_v36 }
 0xa16   :  { %v2611_v61 = vrot.slane %v2610_v14, 2 }
 0xa18   :  { %v2612_v39 = vadd.f32 %v2611_v61, %v2610_v14  ;;  %v6803_v14 = vld [vmem:[#allocation16_spill] sm:$0xff] }
 0xa1a   :  { %v2613_v57 = vrot.slane %v2612_v39, 1 }
 0xa1c   :  { %v2614_v25 = vadd.f32 %v2613_v57, %v2612_v39  ;;  %v2295_v51 = vpop.permute.xlu1 %2294 }
 0xa1e   :  { %v2730_v46 = vpack.c.bf16 %v2614_v25, %v2614_v25 }
 0xa20   :  { %v2779_v15 = vunpack.c.l.b16 %v2730_v46 }
 0xa22   :  { %v2786_v45 = vsel %vm1506_vm3, %v2779_v15, %v5791_v56  ;;  %v6798_v56 = vunpack.c.l.bf16 %v4867_v8  ;;  %vm6799_vm3 = vmmov %vm6515_vm0  ;;  %v3009_v8 = vld [vmem:[%s6074_s13] sm:$0xff] }
 0xa23   :  { %v2787_v17 = vsel %vm1508_vm6, %v2780_v20, %v2786_v45  ;;  %v2714_v62 = vsel %vm6799_vm3, %v2427_v55, 0.0  ;;  %vm6800_vm6 = vmmov %vm6515_vm0  ;;  %2851 = vmatpush.bf16.msrb.mxu1 %v3009_v8 }
 0xa24   :  { %v2788_v19 = vsel %vm1510_vm2, %v2781_v12, %v2787_v17  ;;  %v2428_v42 = vmul.f32 %v6798_v56, %v2295_v51  ;;  %v2715_v52 = vadd.f32 %v2714_v62, %v2713_v10  ;;  %vm6801_vm2 = vmmov %vm6515_vm0 }
 0xa26   :  { %v2716_v16 = vsel %vm6800_vm6, %v2428_v42, 0.0 }
 0xa27   :  { %v2717_v21 = vadd.f32 %v2716_v16, %v2715_v52 }
 0xa2c   :  { %v2301_v37 = vpop.permute.xlu1 %2300 }
 0xa2d   :  { %v2429_v47 = vmul.f32 %v3266_v1, %v2301_v37 }
 0xa2f   :  { %v2718_v9 = vsel %vm6801_vm2, %v2429_v47, 0.0 }
 0xa30   :  { %v2719_v27 = vadd.f32 %v2718_v9, %v2717_v21 }
 0xa32   :  { %v2720_v53 = vrot.slane %v2719_v27, 4 }
 0xa34   :  { %v2721_v58 = vadd.f32 %v2720_v53, %v2719_v27 }
 0xa36   :  { %v2722_v50 = vrot.slane %v2721_v58, 2 }
 0xa38   :  { %v2723_v2 = vadd.f32 %v2722_v50, %v2721_v58 }
 0xa3a   :  { %v2724_v30 = vrot.slane %v2723_v2, 1 }
 0xa3c   :  { %v2725_v63 = vadd.f32 %v2724_v30, %v2723_v2 }
 0xa3e   :  { %v2733_v33 = vpack.c.bf16 %v2725_v63, %v2725_v63 }
 0xa40   :  { %v2782_v38 = vunpack.c.l.b16 %v2733_v33 }
 0xa42   :  { %v2789_v11 = vsel %vm1512_vm9, %v2782_v38, %v2788_v19 }
 0xa43   :  { %v2790_v34 = vpack.c.b16 %v2789_v11, %v2789_v11 }
 0xa45   :  { %2985 = vmatmul.msk.bf16.vlgmr.msrb.gmra.mxu3 %vm6802_vm15, %v2790_v34 }
 0xac8   :  { %v2815_v1 = vpop.f32.mrf.mxu3 }
 0xac9   :  { %v2816_v48 = vadd.f32 %v2815_v1, %v6803_v14 }
 0xacb   :  { %3463 = vtanh.f32 %v2816_v48 }
 0xad0   :  { %v2817_v26 = vpop.f32.mrf.mxu3 }
 0xad1   :  { %v3464_v61 = vpop.eup %3463 }
 0xad2   :  { %v2820_v39 = vpack.c.bf16 %v3464_v61, %v3464_v61 }
 0xad4   :  { %2994 = vmatmul.msk.bf16.vlgmr.msrb.gmra.mxu1 %vm6515_vm0, %v2820_v39 }
 0xb51   :  { %v2853_v40 = vpop.f32.mrf.mxu1 }
 0xb52   :  { %v2854_v57 = vadd.f32 %v3450_v49, %v2853_v40 }
 0xb54   :  { %2857 = vst [vmem:[#allocation7] sm:$0xff] %v2854_v57 }
 0xb55   :  { %2901 = dma.vmem_to_hbm [thread:$0]  %s2897_s15, 128, %s2899_s3, [#allocation8]  }
 0xb59   :  { %v2855_v22 = vpop.f32.mrf.mxu1 }
 0xb5a   :  { %3561 = dma.done.wait [#allocation3], 128  }
 0xb5b   :  { %3562 = vsyncadd [#allocation3], 4294967168 }
 0xb5c   :  { %3563 = dma.done.wait [#allocation5], 256  }
 0xb5d   :  { %3564 = vsyncadd [#allocation5], 4294967040 }
 0xb5e   :  { %3565 = dma.done.wait [#allocation8], 128  }
 0xb5f   :  { %3566 = vsyncadd [#allocation8], 4294967168 }
 0xb60   :  { %2918 = vsyncpa [#allocation3], 1 }
 0xb61   :  { %2919 = vsyncpa [#allocation5], 1 }
 0xb62   :  { %2920 = vsyncpa [#allocation8], 1 }

</bundles_post_ra>
